<compile_context>
chip_gen: v7x
topology: tpu7x:2x2x1
jax: 0.10.0
libtpu: 0.0.40
codegen_flags: <defaults>
</compile_context>

<pallas_src>
import functools

import jax
import jax.numpy as jnp
from jax.experimental import pallas as pl
from jax.experimental.pallas import tpu as pltpu


# ----------------------------------------------------------------------------
# Pallas kernel: fused conv (+ folded BN shift) (+ LeakyReLU) for one image.
# refs = (*phase_refs[stride^2], w_ref, shift_ref, o_ref)
#   phase_refs[p] : (1, PH_p, PW_p, Cp)  bf16  (stride-phase view of padded x)
#   w_ref         : (KH*KW, Cp, F)       bf16  (BN scale already folded in)
#   shift_ref     : (1, F)               f32   (conv bias or folded BN shift)
#   o_ref         : (OH*OW, F)           f32
# ----------------------------------------------------------------------------
def _conv_bn_act_kernel(*refs, KH, KW, stride, OH, OW, TR, leaky):
    s = stride
    nphase = s * s
    phase_refs = refs[:nphase]
    w_ref = refs[nphase]
    shift_ref = refs[nphase + 1]
    o_ref = refs[nphase + 2]

    Cp = w_ref.shape[1]
    F = o_ref.shape[1]
    shift = shift_ref[...]                                  # (1, F) f32

    # Process output rows in chunks of TR rows (<=128 flattened rows) so the
    # f32 accumulator stays comfortably inside the vector register file.
    for r0 in range(0, OH, TR):
        tr = min(TR, OH - r0)
        rows = tr * OW
        acc = jnp.zeros((rows, F), jnp.float32)
        for ki in range(KH):
            for kj in range(KW):
                ph = phase_refs[(ki % s) * s + (kj % s)]
                hs = ki // s + r0
                ws = kj // s
                patch = ph[:, hs:hs + tr, ws:ws + OW, :]    # (1, tr, OW, Cp) bf16
                a2 = patch.reshape(rows, Cp)
                acc = acc + jnp.dot(a2, w_ref[ki * KW + kj],
                                    preferred_element_type=jnp.float32)
        y = acc + shift
        if leaky:
            y = jnp.where(y > 0, y, 0.1 * y)                # LeakyReLU(0.1)
        o_ref[r0 * OW:r0 * OW + rows, :] = y


# ----------------------------------------------------------------------------
# Conv2d (NHWC) = one fused Pallas call per layer (no im2col, no transposes).
# ----------------------------------------------------------------------------
def conv2d_nhwc(x, weight, scale, shift, stride, pad, leaky):
    """x: (N,H,W,C) f32; weight: (F,C,KH,KW) (PyTorch OIHW). Returns (N,OH,OW,F) f32."""
    N, H, W, C = x.shape
    F, _, KH, KW = weight.shape
    s = stride
    OH = (H + 2 * pad - KH) // s + 1
    OW = (W + 2 * pad - KW) // s + 1
    Cp = ((C + 7) // 8) * 8                     # sublane-align the contraction dim

    # Fold BN scale into the weights (once, outside); reorder to (KH*KW, Cp, F).
    wf = (weight * scale[:, None, None, None]).transpose(2, 3, 1, 0)   # (KH,KW,C,F)
    wf = jnp.pad(wf, ((0, 0), (0, 0), (0, Cp - C), (0, 0)))
    wf = wf.reshape(KH * KW, Cp, F).astype(jnp.bfloat16)
    shift2 = shift.reshape(1, F).astype(jnp.float32)

    # Spatial zero-pad (+ s-1 slack so every stride-phase window is in bounds),
    # channel pad to Cp, cast to bf16 — one fused XLA pad+convert, read once.
    xp = jnp.pad(x, ((0, 0), (pad, pad + s - 1), (pad, pad + s - 1), (0, Cp - C)))
    xp = xp.astype(jnp.bfloat16)
    if s == 1:
        phases = [xp]
    else:
        phases = [xp[:, a::s, b::s, :] for a in range(s) for b in range(s)]

    TR = max(1, min(OH, 128 // OW))             # output rows per in-kernel chunk

    kernel = functools.partial(_conv_bn_act_kernel, KH=KH, KW=KW, stride=s,
                               OH=OH, OW=OW, TR=TR, leaky=leaky)

    in_specs = [pl.BlockSpec((1,) + p.shape[1:], lambda n: (n, 0, 0, 0))
                for p in phases]
    in_specs.append(pl.BlockSpec(wf.shape, lambda n: (0, 0, 0)))
    in_specs.append(pl.BlockSpec(shift2.shape, lambda n: (0, 0)))

    out = pl.pallas_call(
        kernel,
        out_shape=jax.ShapeDtypeStruct((N * OH * OW, F), jnp.float32),
        grid=(N,),
        in_specs=in_specs,
        out_specs=pl.BlockSpec((OH * OW, F), lambda n: (n, 0)),
        compiler_params=pltpu.CompilerParams(dimension_semantics=("parallel",)),
    )(*phases, wf, shift2)
    return out.reshape(N, OH, OW, F)


def upsample_nearest_nhwc(x, scale):
    x = jnp.repeat(x, scale, axis=1)
    return jnp.repeat(x, scale, axis=2)


# ----------------------------------------------------------------------------
# YOLO detection decode (standard predict_transform, NHWC input).
# ----------------------------------------------------------------------------
def predict_transform_nhwc(pred, inp_dim, anchors, num_classes):
    batch, grid_size = pred.shape[0], pred.shape[1]
    stride = inp_dim // grid_size
    bbox_attrs = 5 + num_classes
    num_anchors = len(anchors)

    # (B, G, G, A*attrs) -> (B, G*G*A, attrs); same per-location channel order
    # as the NCHW reference path (reshape/transpose/reshape).
    p = pred.reshape(batch, grid_size * grid_size, num_anchors, bbox_attrs)
    p = p.reshape(batch, grid_size * grid_size * num_anchors, bbox_attrs)

    anchors_s = jnp.array([(a[0] / stride, a[1] / stride) for a in anchors],
                          dtype=jnp.float32)

    g = jnp.arange(grid_size, dtype=jnp.float32)
    a_off, b_off = jnp.meshgrid(g, g)                      # 'xy' indexing
    xy_off = jnp.concatenate([a_off.reshape(-1, 1), b_off.reshape(-1, 1)], axis=1)
    xy_off = jnp.tile(xy_off, (1, num_anchors)).reshape(-1, 2)[None]
    anchors_t = jnp.tile(anchors_s, (grid_size * grid_size, 1))[None]

    xy = jax.nn.sigmoid(p[:, :, 0:2]) + xy_off
    wh = jnp.exp(p[:, :, 2:4]) * anchors_t
    obj = jax.nn.sigmoid(p[:, :, 4:5])
    cls = jax.nn.sigmoid(p[:, :, 5:5 + num_classes])
    box = jnp.concatenate([xy, wh], axis=2) * stride
    return jnp.concatenate([box, obj, cls], axis=2)


# ----------------------------------------------------------------------------
# Synthetic in-script "cfg" (equivalent of parse_cfg output) — no file IO.
# ----------------------------------------------------------------------------
ANCHORS = '10,13,16,30,33,23,30,61,62,45,59,119'
BLOCKS = [
    {'type': 'net', 'height': '16', 'width': '16', 'channels': '3'},
    {'type': 'convolutional', 'batch_normalize': '1', 'filters': '8',
     'size': '3', 'stride': '1', 'pad': '1', 'activation': 'leaky'},
    {'type': 'convolutional', 'batch_normalize': '1', 'filters': '16',
     'size': '3', 'stride': '2', 'pad': '1', 'activation': 'leaky'},
    {'type': 'convolutional', 'batch_normalize': '1', 'filters': '16',
     'size': '3', 'stride': '1', 'pad': '1', 'activation': 'leaky'},
    {'type': 'shortcut', 'from': '-2', 'activation': 'linear'},
    {'type': 'convolutional', 'filters': '18', 'size': '1', 'stride': '1',
     'pad': '1', 'activation': 'linear'},
    {'type': 'yolo', 'mask': '0,1,2', 'anchors': ANCHORS, 'classes': '1'},
    {'type': 'route', 'layers': '-3'},
    {'type': 'convolutional', 'batch_normalize': '1', 'filters': '8',
     'size': '1', 'stride': '1', 'pad': '1', 'activation': 'leaky'},
    {'type': 'upsample', 'stride': '2'},
    {'type': 'route', 'layers': '-1, -9'},
    {'type': 'convolutional', 'filters': '18', 'size': '1', 'stride': '1',
     'pad': '1', 'activation': 'linear'},
    {'type': 'yolo', 'mask': '3,4,5', 'anchors': ANCHORS, 'classes': '1'},
]


def init_params(blocks, key):
    """Deterministic synthetic parameters (shapes follow create_modules)."""
    params = {}
    prev_filters = int(blocks[0].get('channels', 3))
    output_filters = []
    filters = prev_filters
    for i, block in enumerate(blocks[1:]):
        if block['type'] == 'convolutional':
            filters = int(block['filters'])
            ksize = int(block['size'])
            bn = int(block.get('batch_normalize', 0))
            k = jax.random.fold_in(key, i)
            kw_, kb_, kg_, km_, kv_ = jax.random.split(k, 5)
            p = {'weight': 0.1 * jax.random.normal(
                kw_, (filters, prev_filters, ksize, ksize), jnp.float32)}
            if bn:
                p['gamma'] = 1.0 + 0.1 * jax.random.normal(kg_, (filters,), jnp.float32)
                p['beta'] = 0.1 * jax.random.normal(kb_, (filters,), jnp.float32)
                p['running_mean'] = 0.1 * jax.random.normal(km_, (filters,), jnp.float32)
                p['running_var'] = jax.random.uniform(kv_, (filters,), jnp.float32, 0.5, 1.5)
            else:
                p['bias'] = 0.1 * jax.random.normal(kb_, (filters,), jnp.float32)
            params[i] = p
        elif block['type'] == 'route':
            layers = [int(l) for l in block['layers'].split(',')]
            if layers[0] > 0:
                layers[0] -= i
            if len(layers) == 1:
                filters = output_filters[i + layers[0]]
            else:
                if layers[1] > 0:
                    layers[1] -= i
                filters = (output_filters[i + layers[0]] +
                           output_filters[i + layers[1]])
        prev_filters = filters
        output_filters.append(filters)
    return params


def darknet_forward(blocks, params, x_nchw):
    """Mirror of Darknet.forward (eval-mode BN folded into scale/shift)."""
    # TODO(synk): PyTorch BatchNorm2d defaults to training-mode batch stats;
    # here BN is folded with running stats (inference semantics, as used with
    # load_weights + eval()).
    x = jnp.transpose(x_nchw, (0, 2, 3, 1))     # NCHW -> NHWC once, at boundary
    net_info = blocks[0]
    modules = blocks[1:]
    outputs = {}
    detections = None
    for i, module in enumerate(modules):
        mtype = module['type']
        if mtype == 'convolutional':
            p = params[i]
            stride = int(module['stride'])
            ksize = int(module['size'])
            pad = (ksize - 1) // 2 if int(module['pad']) else 0
            leaky = module['activation'] == 'leaky'
            if 'gamma' in p:
                scale = p['gamma'] / jnp.sqrt(p['running_var'] + 1e-5)
                shift = p['beta'] - p['running_mean'] * scale
            else:
                scale = jnp.ones((p['weight'].shape[0],), jnp.float32)
                shift = p['bias']
            x = conv2d_nhwc(x, p['weight'], scale, shift, stride, pad, leaky)
        elif mtype == 'upsample':
            x = upsample_nearest_nhwc(x, int(module['stride']))
        elif mtype == 'route':
            layers = [int(l) for l in module['layers'].split(',')]
            if layers[0] > 0:
                layers[0] -= i
            if len(layers) == 1:
                x = outputs[i + layers[0]]
            else:
                if layers[1] > 0:
                    layers[1] -= i
                x = jnp.concatenate(
                    [outputs[i + layers[0]], outputs[i + layers[1]]], axis=-1)
        elif mtype == 'shortcut':
            frm = int(module['from'])
            x = outputs[i - 1] + outputs[i + frm]
        elif mtype == 'yolo':
            mask = [int(m) for m in module['mask'].split(',')]
            anch = [int(a) for a in module['anchors'].split(',')]
            anch = [(anch[j], anch[j + 1]) for j in range(0, len(anch), 2)]
            anch = [anch[m] for m in mask]
            inp_dim = int(net_info['height'])
            num_classes = int(module['classes'])
            x = predict_transform_nhwc(x, inp_dim, anch, num_classes)
            detections = x if detections is None else jnp.concatenate(
                [detections, x], axis=1)
        outputs[i] = x
    return detections


if __name__ == "__main__":
    key = jax.random.PRNGKey(0)
    pkey, xkey = jax.random.split(key)
    params = init_params(BLOCKS, pkey)

    # NCHW input, matching nn.Conv2d convention: (batch=2, channels=3, 16, 16)
    x = jax.random.normal(xkey, (2, 3, 16, 16), jnp.float32)

    fwd = jax.jit(lambda inp: darknet_forward(BLOCKS, params, inp))
    det = jax.block_until_ready(fwd(x))

    # two YOLO heads: 8*8*3 + 16*16*3 = 960 boxes, 5 + 1 class attrs each
    assert det.shape == (2, 960, 6), det.shape
    assert bool(jnp.all(jnp.isfinite(det)))
    print("KERNEL_OK")
</pallas_src>

<mosaic_0001>
module attributes {stable_mosaic.version = 11 : i64} {
  func.func @_conv_bn_act_kernel(%arg0: i32, %arg1: memref<1x18x18x8xbf16, #tpu.memory_space<vmem>>, %arg2: memref<9x8x8xbf16, #tpu.memory_space<vmem>>, %arg3: memref<1x8xf32, #tpu.memory_space<vmem>>, %arg4: memref<256x8xf32, #tpu.memory_space<vmem>>) attributes {dimension_semantics = [#tpu.dimension_semantics<parallel>], iteration_bounds = array<i64: 2>, scalar_prefetch = 0 : i64, scratch_operands = 0 : i64, tpu.core_type = #tpu.core_type<tc>, window_params = [{transform_indices = @transform_0, window_bounds = array<i64: 1, 18, 18, 8>}, {pipeline_mode = #tpu.pipeline_mode<synchronous>, transform_indices = @transform_1, window_bounds = array<i64: 9, 8, 8>}, {pipeline_mode = #tpu.pipeline_mode<synchronous>, transform_indices = @transform_2, window_bounds = array<i64: 1, 8>}, {transform_indices = @transform_3, window_bounds = array<i64: 256, 8>}]} {
    %c0 = arith.constant 0 : index
    %c0_0 = arith.constant 0 : index
    %0 = vector.load %arg3[%c0, %c0_0] : memref<1x8xf32, #tpu.memory_space<vmem>>, vector<1x8xf32>
    %cst = arith.constant 0.000000e+00 : f32
    %1 = vector.broadcast %cst : f32 to vector<128x8xf32>
    %c0_1 = arith.constant 0 : index
    %c0_2 = arith.constant 0 : index
    %c0_3 = arith.constant 0 : index
    %c0_4 = arith.constant 0 : index
    %2 = vector.load %arg1[%c0_1, %c0_2, %c0_3, %c0_4] : memref<1x18x18x8xbf16, #tpu.memory_space<vmem>>, vector<1x8x16x8xbf16>
    %3 = vector.shape_cast %2 : vector<1x8x16x8xbf16> to vector<128x8xbf16>
    %c0_5 = arith.constant 0 : index
    %c0_6 = arith.constant 0 : index
    %c0_7 = arith.constant 0 : index
    %4 = vector.load %arg2[%c0_5, %c0_6, %c0_7] : memref<9x8x8xbf16, #tpu.memory_space<vmem>>, vector<1x8x8xbf16>
    %5 = vector.shape_cast %4 : vector<1x8x8xbf16> to vector<8x8xbf16>
    %cst_8 = arith.constant dense<0.000000e+00> : vector<128x8xf32>
    %6 = tpu.matmul %3, %5, %cst_8 {dimension_numbers = #tpu.dot_dimension_numbers<[1], [0], [0], [1], [0, 0, 1, 1], [], []>} : vector<128x8xbf16>, vector<8x8xbf16>, vector<128x8xf32> -> vector<128x8xf32>
    %7 = arith.addf %1, %6 : vector<128x8xf32>
    %c0_9 = arith.constant 0 : index
    %c0_10 = arith.constant 0 : index
    %c1 = arith.constant 1 : index
    %c0_11 = arith.constant 0 : index
    %8 = vector.load %arg1[%c0_9, %c0_10, %c1, %c0_11] : memref<1x18x18x8xbf16, #tpu.memory_space<vmem>>, vector<1x8x16x8xbf16>
    %9 = vector.shape_cast %8 : vector<1x8x16x8xbf16> to vector<128x8xbf16>
    %c1_12 = arith.constant 1 : index
    %c0_13 = arith.constant 0 : index
    %c0_14 = arith.constant 0 : index
    %10 = vector.load %arg2[%c1_12, %c0_13, %c0_14] : memref<9x8x8xbf16, #tpu.memory_space<vmem>>, vector<1x8x8xbf16>
    %11 = vector.shape_cast %10 : vector<1x8x8xbf16> to vector<8x8xbf16>
    %cst_15 = arith.constant dense<0.000000e+00> : vector<128x8xf32>
    %12 = tpu.matmul %9, %11, %cst_15 {dimension_numbers = #tpu.dot_dimension_numbers<[1], [0], [0], [1], [0, 0, 1, 1], [], []>} : vector<128x8xbf16>, vector<8x8xbf16>, vector<128x8xf32> -> vector<128x8xf32>
    %13 = arith.addf %7, %12 : vector<128x8xf32>
    %c0_16 = arith.constant 0 : index
    %c0_17 = arith.constant 0 : index
    %c2 = arith.constant 2 : index
    %c0_18 = arith.constant 0 : index
    %14 = vector.load %arg1[%c0_16, %c0_17, %c2, %c0_18] : memref<1x18x18x8xbf16, #tpu.memory_space<vmem>>, vector<1x8x16x8xbf16>
    %15 = vector.shape_cast %14 : vector<1x8x16x8xbf16> to vector<128x8xbf16>
    %c2_19 = arith.constant 2 : index
    %c0_20 = arith.constant 0 : index
    %c0_21 = arith.constant 0 : index
    %16 = vector.load %arg2[%c2_19, %c0_20, %c0_21] : memref<9x8x8xbf16, #tpu.memory_space<vmem>>, vector<1x8x8xbf16>
    %17 = vector.shape_cast %16 : vector<1x8x8xbf16> to vector<8x8xbf16>
    %cst_22 = arith.constant dense<0.000000e+00> : vector<128x8xf32>
    %18 = tpu.matmul %15, %17, %cst_22 {dimension_numbers = #tpu.dot_dimension_numbers<[1], [0], [0], [1], [0, 0, 1, 1], [], []>} : vector<128x8xbf16>, vector<8x8xbf16>, vector<128x8xf32> -> vector<128x8xf32>
    %19 = arith.addf %13, %18 : vector<128x8xf32>
    %c0_23 = arith.constant 0 : index
    %c1_24 = arith.constant 1 : index
    %c0_25 = arith.constant 0 : index
    %c0_26 = arith.constant 0 : index
    %20 = vector.load %arg1[%c0_23, %c1_24, %c0_25, %c0_26] : memref<1x18x18x8xbf16, #tpu.memory_space<vmem>>, vector<1x8x16x8xbf16>
    %21 = vector.shape_cast %20 : vector<1x8x16x8xbf16> to vector<128x8xbf16>
    %c3 = arith.constant 3 : index
    %c0_27 = arith.constant 0 : index
    %c0_28 = arith.constant 0 : index
    %22 = vector.load %arg2[%c3, %c0_27, %c0_28] : memref<9x8x8xbf16, #tpu.memory_space<vmem>>, vector<1x8x8xbf16>
    %23 = vector.shape_cast %22 : vector<1x8x8xbf16> to vector<8x8xbf16>
    %cst_29 = arith.constant dense<0.000000e+00> : vector<128x8xf32>
    %24 = tpu.matmul %21, %23, %cst_29 {dimension_numbers = #tpu.dot_dimension_numbers<[1], [0], [0], [1], [0, 0, 1, 1], [], []>} : vector<128x8xbf16>, vector<8x8xbf16>, vector<128x8xf32> -> vector<128x8xf32>
    %25 = arith.addf %19, %24 : vector<128x8xf32>
    %c0_30 = arith.constant 0 : index
    %c1_31 = arith.constant 1 : index
    %c1_32 = arith.constant 1 : index
    %c0_33 = arith.constant 0 : index
    %26 = vector.load %arg1[%c0_30, %c1_31, %c1_32, %c0_33] : memref<1x18x18x8xbf16, #tpu.memory_space<vmem>>, vector<1x8x16x8xbf16>
    %27 = vector.shape_cast %26 : vector<1x8x16x8xbf16> to vector<128x8xbf16>
    %c4 = arith.constant 4 : index
    %c0_34 = arith.constant 0 : index
    %c0_35 = arith.constant 0 : index
    %28 = vector.load %arg2[%c4, %c0_34, %c0_35] : memref<9x8x8xbf16, #tpu.memory_space<vmem>>, vector<1x8x8xbf16>
    %29 = vector.shape_cast %28 : vector<1x8x8xbf16> to vector<8x8xbf16>
    %cst_36 = arith.constant dense<0.000000e+00> : vector<128x8xf32>
    %30 = tpu.matmul %27, %29, %cst_36 {dimension_numbers = #tpu.dot_dimension_numbers<[1], [0], [0], [1], [0, 0, 1, 1], [], []>} : vector<128x8xbf16>, vector<8x8xbf16>, vector<128x8xf32> -> vector<128x8xf32>
    %31 = arith.addf %25, %30 : vector<128x8xf32>
    %c0_37 = arith.constant 0 : index
    %c1_38 = arith.constant 1 : index
    %c2_39 = arith.constant 2 : index
    %c0_40 = arith.constant 0 : index
    %32 = vector.load %arg1[%c0_37, %c1_38, %c2_39, %c0_40] : memref<1x18x18x8xbf16, #tpu.memory_space<vmem>>, vector<1x8x16x8xbf16>
    %33 = vector.shape_cast %32 : vector<1x8x16x8xbf16> to vector<128x8xbf16>
    %c5 = arith.constant 5 : index
    %c0_41 = arith.constant 0 : index
    %c0_42 = arith.constant 0 : index
    %34 = vector.load %arg2[%c5, %c0_41, %c0_42] : memref<9x8x8xbf16, #tpu.memory_space<vmem>>, vector<1x8x8xbf16>
    %35 = vector.shape_cast %34 : vector<1x8x8xbf16> to vector<8x8xbf16>
    %cst_43 = arith.constant dense<0.000000e+00> : vector<128x8xf32>
    %36 = tpu.matmul %33, %35, %cst_43 {dimension_numbers = #tpu.dot_dimension_numbers<[1], [0], [0], [1], [0, 0, 1, 1], [], []>} : vector<128x8xbf16>, vector<8x8xbf16>, vector<128x8xf32> -> vector<128x8xf32>
    %37 = arith.addf %31, %36 : vector<128x8xf32>
    %c0_44 = arith.constant 0 : index
    %c2_45 = arith.constant 2 : index
    %c0_46 = arith.constant 0 : index
    %c0_47 = arith.constant 0 : index
    %38 = vector.load %arg1[%c0_44, %c2_45, %c0_46, %c0_47] : memref<1x18x18x8xbf16, #tpu.memory_space<vmem>>, vector<1x8x16x8xbf16>
    %39 = vector.shape_cast %38 : vector<1x8x16x8xbf16> to vector<128x8xbf16>
    %c6 = arith.constant 6 : index
    %c0_48 = arith.constant 0 : index
    %c0_49 = arith.constant 0 : index
    %40 = vector.load %arg2[%c6, %c0_48, %c0_49] : memref<9x8x8xbf16, #tpu.memory_space<vmem>>, vector<1x8x8xbf16>
    %41 = vector.shape_cast %40 : vector<1x8x8xbf16> to vector<8x8xbf16>
    %cst_50 = arith.constant dense<0.000000e+00> : vector<128x8xf32>
    %42 = tpu.matmul %39, %41, %cst_50 {dimension_numbers = #tpu.dot_dimension_numbers<[1], [0], [0], [1], [0, 0, 1, 1], [], []>} : vector<128x8xbf16>, vector<8x8xbf16>, vector<128x8xf32> -> vector<128x8xf32>
    %43 = arith.addf %37, %42 : vector<128x8xf32>
    %c0_51 = arith.constant 0 : index
    %c2_52 = arith.constant 2 : index
    %c1_53 = arith.constant 1 : index
    %c0_54 = arith.constant 0 : index
    %44 = vector.load %arg1[%c0_51, %c2_52, %c1_53, %c0_54] : memref<1x18x18x8xbf16, #tpu.memory_space<vmem>>, vector<1x8x16x8xbf16>
    %45 = vector.shape_cast %44 : vector<1x8x16x8xbf16> to vector<128x8xbf16>
    %c7 = arith.constant 7 : index
    %c0_55 = arith.constant 0 : index
    %c0_56 = arith.constant 0 : index
    %46 = vector.load %arg2[%c7, %c0_55, %c0_56] : memref<9x8x8xbf16, #tpu.memory_space<vmem>>, vector<1x8x8xbf16>
    %47 = vector.shape_cast %46 : vector<1x8x8xbf16> to vector<8x8xbf16>
    %cst_57 = arith.constant dense<0.000000e+00> : vector<128x8xf32>
    %48 = tpu.matmul %45, %47, %cst_57 {dimension_numbers = #tpu.dot_dimension_numbers<[1], [0], [0], [1], [0, 0, 1, 1], [], []>} : vector<128x8xbf16>, vector<8x8xbf16>, vector<128x8xf32> -> vector<128x8xf32>
    %49 = arith.addf %43, %48 : vector<128x8xf32>
    %c0_58 = arith.constant 0 : index
    %c2_59 = arith.constant 2 : index
    %c2_60 = arith.constant 2 : index
    %c0_61 = arith.constant 0 : index
    %50 = vector.load %arg1[%c0_58, %c2_59, %c2_60, %c0_61] : memref<1x18x18x8xbf16, #tpu.memory_space<vmem>>, vector<1x8x16x8xbf16>
    %51 = vector.shape_cast %50 : vector<1x8x16x8xbf16> to vector<128x8xbf16>
    %c8 = arith.constant 8 : index
    %c0_62 = arith.constant 0 : index
    %c0_63 = arith.constant 0 : index
    %52 = vector.load %arg2[%c8, %c0_62, %c0_63] : memref<9x8x8xbf16, #tpu.memory_space<vmem>>, vector<1x8x8xbf16>
    %53 = vector.shape_cast %52 : vector<1x8x8xbf16> to vector<8x8xbf16>
    %cst_64 = arith.constant dense<0.000000e+00> : vector<128x8xf32>
    %54 = tpu.matmul %51, %53, %cst_64 {dimension_numbers = #tpu.dot_dimension_numbers<[1], [0], [0], [1], [0, 0, 1, 1], [], []>} : vector<128x8xbf16>, vector<8x8xbf16>, vector<128x8xf32> -> vector<128x8xf32>
    %55 = arith.addf %49, %54 : vector<128x8xf32>
    %56 = vector.broadcast %0 : vector<1x8xf32> to vector<128x8xf32>
    %57 = arith.addf %55, %56 : vector<128x8xf32>
    %cst_65 = arith.constant 0.000000e+00 : f32
    %58 = vector.broadcast %cst_65 : f32 to vector<128x8xf32>
    %59 = arith.cmpf ogt, %57, %58 : vector<128x8xf32>
    %cst_66 = arith.constant 1.000000e-01 : f32
    %60 = vector.broadcast %cst_66 : f32 to vector<128x8xf32>
    %61 = arith.mulf %60, %57 : vector<128x8xf32>
    %62 = arith.select %59, %57, %61 : vector<128x8xi1>, vector<128x8xf32>
    %c0_67 = arith.constant 0 : index
    %c0_68 = arith.constant 0 : index
    %63 = vector.load %arg4[%c0_67, %c0_68] : memref<256x8xf32, #tpu.memory_space<vmem>>, vector<128x8xf32>
    tpu.vector_store %arg4[%c0_67, %c0_68], %62 {strides = array<i32>} : memref<256x8xf32, #tpu.memory_space<vmem>>, vector<128x8xf32>,
    %cst_69 = arith.constant 0.000000e+00 : f32
    %64 = vector.broadcast %cst_69 : f32 to vector<128x8xf32>
    %c0_70 = arith.constant 0 : index
    %c8_71 = arith.constant 8 : index
    %c0_72 = arith.constant 0 : index
    %c0_73 = arith.constant 0 : index
    %65 = vector.load %arg1[%c0_70, %c8_71, %c0_72, %c0_73] : memref<1x18x18x8xbf16, #tpu.memory_space<vmem>>, vector<1x8x16x8xbf16>
    %66 = vector.shape_cast %65 : vector<1x8x16x8xbf16> to vector<128x8xbf16>
    %c0_74 = arith.constant 0 : index
    %c0_75 = arith.constant 0 : index
    %c0_76 = arith.constant 0 : index
    %67 = vector.load %arg2[%c0_74, %c0_75, %c0_76] : memref<9x8x8xbf16, #tpu.memory_space<vmem>>, vector<1x8x8xbf16>
    %68 = vector.shape_cast %67 : vector<1x8x8xbf16> to vector<8x8xbf16>
    %cst_77 = arith.constant dense<0.000000e+00> : vector<128x8xf32>
    %69 = tpu.matmul %66, %68, %cst_77 {dimension_numbers = #tpu.dot_dimension_numbers<[1], [0], [0], [1], [0, 0, 1, 1], [], []>} : vector<128x8xbf16>, vector<8x8xbf16>, vector<128x8xf32> -> vector<128x8xf32>
    %70 = arith.addf %64, %69 : vector<128x8xf32>
    %c0_78 = arith.constant 0 : index
    %c8_79 = arith.constant 8 : index
    %c1_80 = arith.constant 1 : index
    %c0_81 = arith.constant 0 : index
    %71 = vector.load %arg1[%c0_78, %c8_79, %c1_80, %c0_81] : memref<1x18x18x8xbf16, #tpu.memory_space<vmem>>, vector<1x8x16x8xbf16>
    %72 = vector.shape_cast %71 : vector<1x8x16x8xbf16> to vector<128x8xbf16>
    %c1_82 = arith.constant 1 : index
    %c0_83 = arith.constant 0 : index
    %c0_84 = arith.constant 0 : index
    %73 = vector.load %arg2[%c1_82, %c0_83, %c0_84] : memref<9x8x8xbf16, #tpu.memory_space<vmem>>, vector<1x8x8xbf16>
    %74 = vector.shape_cast %73 : vector<1x8x8xbf16> to vector<8x8xbf16>
    %cst_85 = arith.constant dense<0.000000e+00> : vector<128x8xf32>
    %75 = tpu.matmul %72, %74, %cst_85 {dimension_numbers = #tpu.dot_dimension_numbers<[1], [0], [0], [1], [0, 0, 1, 1], [], []>} : vector<128x8xbf16>, vector<8x8xbf16>, vector<128x8xf32> -> vector<128x8xf32>
    %76 = arith.addf %70, %75 : vector<128x8xf32>
    %c0_86 = arith.constant 0 : index
    %c8_87 = arith.constant 8 : index
    %c2_88 = arith.constant 2 : index
    %c0_89 = arith.constant 0 : index
    %77 = vector.load %arg1[%c0_86, %c8_87, %c2_88, %c0_89] : memref<1x18x18x8xbf16, #tpu.memory_space<vmem>>, vector<1x8x16x8xbf16>
    %78 = vector.shape_cast %77 : vector<1x8x16x8xbf16> to vector<128x8xbf16>
    %c2_90 = arith.constant 2 : index
    %c0_91 = arith.constant 0 : index
    %c0_92 = arith.constant 0 : index
    %79 = vector.load %arg2[%c2_90, %c0_91, %c0_92] : memref<9x8x8xbf16, #tpu.memory_space<vmem>>, vector<1x8x8xbf16>
    %80 = vector.shape_cast %79 : vector<1x8x8xbf16> to vector<8x8xbf16>
    %cst_93 = arith.constant dense<0.000000e+00> : vector<128x8xf32>
    %81 = tpu.matmul %78, %80, %cst_93 {dimension_numbers = #tpu.dot_dimension_numbers<[1], [0], [0], [1], [0, 0, 1, 1], [], []>} : vector<128x8xbf16>, vector<8x8xbf16>, vector<128x8xf32> -> vector<128x8xf32>
    %82 = arith.addf %76, %81 : vector<128x8xf32>
    %c0_94 = arith.constant 0 : index
    %c9 = arith.constant 9 : index
    %c0_95 = arith.constant 0 : index
    %c0_96 = arith.constant 0 : index
    %83 = vector.load %arg1[%c0_94, %c9, %c0_95, %c0_96] : memref<1x18x18x8xbf16, #tpu.memory_space<vmem>>, vector<1x8x16x8xbf16>
    %84 = vector.shape_cast %83 : vector<1x8x16x8xbf16> to vector<128x8xbf16>
    %c3_97 = arith.constant 3 : index
    %c0_98 = arith.constant 0 : index
    %c0_99 = arith.constant 0 : index
    %85 = vector.load %arg2[%c3_97, %c0_98, %c0_99] : memref<9x8x8xbf16, #tpu.memory_space<vmem>>, vector<1x8x8xbf16>
    %86 = vector.shape_cast %85 : vector<1x8x8xbf16> to vector<8x8xbf16>
    %cst_100 = arith.constant dense<0.000000e+00> : vector<128x8xf32>
    %87 = tpu.matmul %84, %86, %cst_100 {dimension_numbers = #tpu.dot_dimension_numbers<[1], [0], [0], [1], [0, 0, 1, 1], [], []>} : vector<128x8xbf16>, vector<8x8xbf16>, vector<128x8xf32> -> vector<128x8xf32>
    %88 = arith.addf %82, %87 : vector<128x8xf32>
    %c0_101 = arith.constant 0 : index
    %c9_102 = arith.constant 9 : index
    %c1_103 = arith.constant 1 : index
    %c0_104 = arith.constant 0 : index
    %89 = vector.load %arg1[%c0_101, %c9_102, %c1_103, %c0_104] : memref<1x18x18x8xbf16, #tpu.memory_space<vmem>>, vector<1x8x16x8xbf16>
    %90 = vector.shape_cast %89 : vector<1x8x16x8xbf16> to vector<128x8xbf16>
    %c4_105 = arith.constant 4 : index
    %c0_106 = arith.constant 0 : index
    %c0_107 = arith.constant 0 : index
    %91 = vector.load %arg2[%c4_105, %c0_106, %c0_107] : memref<9x8x8xbf16, #tpu.memory_space<vmem>>, vector<1x8x8xbf16>
    %92 = vector.shape_cast %91 : vector<1x8x8xbf16> to vector<8x8xbf16>
    %cst_108 = arith.constant dense<0.000000e+00> : vector<128x8xf32>
    %93 = tpu.matmul %90, %92, %cst_108 {dimension_numbers = #tpu.dot_dimension_numbers<[1], [0], [0], [1], [0, 0, 1, 1], [], []>} : vector<128x8xbf16>, vector<8x8xbf16>, vector<128x8xf32> -> vector<128x8xf32>
    %94 = arith.addf %88, %93 : vector<128x8xf32>
    %c0_109 = arith.constant 0 : index
    %c9_110 = arith.constant 9 : index
    %c2_111 = arith.constant 2 : index
    %c0_112 = arith.constant 0 : index
    %95 = vector.load %arg1[%c0_109, %c9_110, %c2_111, %c0_112] : memref<1x18x18x8xbf16, #tpu.memory_space<vmem>>, vector<1x8x16x8xbf16>
    %96 = vector.shape_cast %95 : vector<1x8x16x8xbf16> to vector<128x8xbf16>
    %c5_113 = arith.constant 5 : index
    %c0_114 = arith.constant 0 : index
    %c0_115 = arith.constant 0 : index
    %97 = vector.load %arg2[%c5_113, %c0_114, %c0_115] : memref<9x8x8xbf16, #tpu.memory_space<vmem>>, vector<1x8x8xbf16>
    %98 = vector.shape_cast %97 : vector<1x8x8xbf16> to vector<8x8xbf16>
    %cst_116 = arith.constant dense<0.000000e+00> : vector<128x8xf32>
    %99 = tpu.matmul %96, %98, %cst_116 {dimension_numbers = #tpu.dot_dimension_numbers<[1], [0], [0], [1], [0, 0, 1, 1], [], []>} : vector<128x8xbf16>, vector<8x8xbf16>, vector<128x8xf32> -> vector<128x8xf32>
    %100 = arith.addf %94, %99 : vector<128x8xf32>
    %c0_117 = arith.constant 0 : index
    %c10 = arith.constant 10 : index
    %c0_118 = arith.constant 0 : index
    %c0_119 = arith.constant 0 : index
    %101 = vector.load %arg1[%c0_117, %c10, %c0_118, %c0_119] : memref<1x18x18x8xbf16, #tpu.memory_space<vmem>>, vector<1x8x16x8xbf16>
    %102 = vector.shape_cast %101 : vector<1x8x16x8xbf16> to vector<128x8xbf16>
    %c6_120 = arith.constant 6 : index
    %c0_121 = arith.constant 0 : index
    %c0_122 = arith.constant 0 : index
    %103 = vector.load %arg2[%c6_120, %c0_121, %c0_122] : memref<9x8x8xbf16, #tpu.memory_space<vmem>>, vector<1x8x8xbf16>
    %104 = vector.shape_cast %103 : vector<1x8x8xbf16> to vector<8x8xbf16>
    %cst_123 = arith.constant dense<0.000000e+00> : vector<128x8xf32>
    %105 = tpu.matmul %102, %104, %cst_123 {dimension_numbers = #tpu.dot_dimension_numbers<[1], [0], [0], [1], [0, 0, 1, 1], [], []>} : vector<128x8xbf16>, vector<8x8xbf16>, vector<128x8xf32> -> vector<128x8xf32>
    %106 = arith.addf %100, %105 : vector<128x8xf32>
    %c0_124 = arith.constant 0 : index
    %c10_125 = arith.constant 10 : index
    %c1_126 = arith.constant 1 : index
    %c0_127 = arith.constant 0 : index
    %107 = vector.load %arg1[%c0_124, %c10_125, %c1_126, %c0_127] : memref<1x18x18x8xbf16, #tpu.memory_space<vmem>>, vector<1x8x16x8xbf16>
    %108 = vector.shape_cast %107 : vector<1x8x16x8xbf16> to vector<128x8xbf16>
    %c7_128 = arith.constant 7 : index
    %c0_129 = arith.constant 0 : index
    %c0_130 = arith.constant 0 : index
    %109 = vector.load %arg2[%c7_128, %c0_129, %c0_130] : memref<9x8x8xbf16, #tpu.memory_space<vmem>>, vector<1x8x8xbf16>
    %110 = vector.shape_cast %109 : vector<1x8x8xbf16> to vector<8x8xbf16>
    %cst_131 = arith.constant dense<0.000000e+00> : vector<128x8xf32>
    %111 = tpu.matmul %108, %110, %cst_131 {dimension_numbers = #tpu.dot_dimension_numbers<[1], [0], [0], [1], [0, 0, 1, 1], [], []>} : vector<128x8xbf16>, vector<8x8xbf16>, vector<128x8xf32> -> vector<128x8xf32>
    %112 = arith.addf %106, %111 : vector<128x8xf32>
    %c0_132 = arith.constant 0 : index
    %c10_133 = arith.constant 10 : index
    %c2_134 = arith.constant 2 : index
    %c0_135 = arith.constant 0 : index
    %113 = vector.load %arg1[%c0_132, %c10_133, %c2_134, %c0_135] : memref<1x18x18x8xbf16, #tpu.memory_space<vmem>>, vector<1x8x16x8xbf16>
    %114 = vector.shape_cast %113 : vector<1x8x16x8xbf16> to vector<128x8xbf16>
    %c8_136 = arith.constant 8 : index
    %c0_137 = arith.constant 0 : index
    %c0_138 = arith.constant 0 : index
    %115 = vector.load %arg2[%c8_136, %c0_137, %c0_138] : memref<9x8x8xbf16, #tpu.memory_space<vmem>>, vector<1x8x8xbf16>
    %116 = vector.shape_cast %115 : vector<1x8x8xbf16> to vector<8x8xbf16>
    %cst_139 = arith.constant dense<0.000000e+00> : vector<128x8xf32>
    %117 = tpu.matmul %114, %116, %cst_139 {dimension_numbers = #tpu.dot_dimension_numbers<[1], [0], [0], [1], [0, 0, 1, 1], [], []>} : vector<128x8xbf16>, vector<8x8xbf16>, vector<128x8xf32> -> vector<128x8xf32>
    %118 = arith.addf %112, %117 : vector<128x8xf32>
    %119 = vector.broadcast %0 : vector<1x8xf32> to vector<128x8xf32>
    %120 = arith.addf %118, %119 : vector<128x8xf32>
    %cst_140 = arith.constant 0.000000e+00 : f32
    %121 = vector.broadcast %cst_140 : f32 to vector<128x8xf32>
    %122 = arith.cmpf ogt, %120, %121 : vector<128x8xf32>
    %cst_141 = arith.constant 1.000000e-01 : f32
    %123 = vector.broadcast %cst_141 : f32 to vector<128x8xf32>
    %124 = arith.mulf %123, %120 : vector<128x8xf32>
    %125 = arith.select %122, %120, %124 : vector<128x8xi1>, vector<128x8xf32>
    %c128 = arith.constant 128 : index
    %c0_142 = arith.constant 0 : index
    %126 = vector.load %arg4[%c128, %c0_142] : memref<256x8xf32, #tpu.memory_space<vmem>>, vector<128x8xf32>
    tpu.vector_store %arg4[%c128, %c0_142], %125 {strides = array<i32>} : memref<256x8xf32, #tpu.memory_space<vmem>>, vector<128x8xf32>,
    return
  }
  func.func @transform_0(%arg0: i32) -> (i32, i32, i32, i32) {
    %c0_i32 = arith.constant 0 : i32
    %c0_i32_0 = arith.constant 0 : i32
    %c0_i32_1 = arith.constant 0 : i32
    %c0_i32_2 = arith.constant 0 : i32
    return %arg0, %c0_i32, %c0_i32_0, %c0_i32_1 : i32, i32, i32, i32
  }
  func.func @transform_1(%arg0: i32) -> (i32, i32, i32) {
    %c0_i32 = arith.constant 0 : i32
    %c0_i32_0 = arith.constant 0 : i32
    %c0_i32_1 = arith.constant 0 : i32
    %c0_i32_2 = arith.constant 0 : i32
    return %c0_i32, %c0_i32_0, %c0_i32_1 : i32, i32, i32
  }
  func.func @transform_2(%arg0: i32) -> (i32, i32) {
    %c0_i32 = arith.constant 0 : i32
    %c0_i32_0 = arith.constant 0 : i32
    %c0_i32_1 = arith.constant 0 : i32
    return %c0_i32, %c0_i32_0 : i32, i32
  }
  func.func @transform_3(%arg0: i32) -> (i32, i32) {
    %c0_i32 = arith.constant 0 : i32
    %c0_i32_0 = arith.constant 0 : i32
    return %arg0, %c0_i32 : i32, i32
  }
}

module attributes {stable_mosaic.version = 11 : i64} {
  func.func @_conv_bn_act_kernel(%arg0: i32, %arg1: memref<1x10x10x8xbf16, #tpu.memory_space<vmem>>, %arg2: memref<1x10x9x8xbf16, #tpu.memory_space<vmem>>, %arg3: memref<1x9x10x8xbf16, #tpu.memory_space<vmem>>, %arg4: memref<1x9x9x8xbf16, #tpu.memory_space<vmem>>, %arg5: memref<9x8x16xbf16, #tpu.memory_space<vmem>>, %arg6: memref<1x16xf32, #tpu.memory_space<vmem>>, %arg7: memref<64x16xf32, #tpu.memory_space<vmem>>) attributes {dimension_semantics = [#tpu.dimension_semantics<parallel>], iteration_bounds = array<i64: 2>, scalar_prefetch = 0 : i64, scratch_operands = 0 : i64, tpu.core_type = #tpu.core_type<tc>, window_params = [{transform_indices = @transform_0, window_bounds = array<i64: 1, 10, 10, 8>}, {transform_indices = @transform_1, window_bounds = array<i64: 1, 10, 9, 8>}, {transform_indices = @transform_2, window_bounds = array<i64: 1, 9, 10, 8>}, {transform_indices = @transform_3, window_bounds = array<i64: 1, 9, 9, 8>}, {pipeline_mode = #tpu.pipeline_mode<synchronous>, transform_indices = @transform_4, window_bounds = array<i64: 9, 8, 16>}, {pipeline_mode = #tpu.pipeline_mode<synchronous>, transform_indices = @transform_5, window_bounds = array<i64: 1, 16>}, {transform_indices = @transform_6, window_bounds = array<i64: 64, 16>}]} {
    %c0 = arith.constant 0 : index
    %c0_0 = arith.constant 0 : index
    %0 = vector.load %arg6[%c0, %c0_0] : memref<1x16xf32, #tpu.memory_space<vmem>>, vector<1x16xf32>
    %cst = arith.constant 0.000000e+00 : f32
    %1 = vector.broadcast %cst : f32 to vector<64x16xf32>
    %c0_1 = arith.constant 0 : index
    %c0_2 = arith.constant 0 : index
    %c0_3 = arith.constant 0 : index
    %c0_4 = arith.constant 0 : index
    %2 = vector.load %arg1[%c0_1, %c0_2, %c0_3, %c0_4] : memref<1x10x10x8xbf16, #tpu.memory_space<vmem>>, vector<1x8x8x8xbf16>
    %3 = vector.shape_cast %2 : vector<1x8x8x8xbf16> to vector<64x8xbf16>
    %c0_5 = arith.constant 0 : index
    %c0_6 = arith.constant 0 : index
    %c0_7 = arith.constant 0 : index
    %4 = vector.load %arg5[%c0_5, %c0_6, %c0_7] : memref<9x8x16xbf16, #tpu.memory_space<vmem>>, vector<1x8x16xbf16>
    %5 = vector.shape_cast %4 : vector<1x8x16xbf16> to vector<8x16xbf16>
    %cst_8 = arith.constant dense<0.000000e+00> : vector<64x16xf32>
    %6 = tpu.matmul %3, %5, %cst_8 {dimension_numbers = #tpu.dot_dimension_numbers<[1], [0], [0], [1], [0, 0, 1, 1], [], []>} : vector<64x8xbf16>, vector<8x16xbf16>, vector<64x16xf32> -> vector<64x16xf32>
    %7 = arith.addf %1, %6 : vector<64x16xf32>
    %c0_9 = arith.constant 0 : index
    %c0_10 = arith.constant 0 : index
    %c0_11 = arith.constant 0 : index
    %c0_12 = arith.constant 0 : index
    %8 = vector.load %arg2[%c0_9, %c0_10, %c0_11, %c0_12] : memref<1x10x9x8xbf16, #tpu.memory_space<vmem>>, vector<1x8x8x8xbf16>
    %9 = vector.shape_cast %8 : vector<1x8x8x8xbf16> to vector<64x8xbf16>
    %c1 = arith.constant 1 : index
    %c0_13 = arith.constant 0 : index
    %c0_14 = arith.constant 0 : index
    %10 = vector.load %arg5[%c1, %c0_13, %c0_14] : memref<9x8x16xbf16, #tpu.memory_space<vmem>>, vector<1x8x16xbf16>
    %11 = vector.shape_cast %10 : vector<1x8x16xbf16> to vector<8x16xbf16>
    %cst_15 = arith.constant dense<0.000000e+00> : vector<64x16xf32>
    %12 = tpu.matmul %9, %11, %cst_15 {dimension_numbers = #tpu.dot_dimension_numbers<[1], [0], [0], [1], [0, 0, 1, 1], [], []>} : vector<64x8xbf16>, vector<8x16xbf16>, vector<64x16xf32> -> vector<64x16xf32>
    %13 = arith.addf %7, %12 : vector<64x16xf32>
    %c0_16 = arith.constant 0 : index
    %c0_17 = arith.constant 0 : index
    %c1_18 = arith.constant 1 : index
    %c0_19 = arith.constant 0 : index
    %14 = vector.load %arg1[%c0_16, %c0_17, %c1_18, %c0_19] : memref<1x10x10x8xbf16, #tpu.memory_space<vmem>>, vector<1x8x8x8xbf16>
    %15 = vector.shape_cast %14 : vector<1x8x8x8xbf16> to vector<64x8xbf16>
    %c2 = arith.constant 2 : index
    %c0_20 = arith.constant 0 : index
    %c0_21 = arith.constant 0 : index
    %16 = vector.load %arg5[%c2, %c0_20, %c0_21] : memref<9x8x16xbf16, #tpu.memory_space<vmem>>, vector<1x8x16xbf16>
    %17 = vector.shape_cast %16 : vector<1x8x16xbf16> to vector<8x16xbf16>
    %cst_22 = arith.constant dense<0.000000e+00> : vector<64x16xf32>
    %18 = tpu.matmul %15, %17, %cst_22 {dimension_numbers = #tpu.dot_dimension_numbers<[1], [0], [0], [1], [0, 0, 1, 1], [], []>} : vector<64x8xbf16>, vector<8x16xbf16>, vector<64x16xf32> -> vector<64x16xf32>
    %19 = arith.addf %13, %18 : vector<64x16xf32>
    %c0_23 = arith.constant 0 : index
    %c0_24 = arith.constant 0 : index
    %c0_25 = arith.constant 0 : index
    %c0_26 = arith.constant 0 : index
    %20 = vector.load %arg3[%c0_23, %c0_24, %c0_25, %c0_26] : memref<1x9x10x8xbf16, #tpu.memory_space<vmem>>, vector<1x8x8x8xbf16>
    %21 = vector.shape_cast %20 : vector<1x8x8x8xbf16> to vector<64x8xbf16>
    %c3 = arith.constant 3 : index
    %c0_27 = arith.constant 0 : index
    %c0_28 = arith.constant 0 : index
    %22 = vector.load %arg5[%c3, %c0_27, %c0_28] : memref<9x8x16xbf16, #tpu.memory_space<vmem>>, vector<1x8x16xbf16>
    %23 = vector.shape_cast %22 : vector<1x8x16xbf16> to vector<8x16xbf16>
    %cst_29 = arith.constant dense<0.000000e+00> : vector<64x16xf32>
    %24 = tpu.matmul %21, %23, %cst_29 {dimension_numbers = #tpu.dot_dimension_numbers<[1], [0], [0], [1], [0, 0, 1, 1], [], []>} : vector<64x8xbf16>, vector<8x16xbf16>, vector<64x16xf32> -> vector<64x16xf32>
    %25 = arith.addf %19, %24 : vector<64x16xf32>
    %c0_30 = arith.constant 0 : index
    %c0_31 = arith.constant 0 : index
    %c0_32 = arith.constant 0 : index
    %c0_33 = arith.constant 0 : index
    %26 = vector.load %arg4[%c0_30, %c0_31, %c0_32, %c0_33] : memref<1x9x9x8xbf16, #tpu.memory_space<vmem>>, vector<1x8x8x8xbf16>
    %27 = vector.shape_cast %26 : vector<1x8x8x8xbf16> to vector<64x8xbf16>
    %c4 = arith.constant 4 : index
    %c0_34 = arith.constant 0 : index
    %c0_35 = arith.constant 0 : index
    %28 = vector.load %arg5[%c4, %c0_34, %c0_35] : memref<9x8x16xbf16, #tpu.memory_space<vmem>>, vector<1x8x16xbf16>
    %29 = vector.shape_cast %28 : vector<1x8x16xbf16> to vector<8x16xbf16>
    %cst_36 = arith.constant dense<0.000000e+00> : vector<64x16xf32>
    %30 = tpu.matmul %27, %29, %cst_36 {dimension_numbers = #tpu.dot_dimension_numbers<[1], [0], [0], [1], [0, 0, 1, 1], [], []>} : vector<64x8xbf16>, vector<8x16xbf16>, vector<64x16xf32> -> vector<64x16xf32>
    %31 = arith.addf %25, %30 : vector<64x16xf32>
    %c0_37 = arith.constant 0 : index
    %c0_38 = arith.constant 0 : index
    %c1_39 = arith.constant 1 : index
    %c0_40 = arith.constant 0 : index
    %32 = vector.load %arg3[%c0_37, %c0_38, %c1_39, %c0_40] : memref<1x9x10x8xbf16, #tpu.memory_space<vmem>>, vector<1x8x8x8xbf16>
    %33 = vector.shape_cast %32 : vector<1x8x8x8xbf16> to vector<64x8xbf16>
    %c5 = arith.constant 5 : index
    %c0_41 = arith.constant 0 : index
    %c0_42 = arith.constant 0 : index
    %34 = vector.load %arg5[%c5, %c0_41, %c0_42] : memref<9x8x16xbf16, #tpu.memory_space<vmem>>, vector<1x8x16xbf16>
    %35 = vector.shape_cast %34 : vector<1x8x16xbf16> to vector<8x16xbf16>
    %cst_43 = arith.constant dense<0.000000e+00> : vector<64x16xf32>
    %36 = tpu.matmul %33, %35, %cst_43 {dimension_numbers = #tpu.dot_dimension_numbers<[1], [0], [0], [1], [0, 0, 1, 1], [], []>} : vector<64x8xbf16>, vector<8x16xbf16>, vector<64x16xf32> -> vector<64x16xf32>
    %37 = arith.addf %31, %36 : vector<64x16xf32>
    %c0_44 = arith.constant 0 : index
    %c1_45 = arith.constant 1 : index
    %c0_46 = arith.constant 0 : index
    %c0_47 = arith.constant 0 : index
    %38 = vector.load %arg1[%c0_44, %c1_45, %c0_46, %c0_47] : memref<1x10x10x8xbf16, #tpu.memory_space<vmem>>, vector<1x8x8x8xbf16>
    %39 = vector.shape_cast %38 : vector<1x8x8x8xbf16> to vector<64x8xbf16>
    %c6 = arith.constant 6 : index
    %c0_48 = arith.constant 0 : index
    %c0_49 = arith.constant 0 : index
    %40 = vector.load %arg5[%c6, %c0_48, %c0_49] : memref<9x8x16xbf16, #tpu.memory_space<vmem>>, vector<1x8x16xbf16>
    %41 = vector.shape_cast %40 : vector<1x8x16xbf16> to vector<8x16xbf16>
    %cst_50 = arith.constant dense<0.000000e+00> : vector<64x16xf32>
    %42 = tpu.matmul %39, %41, %cst_50 {dimension_numbers = #tpu.dot_dimension_numbers<[1], [0], [0], [1], [0, 0, 1, 1], [], []>} : vector<64x8xbf16>, vector<8x16xbf16>, vector<64x16xf32> -> vector<64x16xf32>
    %43 = arith.addf %37, %42 : vector<64x16xf32>
    %c0_51 = arith.constant 0 : index
    %c1_52 = arith.constant 1 : index
    %c0_53 = arith.constant 0 : index
    %c0_54 = arith.constant 0 : index
    %44 = vector.load %arg2[%c0_51, %c1_52, %c0_53, %c0_54] : memref<1x10x9x8xbf16, #tpu.memory_space<vmem>>, vector<1x8x8x8xbf16>
    %45 = vector.shape_cast %44 : vector<1x8x8x8xbf16> to vector<64x8xbf16>
    %c7 = arith.constant 7 : index
    %c0_55 = arith.constant 0 : index
    %c0_56 = arith.constant 0 : index
    %46 = vector.load %arg5[%c7, %c0_55, %c0_56] : memref<9x8x16xbf16, #tpu.memory_space<vmem>>, vector<1x8x16xbf16>
    %47 = vector.shape_cast %46 : vector<1x8x16xbf16> to vector<8x16xbf16>
    %cst_57 = arith.constant dense<0.000000e+00> : vector<64x16xf32>
    %48 = tpu.matmul %45, %47, %cst_57 {dimension_numbers = #tpu.dot_dimension_numbers<[1], [0], [0], [1], [0, 0, 1, 1], [], []>} : vector<64x8xbf16>, vector<8x16xbf16>, vector<64x16xf32> -> vector<64x16xf32>
    %49 = arith.addf %43, %48 : vector<64x16xf32>
    %c0_58 = arith.constant 0 : index
    %c1_59 = arith.constant 1 : index
    %c1_60 = arith.constant 1 : index
    %c0_61 = arith.constant 0 : index
    %50 = vector.load %arg1[%c0_58, %c1_59, %c1_60, %c0_61] : memref<1x10x10x8xbf16, #tpu.memory_space<vmem>>, vector<1x8x8x8xbf16>
    %51 = vector.shape_cast %50 : vector<1x8x8x8xbf16> to vector<64x8xbf16>
    %c8 = arith.constant 8 : index
    %c0_62 = arith.constant 0 : index
    %c0_63 = arith.constant 0 : index
    %52 = vector.load %arg5[%c8, %c0_62, %c0_63] : memref<9x8x16xbf16, #tpu.memory_space<vmem>>, vector<1x8x16xbf16>
    %53 = vector.shape_cast %52 : vector<1x8x16xbf16> to vector<8x16xbf16>
    %cst_64 = arith.constant dense<0.000000e+00> : vector<64x16xf32>
    %54 = tpu.matmul %51, %53, %cst_64 {dimension_numbers = #tpu.dot_dimension_numbers<[1], [0], [0], [1], [0, 0, 1, 1], [], []>} : vector<64x8xbf16>, vector<8x16xbf16>, vector<64x16xf32> -> vector<64x16xf32>
    %55 = arith.addf %49, %54 : vector<64x16xf32>
    %56 = vector.broadcast %0 : vector<1x16xf32> to vector<64x16xf32>
    %57 = arith.addf %55, %56 : vector<64x16xf32>
    %cst_65 = arith.constant 0.000000e+00 : f32
    %58 = vector.broadcast %cst_65 : f32 to vector<64x16xf32>
    %59 = arith.cmpf ogt, %57, %58 : vector<64x16xf32>
    %cst_66 = arith.constant 1.000000e-01 : f32
    %60 = vector.broadcast %cst_66 : f32 to vector<64x16xf32>
    %61 = arith.mulf %60, %57 : vector<64x16xf32>
    %62 = arith.select %59, %57, %61 : vector<64x16xi1>, vector<64x16xf32>
    %c0_67 = arith.constant 0 : index
    %c0_68 = arith.constant 0 : index
    %63 = vector.load %arg7[%c0_67, %c0_68] : memref<64x16xf32, #tpu.memory_space<vmem>>, vector<64x16xf32>
    tpu.vector_store %arg7[%c0_67, %c0_68], %62 {strides = array<i32>} : memref<64x16xf32, #tpu.memory_space<vmem>>, vector<64x16xf32>,
    return
  }
  func.func @transform_0(%arg0: i32) -> (i32, i32, i32, i32) {
    %c0_i32 = arith.constant 0 : i32
    %c0_i32_0 = arith.constant 0 : i32
    %c0_i32_1 = arith.constant 0 : i32
    %c0_i32_2 = arith.constant 0 : i32
    return %arg0, %c0_i32, %c0_i32_0, %c0_i32_1 : i32, i32, i32, i32
  }
  func.func @transform_1(%arg0: i32) -> (i32, i32, i32, i32) {
    %c0_i32 = arith.constant 0 : i32
    %c0_i32_0 = arith.constant 0 : i32
    %c0_i32_1 = arith.constant 0 : i32
    %c0_i32_2 = arith.constant 0 : i32
    return %arg0, %c0_i32, %c0_i32_0, %c0_i32_1 : i32, i32, i32, i32
  }
  func.func @transform_2(%arg0: i32) -> (i32, i32, i32, i32) {
    %c0_i32 = arith.constant 0 : i32
    %c0_i32_0 = arith.constant 0 : i32
    %c0_i32_1 = arith.constant 0 : i32
    %c0_i32_2 = arith.constant 0 : i32
    return %arg0, %c0_i32, %c0_i32_0, %c0_i32_1 : i32, i32, i32, i32
  }
  func.func @transform_3(%arg0: i32) -> (i32, i32, i32, i32) {
    %c0_i32 = arith.constant 0 : i32
    %c0_i32_0 = arith.constant 0 : i32
    %c0_i32_1 = arith.constant 0 : i32
    %c0_i32_2 = arith.constant 0 : i32
    return %arg0, %c0_i32, %c0_i32_0, %c0_i32_1 : i32, i32, i32, i32
  }
  func.func @transform_4(%arg0: i32) -> (i32, i32, i32) {
    %c0_i32 = arith.constant 0 : i32
    %c0_i32_0 = arith.constant 0 : i32
    %c0_i32_1 = arith.constant 0 : i32
    %c0_i32_2 = arith.constant 0 : i32
    return %c0_i32, %c0_i32_0, %c0_i32_1 : i32, i32, i32
  }
  func.func @transform_5(%arg0: i32) -> (i32, i32) {
    %c0_i32 = arith.constant 0 : i32
    %c0_i32_0 = arith.constant 0 : i32
    %c0_i32_1 = arith.constant 0 : i32
    return %c0_i32, %c0_i32_0 : i32, i32
  }
  func.func @transform_6(%arg0: i32) -> (i32, i32) {
    %c0_i32 = arith.constant 0 : i32
    %c0_i32_0 = arith.constant 0 : i32
    return %arg0, %c0_i32 : i32, i32
  }
}

module attributes {stable_mosaic.version = 11 : i64} {
  func.func @_conv_bn_act_kernel(%arg0: i32, %arg1: memref<1x10x10x16xbf16, #tpu.memory_space<vmem>>, %arg2: memref<9x16x16xbf16, #tpu.memory_space<vmem>>, %arg3: memref<1x16xf32, #tpu.memory_space<vmem>>, %arg4: memref<64x16xf32, #tpu.memory_space<vmem>>) attributes {dimension_semantics = [#tpu.dimension_semantics<parallel>], iteration_bounds = array<i64: 2>, scalar_prefetch = 0 : i64, scratch_operands = 0 : i64, tpu.core_type = #tpu.core_type<tc>, window_params = [{transform_indices = @transform_0, window_bounds = array<i64: 1, 10, 10, 16>}, {pipeline_mode = #tpu.pipeline_mode<synchronous>, transform_indices = @transform_1, window_bounds = array<i64: 9, 16, 16>}, {pipeline_mode = #tpu.pipeline_mode<synchronous>, transform_indices = @transform_2, window_bounds = array<i64: 1, 16>}, {transform_indices = @transform_3, window_bounds = array<i64: 64, 16>}]} {
    %c0 = arith.constant 0 : index
    %c0_0 = arith.constant 0 : index
    %0 = vector.load %arg3[%c0, %c0_0] : memref<1x16xf32, #tpu.memory_space<vmem>>, vector<1x16xf32>
    %cst = arith.constant 0.000000e+00 : f32
    %1 = vector.broadcast %cst : f32 to vector<64x16xf32>
    %c0_1 = arith.constant 0 : index
    %c0_2 = arith.constant 0 : index
    %c0_3 = arith.constant 0 : index
    %c0_4 = arith.constant 0 : index
    %2 = vector.load %arg1[%c0_1, %c0_2, %c0_3, %c0_4] : memref<1x10x10x16xbf16, #tpu.memory_space<vmem>>, vector<1x8x8x16xbf16>
    %3 = vector.shape_cast %2 : vector<1x8x8x16xbf16> to vector<64x16xbf16>
    %c0_5 = arith.constant 0 : index
    %c0_6 = arith.constant 0 : index
    %c0_7 = arith.constant 0 : index
    %4 = vector.load %arg2[%c0_5, %c0_6, %c0_7] : memref<9x16x16xbf16, #tpu.memory_space<vmem>>, vector<1x16x16xbf16>
    %5 = vector.shape_cast %4 : vector<1x16x16xbf16> to vector<16x16xbf16>
    %cst_8 = arith.constant dense<0.000000e+00> : vector<64x16xf32>
    %6 = tpu.matmul %3, %5, %cst_8 {dimension_numbers = #tpu.dot_dimension_numbers<[1], [0], [0], [1], [0, 0, 1, 1], [], []>} : vector<64x16xbf16>, vector<16x16xbf16>, vector<64x16xf32> -> vector<64x16xf32>
    %7 = arith.addf %1, %6 : vector<64x16xf32>
    %c0_9 = arith.constant 0 : index
    %c0_10 = arith.constant 0 : index
    %c1 = arith.constant 1 : index
    %c0_11 = arith.constant 0 : index
    %8 = vector.load %arg1[%c0_9, %c0_10, %c1, %c0_11] : memref<1x10x10x16xbf16, #tpu.memory_space<vmem>>, vector<1x8x8x16xbf16>
    %9 = vector.shape_cast %8 : vector<1x8x8x16xbf16> to vector<64x16xbf16>
    %c1_12 = arith.constant 1 : index
    %c0_13 = arith.constant 0 : index
    %c0_14 = arith.constant 0 : index
    %10 = vector.load %arg2[%c1_12, %c0_13, %c0_14] : memref<9x16x16xbf16, #tpu.memory_space<vmem>>, vector<1x16x16xbf16>
    %11 = vector.shape_cast %10 : vector<1x16x16xbf16> to vector<16x16xbf16>
    %cst_15 = arith.constant dense<0.000000e+00> : vector<64x16xf32>
    %12 = tpu.matmul %9, %11, %cst_15 {dimension_numbers = #tpu.dot_dimension_numbers<[1], [0], [0], [1], [0, 0, 1, 1], [], []>} : vector<64x16xbf16>, vector<16x16xbf16>, vector<64x16xf32> -> vector<64x16xf32>
    %13 = arith.addf %7, %12 : vector<64x16xf32>
    %c0_16 = arith.constant 0 : index
    %c0_17 = arith.constant 0 : index
    %c2 = arith.constant 2 : index
    %c0_18 = arith.constant 0 : index
    %14 = vector.load %arg1[%c0_16, %c0_17, %c2, %c0_18] : memref<1x10x10x16xbf16, #tpu.memory_space<vmem>>, vector<1x8x8x16xbf16>
    %15 = vector.shape_cast %14 : vector<1x8x8x16xbf16> to vector<64x16xbf16>
    %c2_19 = arith.constant 2 : index
    %c0_20 = arith.constant 0 : index
    %c0_21 = arith.constant 0 : index
    %16 = vector.load %arg2[%c2_19, %c0_20, %c0_21] : memref<9x16x16xbf16, #tpu.memory_space<vmem>>, vector<1x16x16xbf16>
    %17 = vector.shape_cast %16 : vector<1x16x16xbf16> to vector<16x16xbf16>
    %cst_22 = arith.constant dense<0.000000e+00> : vector<64x16xf32>
    %18 = tpu.matmul %15, %17, %cst_22 {dimension_numbers = #tpu.dot_dimension_numbers<[1], [0], [0], [1], [0, 0, 1, 1], [], []>} : vector<64x16xbf16>, vector<16x16xbf16>, vector<64x16xf32> -> vector<64x16xf32>
    %19 = arith.addf %13, %18 : vector<64x16xf32>
    %c0_23 = arith.constant 0 : index
    %c1_24 = arith.constant 1 : index
    %c0_25 = arith.constant 0 : index
    %c0_26 = arith.constant 0 : index
    %20 = vector.load %arg1[%c0_23, %c1_24, %c0_25, %c0_26] : memref<1x10x10x16xbf16, #tpu.memory_space<vmem>>, vector<1x8x8x16xbf16>
    %21 = vector.shape_cast %20 : vector<1x8x8x16xbf16> to vector<64x16xbf16>
    %c3 = arith.constant 3 : index
    %c0_27 = arith.constant 0 : index
    %c0_28 = arith.constant 0 : index
    %22 = vector.load %arg2[%c3, %c0_27, %c0_28] : memref<9x16x16xbf16, #tpu.memory_space<vmem>>, vector<1x16x16xbf16>
    %23 = vector.shape_cast %22 : vector<1x16x16xbf16> to vector<16x16xbf16>
    %cst_29 = arith.constant dense<0.000000e+00> : vector<64x16xf32>
    %24 = tpu.matmul %21, %23, %cst_29 {dimension_numbers = #tpu.dot_dimension_numbers<[1], [0], [0], [1], [0, 0, 1, 1], [], []>} : vector<64x16xbf16>, vector<16x16xbf16>, vector<64x16xf32> -> vector<64x16xf32>
    %25 = arith.addf %19, %24 : vector<64x16xf32>
    %c0_30 = arith.constant 0 : index
    %c1_31 = arith.constant 1 : index
    %c1_32 = arith.constant 1 : index
    %c0_33 = arith.constant 0 : index
    %26 = vector.load %arg1[%c0_30, %c1_31, %c1_32, %c0_33] : memref<1x10x10x16xbf16, #tpu.memory_space<vmem>>, vector<1x8x8x16xbf16>
    %27 = vector.shape_cast %26 : vector<1x8x8x16xbf16> to vector<64x16xbf16>
    %c4 = arith.constant 4 : index
    %c0_34 = arith.constant 0 : index
    %c0_35 = arith.constant 0 : index
    %28 = vector.load %arg2[%c4, %c0_34, %c0_35] : memref<9x16x16xbf16, #tpu.memory_space<vmem>>, vector<1x16x16xbf16>
    %29 = vector.shape_cast %28 : vector<1x16x16xbf16> to vector<16x16xbf16>
    %cst_36 = arith.constant dense<0.000000e+00> : vector<64x16xf32>
    %30 = tpu.matmul %27, %29, %cst_36 {dimension_numbers = #tpu.dot_dimension_numbers<[1], [0], [0], [1], [0, 0, 1, 1], [], []>} : vector<64x16xbf16>, vector<16x16xbf16>, vector<64x16xf32> -> vector<64x16xf32>
    %31 = arith.addf %25, %30 : vector<64x16xf32>
    %c0_37 = arith.constant 0 : index
    %c1_38 = arith.constant 1 : index
    %c2_39 = arith.constant 2 : index
    %c0_40 = arith.constant 0 : index
    %32 = vector.load %arg1[%c0_37, %c1_38, %c2_39, %c0_40] : memref<1x10x10x16xbf16, #tpu.memory_space<vmem>>, vector<1x8x8x16xbf16>
    %33 = vector.shape_cast %32 : vector<1x8x8x16xbf16> to vector<64x16xbf16>
    %c5 = arith.constant 5 : index
    %c0_41 = arith.constant 0 : index
    %c0_42 = arith.constant 0 : index
    %34 = vector.load %arg2[%c5, %c0_41, %c0_42] : memref<9x16x16xbf16, #tpu.memory_space<vmem>>, vector<1x16x16xbf16>
    %35 = vector.shape_cast %34 : vector<1x16x16xbf16> to vector<16x16xbf16>
    %cst_43 = arith.constant dense<0.000000e+00> : vector<64x16xf32>
    %36 = tpu.matmul %33, %35, %cst_43 {dimension_numbers = #tpu.dot_dimension_numbers<[1], [0], [0], [1], [0, 0, 1, 1], [], []>} : vector<64x16xbf16>, vector<16x16xbf16>, vector<64x16xf32> -> vector<64x16xf32>
    %37 = arith.addf %31, %36 : vector<64x16xf32>
    %c0_44 = arith.constant 0 : index
    %c2_45 = arith.constant 2 : index
    %c0_46 = arith.constant 0 : index
    %c0_47 = arith.constant 0 : index
    %38 = vector.load %arg1[%c0_44, %c2_45, %c0_46, %c0_47] : memref<1x10x10x16xbf16, #tpu.memory_space<vmem>>, vector<1x8x8x16xbf16>
    %39 = vector.shape_cast %38 : vector<1x8x8x16xbf16> to vector<64x16xbf16>
    %c6 = arith.constant 6 : index
    %c0_48 = arith.constant 0 : index
    %c0_49 = arith.constant 0 : index
    %40 = vector.load %arg2[%c6, %c0_48, %c0_49] : memref<9x16x16xbf16, #tpu.memory_space<vmem>>, vector<1x16x16xbf16>
    %41 = vector.shape_cast %40 : vector<1x16x16xbf16> to vector<16x16xbf16>
    %cst_50 = arith.constant dense<0.000000e+00> : vector<64x16xf32>
    %42 = tpu.matmul %39, %41, %cst_50 {dimension_numbers = #tpu.dot_dimension_numbers<[1], [0], [0], [1], [0, 0, 1, 1], [], []>} : vector<64x16xbf16>, vector<16x16xbf16>, vector<64x16xf32> -> vector<64x16xf32>
    %43 = arith.addf %37, %42 : vector<64x16xf32>
    %c0_51 = arith.constant 0 : index
    %c2_52 = arith.constant 2 : index
    %c1_53 = arith.constant 1 : index
    %c0_54 = arith.constant 0 : index
    %44 = vector.load %arg1[%c0_51, %c2_52, %c1_53, %c0_54] : memref<1x10x10x16xbf16, #tpu.memory_space<vmem>>, vector<1x8x8x16xbf16>
    %45 = vector.shape_cast %44 : vector<1x8x8x16xbf16> to vector<64x16xbf16>
    %c7 = arith.constant 7 : index
    %c0_55 = arith.constant 0 : index
    %c0_56 = arith.constant 0 : index
    %46 = vector.load %arg2[%c7, %c0_55, %c0_56] : memref<9x16x16xbf16, #tpu.memory_space<vmem>>, vector<1x16x16xbf16>
    %47 = vector.shape_cast %46 : vector<1x16x16xbf16> to vector<16x16xbf16>
    %cst_57 = arith.constant dense<0.000000e+00> : vector<64x16xf32>
    %48 = tpu.matmul %45, %47, %cst_57 {dimension_numbers = #tpu.dot_dimension_numbers<[1], [0], [0], [1], [0, 0, 1, 1], [], []>} : vector<64x16xbf16>, vector<16x16xbf16>, vector<64x16xf32> -> vector<64x16xf32>
    %49 = arith.addf %43, %48 : vector<64x16xf32>
    %c0_58 = arith.constant 0 : index
    %c2_59 = arith.constant 2 : index
    %c2_60 = arith.constant 2 : index
    %c0_61 = arith.constant 0 : index
    %50 = vector.load %arg1[%c0_58, %c2_59, %c2_60, %c0_61] : memref<1x10x10x16xbf16, #tpu.memory_space<vmem>>, vector<1x8x8x16xbf16>
    %51 = vector.shape_cast %50 : vector<1x8x8x16xbf16> to vector<64x16xbf16>
    %c8 = arith.constant 8 : index
    %c0_62 = arith.constant 0 : index
    %c0_63 = arith.constant 0 : index
    %52 = vector.load %arg2[%c8, %c0_62, %c0_63] : memref<9x16x16xbf16, #tpu.memory_space<vmem>>, vector<1x16x16xbf16>
    %53 = vector.shape_cast %52 : vector<1x16x16xbf16> to vector<16x16xbf16>
    %cst_64 = arith.constant dense<0.000000e+00> : vector<64x16xf32>
    %54 = tpu.matmul %51, %53, %cst_64 {dimension_numbers = #tpu.dot_dimension_numbers<[1], [0], [0], [1], [0, 0, 1, 1], [], []>} : vector<64x16xbf16>, vector<16x16xbf16>, vector<64x16xf32> -> vector<64x16xf32>
    %55 = arith.addf %49, %54 : vector<64x16xf32>
    %56 = vector.broadcast %0 : vector<1x16xf32> to vector<64x16xf32>
    %57 = arith.addf %55, %56 : vector<64x16xf32>
    %cst_65 = arith.constant 0.000000e+00 : f32
    %58 = vector.broadcast %cst_65 : f32 to vector<64x16xf32>
    %59 = arith.cmpf ogt, %57, %58 : vector<64x16xf32>
    %cst_66 = arith.constant 1.000000e-01 : f32
    %60 = vector.broadcast %cst_66 : f32 to vector<64x16xf32>
    %61 = arith.mulf %60, %57 : vector<64x16xf32>
    %62 = arith.select %59, %57, %61 : vector<64x16xi1>, vector<64x16xf32>
    %c0_67 = arith.constant 0 : index
    %c0_68 = arith.constant 0 : index
    %63 = vector.load %arg4[%c0_67, %c0_68] : memref<64x16xf32, #tpu.memory_space<vmem>>, vector<64x16xf32>
    tpu.vector_store %arg4[%c0_67, %c0_68], %62 {strides = array<i32>} : memref<64x16xf32, #tpu.memory_space<vmem>>, vector<64x16xf32>,
    return
  }
  func.func @transform_0(%arg0: i32) -> (i32, i32, i32, i32) {
    %c0_i32 = arith.constant 0 : i32
    %c0_i32_0 = arith.constant 0 : i32
    %c0_i32_1 = arith.constant 0 : i32
    %c0_i32_2 = arith.constant 0 : i32
    return %arg0, %c0_i32, %c0_i32_0, %c0_i32_1 : i32, i32, i32, i32
  }
  func.func @transform_1(%arg0: i32) -> (i32, i32, i32) {
    %c0_i32 = arith.constant 0 : i32
    %c0_i32_0 = arith.constant 0 : i32
    %c0_i32_1 = arith.constant 0 : i32
    %c0_i32_2 = arith.constant 0 : i32
    return %c0_i32, %c0_i32_0, %c0_i32_1 : i32, i32, i32
  }
  func.func @transform_2(%arg0: i32) -> (i32, i32) {
    %c0_i32 = arith.constant 0 : i32
    %c0_i32_0 = arith.constant 0 : i32
    %c0_i32_1 = arith.constant 0 : i32
    return %c0_i32, %c0_i32_0 : i32, i32
  }
  func.func @transform_3(%arg0: i32) -> (i32, i32) {
    %c0_i32 = arith.constant 0 : i32
    %c0_i32_0 = arith.constant 0 : i32
    return %arg0, %c0_i32 : i32, i32
  }
}

module attributes {stable_mosaic.version = 11 : i64} {
  func.func @_conv_bn_act_kernel(%arg0: i32, %arg1: memref<1x8x8x16xbf16, #tpu.memory_space<vmem>>, %arg2: memref<1x16x8xbf16, #tpu.memory_space<vmem>>, %arg3: memref<1x8xf32, #tpu.memory_space<vmem>>, %arg4: memref<64x8xf32, #tpu.memory_space<vmem>>) attributes {dimension_semantics = [#tpu.dimension_semantics<parallel>], iteration_bounds = array<i64: 2>, scalar_prefetch = 0 : i64, scratch_operands = 0 : i64, tpu.core_type = #tpu.core_type<tc>, window_params = [{transform_indices = @transform_0, window_bounds = array<i64: 1, 8, 8, 16>}, {pipeline_mode = #tpu.pipeline_mode<synchronous>, transform_indices = @transform_1, window_bounds = array<i64: 1, 16, 8>}, {pipeline_mode = #tpu.pipeline_mode<synchronous>, transform_indices = @transform_2, window_bounds = array<i64: 1, 8>}, {transform_indices = @transform_3, window_bounds = array<i64: 64, 8>}]} {
    %c0 = arith.constant 0 : index
    %c0_0 = arith.constant 0 : index
    %0 = vector.load %arg3[%c0, %c0_0] : memref<1x8xf32, #tpu.memory_space<vmem>>, vector<1x8xf32>
    %cst = arith.constant 0.000000e+00 : f32
    %1 = vector.broadcast %cst : f32 to vector<64x8xf32>
    %c0_1 = arith.constant 0 : index
    %c0_2 = arith.constant 0 : index
    %c0_3 = arith.constant 0 : index
    %c0_4 = arith.constant 0 : index
    %2 = vector.load %arg1[%c0_1, %c0_2, %c0_3, %c0_4] : memref<1x8x8x16xbf16, #tpu.memory_space<vmem>>, vector<1x8x8x16xbf16>
    %3 = vector.shape_cast %2 : vector<1x8x8x16xbf16> to vector<64x16xbf16>
    %c0_5 = arith.constant 0 : index
    %c0_6 = arith.constant 0 : index
    %c0_7 = arith.constant 0 : index
    %4 = vector.load %arg2[%c0_5, %c0_6, %c0_7] : memref<1x16x8xbf16, #tpu.memory_space<vmem>>, vector<1x16x8xbf16>
    %5 = vector.shape_cast %4 : vector<1x16x8xbf16> to vector<16x8xbf16>
    %cst_8 = arith.constant dense<0.000000e+00> : vector<64x8xf32>
    %6 = tpu.matmul %3, %5, %cst_8 {dimension_numbers = #tpu.dot_dimension_numbers<[1], [0], [0], [1], [0, 0, 1, 1], [], []>} : vector<64x16xbf16>, vector<16x8xbf16>, vector<64x8xf32> -> vector<64x8xf32>
    %7 = arith.addf %1, %6 : vector<64x8xf32>
    %8 = vector.broadcast %0 : vector<1x8xf32> to vector<64x8xf32>
    %9 = arith.addf %7, %8 : vector<64x8xf32>
    %cst_9 = arith.constant 0.000000e+00 : f32
    %10 = vector.broadcast %cst_9 : f32 to vector<64x8xf32>
    %11 = arith.cmpf ogt, %9, %10 : vector<64x8xf32>
    %cst_10 = arith.constant 1.000000e-01 : f32
    %12 = vector.broadcast %cst_10 : f32 to vector<64x8xf32>
    %13 = arith.mulf %12, %9 : vector<64x8xf32>
    %14 = arith.select %11, %9, %13 : vector<64x8xi1>, vector<64x8xf32>
    %c0_11 = arith.constant 0 : index
    %c0_12 = arith.constant 0 : index
    %15 = vector.load %arg4[%c0_11, %c0_12] : memref<64x8xf32, #tpu.memory_space<vmem>>, vector<64x8xf32>
    tpu.vector_store %arg4[%c0_11, %c0_12], %14 {strides = array<i32>} : memref<64x8xf32, #tpu.memory_space<vmem>>, vector<64x8xf32>,
    return
  }
  func.func @transform_0(%arg0: i32) -> (i32, i32, i32, i32) {
    %c0_i32 = arith.constant 0 : i32
    %c0_i32_0 = arith.constant 0 : i32
    %c0_i32_1 = arith.constant 0 : i32
    %c0_i32_2 = arith.constant 0 : i32
    return %arg0, %c0_i32, %c0_i32_0, %c0_i32_1 : i32, i32, i32, i32
  }
  func.func @transform_1(%arg0: i32) -> (i32, i32, i32) {
    %c0_i32 = arith.constant 0 : i32
    %c0_i32_0 = arith.constant 0 : i32
    %c0_i32_1 = arith.constant 0 : i32
    %c0_i32_2 = arith.constant 0 : i32
    return %c0_i32, %c0_i32_0, %c0_i32_1 : i32, i32, i32
  }
  func.func @transform_2(%arg0: i32) -> (i32, i32) {
    %c0_i32 = arith.constant 0 : i32
    %c0_i32_0 = arith.constant 0 : i32
    %c0_i32_1 = arith.constant 0 : i32
    return %c0_i32, %c0_i32_0 : i32, i32
  }
  func.func @transform_3(%arg0: i32) -> (i32, i32) {
    %c0_i32 = arith.constant 0 : i32
    %c0_i32_0 = arith.constant 0 : i32
    return %arg0, %c0_i32 : i32, i32
  }
}

module attributes {stable_mosaic.version = 11 : i64} {
  func.func @_conv_bn_act_kernel(%arg0: i32, %arg1: memref<1x8x8x16xbf16, #tpu.memory_space<vmem>>, %arg2: memref<1x16x18xbf16, #tpu.memory_space<vmem>>, %arg3: memref<1x18xf32, #tpu.memory_space<vmem>>, %arg4: memref<64x18xf32, #tpu.memory_space<vmem>>) attributes {dimension_semantics = [#tpu.dimension_semantics<parallel>], iteration_bounds = array<i64: 2>, scalar_prefetch = 0 : i64, scratch_operands = 0 : i64, tpu.core_type = #tpu.core_type<tc>, window_params = [{transform_indices = @transform_0, window_bounds = array<i64: 1, 8, 8, 16>}, {pipeline_mode = #tpu.pipeline_mode<synchronous>, transform_indices = @transform_1, window_bounds = array<i64: 1, 16, 18>}, {pipeline_mode = #tpu.pipeline_mode<synchronous>, transform_indices = @transform_2, window_bounds = array<i64: 1, 18>}, {transform_indices = @transform_3, window_bounds = array<i64: 64, 18>}]} {
    %c0 = arith.constant 0 : index
    %c0_0 = arith.constant 0 : index
    %0 = vector.load %arg3[%c0, %c0_0] : memref<1x18xf32, #tpu.memory_space<vmem>>, vector<1x18xf32>
    %cst = arith.constant 0.000000e+00 : f32
    %1 = vector.broadcast %cst : f32 to vector<64x18xf32>
    %c0_1 = arith.constant 0 : index
    %c0_2 = arith.constant 0 : index
    %c0_3 = arith.constant 0 : index
    %c0_4 = arith.constant 0 : index
    %2 = vector.load %arg1[%c0_1, %c0_2, %c0_3, %c0_4] : memref<1x8x8x16xbf16, #tpu.memory_space<vmem>>, vector<1x8x8x16xbf16>
    %3 = vector.shape_cast %2 : vector<1x8x8x16xbf16> to vector<64x16xbf16>
    %c0_5 = arith.constant 0 : index
    %c0_6 = arith.constant 0 : index
    %c0_7 = arith.constant 0 : index
    %4 = vector.load %arg2[%c0_5, %c0_6, %c0_7] : memref<1x16x18xbf16, #tpu.memory_space<vmem>>, vector<1x16x18xbf16>
    %5 = vector.shape_cast %4 : vector<1x16x18xbf16> to vector<16x18xbf16>
    %cst_8 = arith.constant dense<0.000000e+00> : vector<64x18xf32>
    %6 = tpu.matmul %3, %5, %cst_8 {dimension_numbers = #tpu.dot_dimension_numbers<[1], [0], [0], [1], [0, 0, 1, 1], [], []>} : vector<64x16xbf16>, vector<16x18xbf16>, vector<64x18xf32> -> vector<64x18xf32>
    %7 = arith.addf %1, %6 : vector<64x18xf32>
    %8 = vector.broadcast %0 : vector<1x18xf32> to vector<64x18xf32>
    %9 = arith.addf %7, %8 : vector<64x18xf32>
    %c0_9 = arith.constant 0 : index
    %c0_10 = arith.constant 0 : index
    %10 = vector.load %arg4[%c0_9, %c0_10] : memref<64x18xf32, #tpu.memory_space<vmem>>, vector<64x18xf32>
    tpu.vector_store %arg4[%c0_9, %c0_10], %9 {strides = array<i32>} : memref<64x18xf32, #tpu.memory_space<vmem>>, vector<64x18xf32>,
    return
  }
  func.func @transform_0(%arg0: i32) -> (i32, i32, i32, i32) {
    %c0_i32 = arith.constant 0 : i32
    %c0_i32_0 = arith.constant 0 : i32
    %c0_i32_1 = arith.constant 0 : i32
    %c0_i32_2 = arith.constant 0 : i32
    return %arg0, %c0_i32, %c0_i32_0, %c0_i32_1 : i32, i32, i32, i32
  }
  func.func @transform_1(%arg0: i32) -> (i32, i32, i32) {
    %c0_i32 = arith.constant 0 : i32
    %c0_i32_0 = arith.constant 0 : i32
    %c0_i32_1 = arith.constant 0 : i32
    %c0_i32_2 = arith.constant 0 : i32
    return %c0_i32, %c0_i32_0, %c0_i32_1 : i32, i32, i32
  }
  func.func @transform_2(%arg0: i32) -> (i32, i32) {
    %c0_i32 = arith.constant 0 : i32
    %c0_i32_0 = arith.constant 0 : i32
    %c0_i32_1 = arith.constant 0 : i32
    return %c0_i32, %c0_i32_0 : i32, i32
  }
  func.func @transform_3(%arg0: i32) -> (i32, i32) {
    %c0_i32 = arith.constant 0 : i32
    %c0_i32_0 = arith.constant 0 : i32
    return %arg0, %c0_i32 : i32, i32
  }
}

module attributes {stable_mosaic.version = 11 : i64} {
  func.func @_conv_bn_act_kernel(%arg0: i32, %arg1: memref<1x16x16x16xbf16, #tpu.memory_space<vmem>>, %arg2: memref<1x16x18xbf16, #tpu.memory_space<vmem>>, %arg3: memref<1x18xf32, #tpu.memory_space<vmem>>, %arg4: memref<256x18xf32, #tpu.memory_space<vmem>>) attributes {dimension_semantics = [#tpu.dimension_semantics<parallel>], iteration_bounds = array<i64: 2>, scalar_prefetch = 0 : i64, scratch_operands = 0 : i64, tpu.core_type = #tpu.core_type<tc>, window_params = [{transform_indices = @transform_0, window_bounds = array<i64: 1, 16, 16, 16>}, {pipeline_mode = #tpu.pipeline_mode<synchronous>, transform_indices = @transform_1, window_bounds = array<i64: 1, 16, 18>}, {pipeline_mode = #tpu.pipeline_mode<synchronous>, transform_indices = @transform_2, window_bounds = array<i64: 1, 18>}, {transform_indices = @transform_3, window_bounds = array<i64: 256, 18>}]} {
    %c0 = arith.constant 0 : index
    %c0_0 = arith.constant 0 : index
    %0 = vector.load %arg3[%c0, %c0_0] : memref<1x18xf32, #tpu.memory_space<vmem>>, vector<1x18xf32>
    %cst = arith.constant 0.000000e+00 : f32
    %1 = vector.broadcast %cst : f32 to vector<128x18xf32>
    %c0_1 = arith.constant 0 : index
    %c0_2 = arith.constant 0 : index
    %c0_3 = arith.constant 0 : index
    %c0_4 = arith.constant 0 : index
    %2 = vector.load %arg1[%c0_1, %c0_2, %c0_3, %c0_4] : memref<1x16x16x16xbf16, #tpu.memory_space<vmem>>, vector<1x8x16x16xbf16>
    %3 = vector.shape_cast %2 : vector<1x8x16x16xbf16> to vector<128x16xbf16>
    %c0_5 = arith.constant 0 : index
    %c0_6 = arith.constant 0 : index
    %c0_7 = arith.constant 0 : index
    %4 = vector.load %arg2[%c0_5, %c0_6, %c0_7] : memref<1x16x18xbf16, #tpu.memory_space<vmem>>, vector<1x16x18xbf16>
    %5 = vector.shape_cast %4 : vector<1x16x18xbf16> to vector<16x18xbf16>
    %cst_8 = arith.constant dense<0.000000e+00> : vector<128x18xf32>
    %6 = tpu.matmul %3, %5, %cst_8 {dimension_numbers = #tpu.dot_dimension_numbers<[1], [0], [0], [1], [0, 0, 1, 1], [], []>} : vector<128x16xbf16>, vector<16x18xbf16>, vector<128x18xf32> -> vector<128x18xf32>
    %7 = arith.addf %1, %6 : vector<128x18xf32>
    %8 = vector.broadcast %0 : vector<1x18xf32> to vector<128x18xf32>
    %9 = arith.addf %7, %8 : vector<128x18xf32>
    %c0_9 = arith.constant 0 : index
    %c0_10 = arith.constant 0 : index
    %10 = vector.load %arg4[%c0_9, %c0_10] : memref<256x18xf32, #tpu.memory_space<vmem>>, vector<128x18xf32>
    tpu.vector_store %arg4[%c0_9, %c0_10], %9 {strides = array<i32>} : memref<256x18xf32, #tpu.memory_space<vmem>>, vector<128x18xf32>,
    %cst_11 = arith.constant 0.000000e+00 : f32
    %11 = vector.broadcast %cst_11 : f32 to vector<128x18xf32>
    %c0_12 = arith.constant 0 : index
    %c8 = arith.constant 8 : index
    %c0_13 = arith.constant 0 : index
    %c0_14 = arith.constant 0 : index
    %12 = vector.load %arg1[%c0_12, %c8, %c0_13, %c0_14] : memref<1x16x16x16xbf16, #tpu.memory_space<vmem>>, vector<1x8x16x16xbf16>
    %13 = vector.shape_cast %12 : vector<1x8x16x16xbf16> to vector<128x16xbf16>
    %c0_15 = arith.constant 0 : index
    %c0_16 = arith.constant 0 : index
    %c0_17 = arith.constant 0 : index
    %14 = vector.load %arg2[%c0_15, %c0_16, %c0_17] : memref<1x16x18xbf16, #tpu.memory_space<vmem>>, vector<1x16x18xbf16>
    %15 = vector.shape_cast %14 : vector<1x16x18xbf16> to vector<16x18xbf16>
    %cst_18 = arith.constant dense<0.000000e+00> : vector<128x18xf32>
    %16 = tpu.matmul %13, %15, %cst_18 {dimension_numbers = #tpu.dot_dimension_numbers<[1], [0], [0], [1], [0, 0, 1, 1], [], []>} : vector<128x16xbf16>, vector<16x18xbf16>, vector<128x18xf32> -> vector<128x18xf32>
    %17 = arith.addf %11, %16 : vector<128x18xf32>
    %18 = vector.broadcast %0 : vector<1x18xf32> to vector<128x18xf32>
    %19 = arith.addf %17, %18 : vector<128x18xf32>
    %c128 = arith.constant 128 : index
    %c0_19 = arith.constant 0 : index
    %20 = vector.load %arg4[%c128, %c0_19] : memref<256x18xf32, #tpu.memory_space<vmem>>, vector<128x18xf32>
    tpu.vector_store %arg4[%c128, %c0_19], %19 {strides = array<i32>} : memref<256x18xf32, #tpu.memory_space<vmem>>, vector<128x18xf32>,
    return
  }
  func.func @transform_0(%arg0: i32) -> (i32, i32, i32, i32) {
    %c0_i32 = arith.constant 0 : i32
    %c0_i32_0 = arith.constant 0 : i32
    %c0_i32_1 = arith.constant 0 : i32
    %c0_i32_2 = arith.constant 0 : i32
    return %arg0, %c0_i32, %c0_i32_0, %c0_i32_1 : i32, i32, i32, i32
  }
  func.func @transform_1(%arg0: i32) -> (i32, i32, i32) {
    %c0_i32 = arith.constant 0 : i32
    %c0_i32_0 = arith.constant 0 : i32
    %c0_i32_1 = arith.constant 0 : i32
    %c0_i32_2 = arith.constant 0 : i32
    return %c0_i32, %c0_i32_0, %c0_i32_1 : i32, i32, i32
  }
  func.func @transform_2(%arg0: i32) -> (i32, i32) {
    %c0_i32 = arith.constant 0 : i32
    %c0_i32_0 = arith.constant 0 : i32
    %c0_i32_1 = arith.constant 0 : i32
    return %c0_i32, %c0_i32_0 : i32, i32
  }
  func.func @transform_3(%arg0: i32) -> (i32, i32) {
    %c0_i32 = arith.constant 0 : i32
    %c0_i32_0 = arith.constant 0 : i32
    return %arg0, %c0_i32 : i32, i32
  }
}

</mosaic_0001>

<bundles_post_ra>
// kernel: _lambda_.10
= control target key start
LH: loop header
LB: loop body
LE: loop exit
PB: predicated region body
PF: predicated region fallthrough
CT: control target
= control target key end

     0   :  { %s463_s12 = smov 0   ;;  %s504_s0 = inlined_call_operand.vmem [shape: bf16[2,8,8,16], index: 0, kind: input, shape index: {}]   ;;  %s505_s1 = inlined_call_operand.vmem [shape: bf16[1,16,8], index: 1, kind: input, shape index: {}]   ;;  %s506_s2 = inlined_call_operand.vmem [shape: f32[1,8], index: 2, kind: input, shape index: {}]   ;;  %s507_s3 = inlined_call_operand.vmem [shape: f32[128,8], index: 3, kind: output, shape index: {}]  }
   0x1 LB: > { %s383_s13 = sadd.s32 4294967295, %s441_s12   ;;  %p387_p0 = scmp.ge.s32.totalorder %s441_s12, 1  ;;  %s441_s12 = sphi %s463_s12, %s13_s12  }
   0x2   : > { %p137_p1 = scmp.lt.s32.totalorder %s441_s12, 3 }
   0x4   : > { %p138_p2 = pnand %p387_p0, %p137_p1 }
   0x5   : > { %v430_v0 = vld [vmem:[%s505_s1] sm:$0xff] (!%p138_p2)   ;;  %p161_p3 = scmp.lt.s32.totalorder (!%p138_p2), %s383_s13, 1  ;;  %vm216_vm0 = vcmask (!%p138_p2), 130048   ;;  %s390_s21 = sshll.u32 (!%p138_p2), %s383_s13, 3  ;;  %vm318_vm1 = vcmask (!%p138_p2), 64512  }
   0x6   : > { %141 = sbr.rel (%p138_p2) target bundleno = 243 (0xf3), region = 32  ;;  %410 = vmatprep.subr.bf16.mxu0 (!%p138_p2), %v430_v0  ;;  %420 = vmatprep.subr.bf16.mxu1 (!%p138_p2), %v430_v0  ;;  %p167_p4 = scmp.lt.s32.totalorder (!%p138_p2), %s390_s21, 15  ;;  %v392_v5 = vld [vmem:[%s506_s2] ss:$0 sm:$0xff] (!%p138_p2) }
   0x7   : > { %411 = vmatpush3.bf16.msra.mxu0 (!%p138_p2), %v430_v0  ;;  %421 = vmatpush3.bf16.msra.mxu1 (!%p138_p2), %v430_v0 }
   0xd   : > { %s162_s16 = scalar_select %p161_p3, %s383_s13, 1 }
   0xe   : > { %s509_s21 = smov (!%p167_p4, %s390_s21), 15 }
   0xf   : > { %s404_s17 = sshll.u32 %s162_s16, 5  ;;  %s391_s24 = sshll.u32 %s509_s21, 3 }
  0x10   : > { %s165_s20 = scalar_lea.vmem %s504_s0, %s404_s17  ;;  %s483_s27 = scalar_lea.vmem %s507_s3, %s391_s24 }
  0x11   : > { %v431_v1 = vld [vmem:[%s165_s20] sm:$0xff]   ;;  %v432_v2 = vld [vmem:[%s165_s20 + $0x10] sm:$0xff]   ;;  %v433_v3 = vld [vmem:[%s165_s20 + $0x8] sm:$0xff]  }
  0x12   : > { %412 = vmatprep.mubr.msk.bf16.mxu0 %vm216_vm0, %v431_v1  ;;  %416 = vmatprep.mubr.msk.bf16.mxu1 %vm216_vm0, %v432_v2  ;;  %v434_v4 = vld [vmem:[%s165_s20 + $0x18] sm:$0xff]  }
  0x13   : > { %413 = vmatmul.mubr.msk.bf16.vlgmr.msra.gmra.mrb[0].mxu0 %vm216_vm0, %v433_v3  ;;  %417 = vmatmul.mubr.msk.bf16.vlgmr.msra.gmra.mrb[0].mxu1 %vm216_vm0, %v434_v4 }
  0xe6   : > { %v414_v6 = vpop.f32.mrb[0].mxu0  ;;  %v418_v8 = vpop.f32.mrb[0].mxu1 }
  0xe7   : > { %v272_v7 = vadd.f32 %v414_v6, %v392_v5  ;;  %v263_v9 = vpop.f32.mrb[1].mxu0  ;;  %v288_v10 = vadd.f32 %v418_v8, %v392_v5  ;;  %v279_v12 = vpop.f32.mrb[1].mxu1 }
  0xe8   : > { %v264_v11 = vadd.f32 %v392_v5, %v263_v9  ;;  %v415_v13 = vpop.f32.mrb[2].mxu0  ;;  %v280_v15 = vadd.f32 %v392_v5, %v279_v12  ;;  %v419_v17 = vpop.f32.mrb[2].mxu1 }
  0xe9   : > { %vm296_vm2 = vcmp.gt.f32.partialorder %v272_v7, 0.0  ;;  %v304_v14 = vmul.f32 0.1, %v272_v7  ;;  %v275_v16 = vadd.f32 %v415_v13, %v392_v5  ;;  %v266_v18 = vpop.f32.mrb[3].mxu0  ;;  %vm300_vm3 = vcmp.gt.f32.partialorder %v288_v10, 0.0  ;;  %v282_v23 = vpop.f32.mrb[3].mxu1 }
  0xea   : > { %v308_v19 = vmul.f32 0.1, %v288_v10  ;;  %vm294_vm4 = vcmp.gt.f32.partialorder %v264_v11, 0.0  ;;  %v302_v20 = vmul.f32 0.1, %v264_v11  ;;  %vm298_vm5 = vcmp.gt.f32.partialorder %v280_v15, 0.0 }
  0xeb   : > { %v312_v21 = vsel %vm296_vm2, %v272_v7, %v304_v14  ;;  %v306_v22 = vmul.f32 0.1, %v280_v15  ;;  %vm297_vm6 = vcmp.gt.f32.partialorder %v275_v16, 0.0  ;;  %v305_v26 = vmul.f32 0.1, %v275_v16 }
  0xec   : > { %321 = vst.msk [vmem:[%s483_s27 + $0x10] sm:$0xff] %vm318_vm1, %v312_v21  ;;  %v316_v24 = vsel %vm300_vm3, %v288_v10, %v308_v19  ;;  %v310_v25 = vsel %vm294_vm4, %v264_v11, %v302_v20  ;;  %v291_v27 = vadd.f32 %v419_v17, %v392_v5  ;;  %v267_v29 = vadd.f32 %v392_v5, %v266_v18 }
  0xed   : > { %325 = vst.msk [vmem:[%s483_s27 + $0x30] sm:$0xff] %vm318_vm1, %v316_v24  ;;  %319 = vst.msk [vmem:[%s483_s27] sm:$0xff] %vm318_vm1, %v310_v25  ;;  %v314_v28 = vsel %vm298_vm5, %v280_v15, %v306_v22  ;;  %v283_v30 = vadd.f32 %v392_v5, %v282_v23  ;;  %v313_v31 = vsel %vm297_vm6, %v275_v16, %v305_v26 }
  0xee   : > { %323 = vst.msk [vmem:[%s483_s27 + $0x20] sm:$0xff] %vm318_vm1, %v314_v28  ;;  %vm301_vm7 = vcmp.gt.f32.partialorder %v291_v27, 0.0  ;;  %v309_v32 = vmul.f32 0.1, %v291_v27  ;;  %322 = vst.msk [vmem:[%s483_s27 + $0x18] sm:$0xff] %vm318_vm1, %v313_v31  ;;  %vm295_vm8 = vcmp.gt.f32.partialorder %v267_v29, 0.0 }
  0xef   : > { %v303_v33 = vmul.f32 0.1, %v267_v29  ;;  %vm299_vm9 = vcmp.gt.f32.partialorder %v283_v30, 0.0  ;;  %v307_v34 = vmul.f32 0.1, %v283_v30 }
  0xf0   : > { %v317_v35 = vsel %vm301_vm7, %v291_v27, %v309_v32 }
  0xf1   : > { %326 = vst.msk [vmem:[%s483_s27 + $0x38] sm:$0xff] %vm318_vm1, %v317_v35  ;;  %v311_v36 = vsel %vm295_vm8, %v267_v29, %v303_v33  ;;  %v315_v37 = vsel %vm299_vm9, %v283_v30, %v307_v34 }
  0xf2   : > { %320 = vst.msk [vmem:[%s483_s27 + $0x8] sm:$0xff] %vm318_vm1, %v311_v36  ;;  %324 = vst.msk [vmem:[%s483_s27 + $0x28] sm:$0xff] %vm318_vm1, %v315_v37 }
  0xf3 PF: > { %s13_s12 = sadd.s32 1, %s441_s12  }
  0xf4   : > { %p10_p5 = scmp.ge.s32.totalorder %s13_s12, 4  }
  0xf6   :  { %12 = sbr.rel (!%p10_p5) target bundleno = 1 (0x1), region = 62 }

// kernel: _lambda_.7
= control target key start
LH: loop header
LB: loop body
LE: loop exit
PB: predicated region body
PF: predicated region fallthrough
CT: control target
= control target key end

     0   :  { %s2256_s21 = smov 0   ;;  %s2559_s0 = inlined_call_operand.vmem [shape: bf16[2,10,10,8], index: 0, kind: input, shape index: {}]   ;;  %s2560_s1 = inlined_call_operand.vmem [shape: bf16[2,10,9,8], index: 1, kind: input, shape index: {}]   ;;  %s2561_s2 = inlined_call_operand.vmem [shape: bf16[2,9,10,8], index: 2, kind: input, shape index: {}]   ;;  %s2562_s3 = inlined_call_operand.vmem [shape: bf16[2,9,9,8], index: 3, kind: input, shape index: {}]   ;;  %s2563_s4 = inlined_call_operand.vmem [shape: bf16[9,8,16], index: 4, kind: input, shape index: {}]   ;;  %s2564_s5 = inlined_call_operand.vmem [shape: f32[1,16], index: 5, kind: input, shape index: {}]   ;;  %s2565_s6 = inlined_call_operand.vmem [shape: f32[128,16], index: 6, kind: output, shape index: {}]  }
   0x1 LB: > { %s2262_s22 = sadd.s32 4294967295, %s2219_s21   ;;  %p1846_p0 = scmp.ge.s32.totalorder %s2219_s21, 1  ;;  %s2219_s21 = sphi %s2256_s21, %s16_s21  }
   0x2   : > { %p242_p1 = scmp.lt.s32.totalorder %s2219_s21, 3 }
   0x4   : > { %p243_p2 = pnand %p1846_p0, %p242_p1 }
   0x5   : > { %v1853_v0 = vld [vmem:[%s2563_s4 + $0x4] sm:$0xf] (!%p243_p2)  ;;  %vm367_vm0 = vcmask (!%p243_p2), 1043456   ;;  %v2272_v1 = vld [vmem:[%s2563_s4 + $0x10] sm:$0xf] (!%p243_p2)  ;;  %p287_p3 = scmp.lt.s32.totalorder (!%p243_p2), %s2262_s22, 1 }
   0x6   : > { %246 = sbr.rel (%p243_p2) target bundleno = 318 (0x13e), region = 44  ;;  %2169 = vmatprep.subr.msk.bf16.mxu1 (!%p243_p2), %vm367_vm0, %v1853_v0  ;;  %2173 = vmatprep.subr.msk.bf16.mxu0 (!%p243_p2), %vm367_vm0, %v2272_v1  ;;  %v369_v2 = vsel (!%p243_p2), %vm367_vm0, %v1853_v0, 0  ;;  %v2281_v3 = vsel (!%p243_p2), %vm367_vm0, %v2272_v1, 0  ;;  %v323_v4 = vld [vmem:[%s2563_s4] sm:$0xf] (!%p243_p2)  ;;  %vm354_vm1 = vcmask (!%p243_p2), 64512  }
   0x7   : > { %2014 = vmatpush3.bf16.msra.mxu1 (!%p243_p2), %v369_v2  ;;  %2054 = vmatpush3.bf16.msra.mxu0 (!%p243_p2), %v2281_v3  ;;  %v1897_v5 = vld [vmem:[%s2563_s4 + $0x14] sm:$0xf] (!%p243_p2)  ;;  %v469_v6 = vsel (!%p243_p2), %vm367_vm0, %v323_v4, 0  ;;  %v1914_v9 = vld [vmem:[%s2563_s4 + $0x18] sm:$0xf] (!%p243_p2)  ;;  %s1851_s10 = sshll.u32 (!%p243_p2), %s2262_s22, 3 }
   0x8   : > { %2170 = vmatprep.subr.msk.bf16.mxu1 (!%p243_p2), %vm367_vm0, %v323_v4  ;;  %2175 = vmatprep.subr.msk.bf16.mxu0 (!%p243_p2), %vm367_vm0, %v1897_v5  ;;  %v1160_v7 = vsel (!%p243_p2), %vm367_vm0, %v1897_v5, 0  ;;  %v1870_v10 = vld [vmem:[%s2563_s4 + $0x8] sm:$0xf] (!%p243_p2)  ;;  %vm552_vm2 = vsmask.f32 (!%p243_p2), 3328  ;;  %v2332_v15 = vsel (!%p243_p2), %vm367_vm0, %v1914_v9, 0 }
   0x9   : > { %vm553_vm3 = vsmask.f32 (!%p243_p2), 7440  ;;  %v2335_v16 = vsel (!%p243_p2), %vm367_vm0, %v1870_v10, 0  ;;  %p308_p4 = scmp.lt.s32.totalorder (!%p243_p2), %s1851_s10, 15  ;;  %vm1741_vm6 = vcmask (!%p243_p2), 130048  }
   0xa   : > { %vm2359_vm4 = vmor (!%p243_p2), %vm552_vm2, %vm553_vm3 }
   0xd   : > { %s2288_s29 = scalar_select %p287_p3, %s2262_s22, 1 }
   0xe   : > { %s2569_s10 = smov (!%p308_p4, %s1851_s10), 15 }
   0xf   : > { %s2179_s8 = smul.u32 80, %s2288_s29  ;;  %s1852_s13 = sshll.u32 %s2569_s10, 3 }
  0x10   : > { %s2180_s9 = smul.u32 72, %s2288_s29 }
  0x11   : > { %s2302_s12 = scalar_lea.vmem %s2560_s1, %s2179_s8  ;;  %s2353_s27 = scalar_lea.vmem %s2559_s0, %s2179_s8 }
  0x12   : > { %v2189_v8 = vld [vmem:[%s2302_s12] ss:$8 sps:$4 sm:$0xff]   ;;  %s2310_s15 = scalar_lea.vmem %s2562_s3, %s2180_s9  ;;  %v2191_v12 = vld [vmem:[%s2302_s12 + $0x10] ss:$8 sps:$4 sm:$0xff]   ;;  %s2324_s24 = scalar_lea.vmem %s2561_s2, %s2180_s9 }
  0x13   : > { %v2190_v11 = vld [vmem:[%s2310_s15] ss:$8 sps:$4 sm:$0xff]   ;;  %2015 = vmatprep.mubr.msk.bf16.mxu1 %vm354_vm1, %v2189_v8  ;;  %v2192_v13 = vld [vmem:[%s2310_s15 + $0x10] ss:$8 sps:$4 sm:$0xff]   ;;  %v1006_v19 = vld [vmem:[%s2324_s24 + $0x4] sm:$0x1] }
  0x14   : > { %2055 = vmatprep.mubr.msk.bf16.mxu0 %vm354_vm1, %v2190_v11  ;;  %2016 = vmatmul.mubr.msk.bf16.vlgmr.msra.gmra.mrb[0].mxu1 %vm354_vm1, %v2191_v12  ;;  %v2193_v14 = vld [vmem:[%s2302_s12 + $0x20] ss:$8 sps:$4 sm:$0xff]   ;;  %v2194_v17 = vld [vmem:[%s2302_s12 + $0x30] ss:$8 sps:$4 sm:$0xff]   ;;  %v1008_v21 = vld [vmem:[%s2324_s24 + $0xc] sm:$0x1] }
  0x15   : > { %2024 = vmatpush3.bf16.msra.mxu1 %v469_v6  ;;  %2056 = vmatmul.mubr.msk.bf16.vlgmr.msra.gmra.mrb[0].mxu0 %vm354_vm1, %v2192_v13  ;;  %v1005_v18 = vld [vmem:[%s2324_s24] sm:$0xf]  ;;  %v1007_v20 = vld [vmem:[%s2324_s24 + $0x8] sm:$0xf]  ;;  %v1031_v24 = vshll.u32 %v1006_v19, 16  ;;  %v1045_v27 = vshll.u32 %v1008_v21, 16 }
  0x16   : > { %2064 = vmatpush3.bf16.msra.mxu0 %v1160_v7  ;;  %2019 = vmatprep.mubr.msk.bf16.mxu1 %vm354_vm1, %v2193_v14  ;;  %v1022_v22 = vshrl.u32 %v1005_v18, 16  ;;  %v1025_v23 = vshll.u32 %v1005_v18, 16  ;;  %v1036_v25 = vshrl.u32 %v1007_v20, 16  ;;  %v1039_v26 = vshll.u32 %v1007_v20, 16  ;;  %v1009_v28 = vld [vmem:[%s2324_s24 + $0x10] sm:$0xf] }
  0x17   : > { %2176 = vmatprep.subr.msk.bf16.mxu0 %vm367_vm0, %v1914_v9  ;;  %2171 = vmatprep.subr.msk.bf16.mxu1 %vm367_vm0, %v1870_v10  ;;  %v1010_v29 = vld [vmem:[%s2324_s24 + $0x14] sm:$0x1]  ;;  %v1033_v32 = vrot.slane %v1031_v24, 5  ;;  %v1011_v34 = vld [vmem:[%s2324_s24 + $0x18] sm:$0xf]  ;;  %v1047_v36 = vrot.slane %v1045_v27, 5 }
  0x18   : > { %v1024_v30 = vrot.slane %v1022_v22, 4  ;;  %v1027_v31 = vrot.slane %v1025_v23, 5  ;;  %v1038_v33 = vrot.slane %v1036_v25, 4  ;;  %v1041_v35 = vrot.slane %v1039_v26, 5  ;;  %v1012_v37 = vld [vmem:[%s2324_s24 + $0x1c] sm:$0x1] }
  0x19   : > { %v1050_v38 = vshrl.u32 %v1009_v28, 16  ;;  %v1053_v39 = vshll.u32 %v1009_v28, 16  ;;  %v1059_v41 = vshll.u32 %v1010_v29, 16  ;;  %v1064_v42 = vshrl.u32 %v1011_v34, 16  ;;  %v2195_v53 = vld [vmem:[%s2353_s27] ss:$8 sps:$4 sm:$0xff]  }
  0x1a   : > { %v1028_v40 = vor.u32 %v1027_v31, %v1024_v30  ;;  %v1067_v43 = vshll.u32 %v1011_v34, 16  ;;  %v1042_v45 = vor.u32 %v1041_v35, %v1038_v33  ;;  %v1073_v48 = vshll.u32 %v1012_v37, 16  ;;  %v2196_v59 = vld [vmem:[%s2353_s27 + $0x10] ss:$8 sps:$4 sm:$0xff]   ;;  %v1013_v60 = vld [vmem:[%s2324_s24 + $0x20] sm:$0xf] }
  0x1b   : > { %v1052_v46 = vrot.slane %v1050_v38, 4  ;;  %v1055_v47 = vrot.slane %v1053_v39, 5  ;;  %v1061_v50 = vrot.slane %v1059_v41, 5  ;;  %v1066_v51 = vrot.slane %v1064_v42, 4  ;;  %v1014_v61 = vld [vmem:[%s2324_s24 + $0x24] sm:$0x1] }
  0x1c   : > { %2020 = vmatmul.mubr.msk.bf16.gmra.mrb[4].mxu1 %vm354_vm1, %v2194_v17  ;;  %v1029_v49 = vrot.slane %v1028_v40, 4  ;;  %v1069_v52 = vrot.slane %v1067_v43, 5  ;;  %v1043_v54 = vrot.slane %v1042_v45, 4  ;;  %v1075_v56 = vrot.slane %v1073_v48, 5  ;;  %v1015_v0 = vld [vmem:[%s2324_s24 + $0x28] sm:$0xf] }
  0x1d   : > { %v1056_v55 = vor.u32 %v1055_v47, %v1052_v46  ;;  %2025 = vmatprep.mubr.msk.bf16.mxu1 %vm354_vm1, %v2195_v53  ;;  %v1016_v2 = vld [vmem:[%s2324_s24 + $0x2c] sm:$0x1]  ;;  %v1078_v4 = vshrl.u32 %v1013_v60, 16  ;;  %v1081_v7 = vshll.u32 %v1013_v60, 16  ;;  %v1087_v8 = vshll.u32 %v1014_v61, 16 }
  0x1e   : > { %v1034_v57 = vsel %vm2359_vm4, %v1029_v49, %v1033_v32  ;;  %v1070_v58 = vor.u32 %v1069_v52, %v1066_v51  ;;  %v1048_v62 = vsel %vm2359_vm4, %v1043_v54, %v1047_v36  ;;  %v1017_v9 = vld [vmem:[%s2324_s24 + $0x30] sm:$0xf]  ;;  %v2378_v10 = vld [vmem:[%s2563_s4 + $0xc] sm:$0xf]  ;;  %v1092_v13 = vshrl.u32 %v1015_v0, 16 }
  0x1f   : > { %v1057_v63 = vrot.slane %v1056_v55, 4  ;;  %v1898_v5 = vcombine.low %v1034_v57, %v1048_v62  ;;  %v1080_v12 = vrot.slane %v1078_v4, 4  ;;  %v1095_v14 = vshll.u32 %v1015_v0, 16  ;;  %v1018_v17 = vld [vmem:[%s2324_s24 + $0x34] sm:$0x1] }
  0x20   : > { %v1071_v6 = vrot.slane %v1070_v58, 4  ;;  %v1083_v19 = vrot.slane %v1081_v7, 5  ;;  %v1089_v20 = vrot.slane %v1087_v8, 5  ;;  %v1101_v21 = vshll.u32 %v1016_v2, 16  ;;  %v1019_v22 = vld [vmem:[%s2324_s24 + $0x38] sm:$0xf] }
  0x21   : > { %v1062_v11 = vsel %vm2359_vm4, %v1057_v63, %v1061_v50  ;;  %2065 = vmatprep.mubr.msk.bf16.mxu0 %vm354_vm1, %v1898_v5  ;;  %v2390_v23 = vld [vmem:[%s2563_s4 + $0x1c] sm:$0xf]  ;;  %v1094_v25 = vrot.slane %v1092_v13, 4  ;;  %v1097_v26 = vrot.slane %v1095_v14, 5  ;;  %v1106_v28 = vshrl.u32 %v1017_v9, 16 }
  0x22   : > { %v1076_v18 = vsel %vm2359_vm4, %v1071_v6, %v1075_v56  ;;  %v1020_v27 = vld [vmem:[%s2324_s24 + $0x3c] sm:$0x1]  ;;  %v1084_v29 = vor.u32 %v1083_v19, %v1080_v12  ;;  %v1103_v30 = vrot.slane %v1101_v21, 5  ;;  %v1109_v31 = vshll.u32 %v1017_v9, 16  ;;  %v2199_v53 = vld [vmem:[%s2353_s27 + $0x8] ss:$8 sps:$4 sm:$0xff]  }
  0x23   : > { %v1899_v24 = vcombine.low %v1062_v11, %v1076_v18  ;;  %v1115_v32 = vshll.u32 %v1018_v17, 16  ;;  %v1098_v33 = vor.u32 %v1097_v26, %v1094_v25  ;;  %v1108_v34 = vrot.slane %v1106_v28, 4  ;;  %v536_v54 = vld [vmem:[%s2353_s27] sm:$0xf]  ;;  %v537_v56 = vld [vmem:[%s2353_s27 + $0x4] sm:$0x1] }
  0x24   : > { %2026 = vmatmul.mubr.msk.bf16.vlgmr.msra.gmra.mrb[0].mxu1 %vm354_vm1, %v2196_v59  ;;  %v1120_v35 = vshrl.u32 %v1019_v22, 16  ;;  %v1123_v36 = vshll.u32 %v1019_v22, 16  ;;  %v1085_v37 = vrot.slane %v1084_v29, 4  ;;  %v1111_v38 = vrot.slane %v1109_v31, 5  ;;  %v538_v57 = vld [vmem:[%s2353_s27 + $0x8] sm:$0xf] }
  0x25   : > { %2034 = vmatpush3.bf16.msra.mxu1 %v2335_v16  ;;  %2066 = vmatmul.mubr.msk.bf16.vlgmr.msra.gmra.mrb[0].mxu0 %vm354_vm1, %v1899_v24  ;;  %v1129_v39 = vshll.u32 %v1020_v27, 16  ;;  %v2197_v16 = vld [vmem:[%s2353_s27 + $0x20] ss:$8 sps:$4 sm:$0xff]   ;;  %v1099_v40 = vrot.slane %v1098_v33, 4  ;;  %v1117_v46 = vrot.slane %v1115_v32, 5  ;;  %v556_v60 = vshrl.u32 %v536_v54, 16 }
  0x26   : > { %2172 = vmatprep.subr.msk.bf16.mxu1 %vm367_vm0, %v2378_v10  ;;  %2074 = vmatpush3.bf16.msra.mxu0 %v2332_v15  ;;  %v1122_v41 = vrot.slane %v1120_v35, 4  ;;  %v1125_v42 = vrot.slane %v1123_v36, 5  ;;  %v1090_v43 = vsel %vm2359_vm4, %v1085_v37, %v1089_v20  ;;  %v1112_v45 = vor.u32 %v1111_v38, %v1108_v34  ;;  %v2198_v15 = vld [vmem:[%s2353_s27 + $0x30] ss:$8 sps:$4 sm:$0xff]   ;;  %v539_v58 = vld [vmem:[%s2353_s27 + $0xc] sm:$0x1] }
  0x27   : > { %2177 = vmatprep.subr.msk.bf16.mxu0 %vm367_vm0, %v2390_v23  ;;  %2029 = vmatprep.mubr.msk.bf16.mxu1 %vm354_vm1, %v2197_v16  ;;  %v1104_v47 = vsel %vm2359_vm4, %v1099_v40, %v1103_v30  ;;  %v1131_v49 = vrot.slane %v1129_v39, 5  ;;  %v559_v61 = vshll.u32 %v536_v54, 16  ;;  %v565_v62 = vshll.u32 %v537_v56, 16  ;;  %v540_v63 = vld [vmem:[%s2353_s27 + $0x10] sm:$0xf] }
  0x28   : > { %v1126_v48 = vor.u32 %v1125_v42, %v1122_v41  ;;  %v1900_v50 = vcombine.low %v1090_v43, %v1104_v47  ;;  %v1113_v51 = vrot.slane %v1112_v45, 4  ;;  %v570_v2 = vshrl.u32 %v538_v57, 16  ;;  %v541_v6 = vld [vmem:[%s2353_s27 + $0x14] sm:$0x1]  ;;  %v542_v11 = vld [vmem:[%s2353_s27 + $0x18] sm:$0xf] }
  0x29   : > { %v573_v4 = vshll.u32 %v538_v57, 16  ;;  %v579_v5 = vshll.u32 %v539_v58, 16  ;;  %v558_v7 = vrot.slane %v556_v60, 4  ;;  %v561_v8 = vrot.slane %v559_v61, 5  ;;  %v543_v18 = vld [vmem:[%s2353_s27 + $0x1c] sm:$0x1] }
  0x2a   : > { %v1127_v52 = vrot.slane %v1126_v48, 4  ;;  %2069 = vmatprep.mubr.msk.bf16.mxu0 %vm354_vm1, %v1900_v50  ;;  %v1118_v55 = vsel %vm2359_vm4, %v1113_v51, %v1117_v46  ;;  %v567_v9 = vrot.slane %v565_v62, 5  ;;  %v584_v12 = vshrl.u32 %v540_v63, 16  ;;  %v2200_v29 = vld [vmem:[%s2353_s27 + $0x18] ss:$8 sps:$4 sm:$0xff]  }
  0x2b   : > { %v572_v13 = vrot.slane %v570_v2, 4  ;;  %v575_v14 = vrot.slane %v573_v4, 5  ;;  %v581_v17 = vrot.slane %v579_v5, 5  ;;  %v587_v19 = vshll.u32 %v540_v63, 16  ;;  %v2201_v37 = vld [vmem:[%s2353_s27 + $0x28] ss:$8 sps:$4 sm:$0xff]  }
  0x2c   : > { %2030 = vmatmul.mubr.msk.bf16.gmra.mrb[4].mxu1 %vm354_vm1, %v2198_v15  ;;  %v1132_v59 = vsel %vm2359_vm4, %v1127_v52, %v1131_v49  ;;  %v562_v20 = vor.u32 %v561_v8, %v558_v7  ;;  %v586_v21 = vrot.slane %v584_v12, 4  ;;  %v593_v22 = vshll.u32 %v541_v6, 16  ;;  %v544_v40 = vld [vmem:[%s2353_s27 + $0x20] sm:$0xf]  ;;  %v545_v45 = vld [vmem:[%s2353_s27 + $0x24] sm:$0x1] }
  0x2d   : > { %v1901_v0 = vcombine.low %v1118_v55, %v1132_v59  ;;  %v598_v24 = vshrl.u32 %v542_v11, 16  ;;  %v576_v25 = vor.u32 %v575_v14, %v572_v13  ;;  %v589_v26 = vrot.slane %v587_v19, 5  ;;  %v546_v46 = vld [vmem:[%s2353_s27 + $0x28] sm:$0xf]  ;;  %v547_v48 = vld [vmem:[%s2353_s27 + $0x2c] sm:$0x1] }
  0x2e   : > { %v601_v27 = vshll.u32 %v542_v11, 16  ;;  %v607_v28 = vshll.u32 %v543_v18, 16  ;;  %v1398_v30 = vsel %vm367_vm0, %v2390_v23, 0  ;;  %v563_v31 = vrot.slane %v562_v20, 4  ;;  %v2437_v23 = vld [vmem:[%s2563_s4 + $0x20] sm:$0xf] }
  0x2f   : > { %2070 = vmatmul.mubr.msk.bf16.gmra.mrb[4].mxu0 %vm354_vm1, %v1901_v0  ;;  %v595_v32 = vrot.slane %v593_v22, 5  ;;  %v600_v33 = vrot.slane %v598_v24, 4  ;;  %v577_v34 = vrot.slane %v576_v25, 4  ;;  %v590_v35 = vor.u32 %v589_v26, %v586_v21  ;;  %v548_v55 = vld [vmem:[%s2353_s27 + $0x30] sm:$0xf] }
  0x30   : > { %2075 = vmatprep.mubr.msk.bf16.mxu0 %vm354_vm1, %v2199_v53  ;;  %v603_v36 = vrot.slane %v601_v27, 5  ;;  %v568_v38 = vsel %vm2359_vm4, %v563_v31, %v567_v9  ;;  %v609_v39 = vrot.slane %v607_v28, 5  ;;  %v812_v16 = vsel %vm367_vm0, %v2378_v10, 0  ;;  %v549_v60 = vld [vmem:[%s2353_s27 + $0x34] sm:$0x1] }
  0x31   : > { %v582_v41 = vsel %vm2359_vm4, %v577_v34, %v581_v17  ;;  %v591_v42 = vrot.slane %v590_v35, 4  ;;  %v612_v15 = vshrl.u32 %v544_v40, 16  ;;  %v615_v49 = vshll.u32 %v544_v40, 16  ;;  %v2202_v62 = vld [vmem:[%s2353_s27 + $0x38] ss:$8 sps:$4 sm:$0xff]  }
  0x32   : > { %v604_v43 = vor.u32 %v603_v36, %v600_v33  ;;  %v1871_v47 = vcombine.low %v568_v38, %v582_v41  ;;  %v621_v10 = vshll.u32 %v545_v45, 16  ;;  %v626_v50 = vshrl.u32 %v546_v46, 16  ;;  %v550_v0 = vld [vmem:[%s2353_s27 + $0x38] sm:$0xf]  ;;  %v551_v2 = vld [vmem:[%s2353_s27 + $0x3c] sm:$0x1] }
  0x33   : > { %v596_v51 = vsel %vm2359_vm4, %v591_v42, %v595_v32  ;;  %v614_v53 = vrot.slane %v612_v15, 4  ;;  %v629_v54 = vshll.u32 %v546_v46, 16  ;;  %v617_v56 = vrot.slane %v615_v49, 5  ;;  %v2203_v14 = vld [vmem:[%s2302_s12 + $0x8] ss:$8 sps:$4 sm:$0xff]  }
  0x34   : > { %v605_v52 = vrot.slane %v604_v43, 4  ;;  %2035 = vmatprep.mubr.msk.bf16.mxu1 %vm354_vm1, %v1871_v47  ;;  %v623_v57 = vrot.slane %v621_v10, 5  ;;  %v628_v58 = vrot.slane %v626_v50, 4  ;;  %v635_v59 = vshll.u32 %v547_v48, 16  ;;  %v2204_v35 = vld [vmem:[%s2302_s12 + $0x18] ss:$8 sps:$4 sm:$0xff]  }
  0x35   : > { %v631_v63 = vrot.slane %v629_v54, 5  ;;  %v640_v4 = vshrl.u32 %v548_v55, 16  ;;  %v618_v6 = vor.u32 %v617_v56, %v614_v53  ;;  %v643_v8 = vshll.u32 %v548_v55, 16  ;;  %v1941_v40 = vld [vmem:[%s2353_s27 + $0xc] sm:$0x1] }
  0x36   : > { %v610_v61 = vsel %vm2359_vm4, %v605_v52, %v609_v39  ;;  %v637_v7 = vrot.slane %v635_v59, 5  ;;  %v649_v12 = vshll.u32 %v549_v60, 16  ;;  %v654_v13 = vshrl.u32 %v550_v0, 16  ;;  %v2207_v39 = vld [vmem:[%s2302_s12 + $0x28] ss:$8 sps:$4 sm:$0xff]  }
  0x37   : > { %2076 = vmatmul.mubr.msk.bf16.vlgmr.msra.gmra.mrb[0].mxu0 %vm354_vm1, %v2200_v29  ;;  %v1872_v5 = vcombine.low %v596_v51, %v610_v61  ;;  %v632_v9 = vor.u32 %v631_v63, %v628_v58  ;;  %v642_v11 = vrot.slane %v640_v4, 4  ;;  %v619_v17 = vrot.slane %v618_v6, 4  ;;  %v1942_v41 = vld [vmem:[%s2353_s27 + $0x10] sm:$0xf]  ;;  %v1943_v42 = vld [vmem:[%s2353_s27 + $0x14] sm:$0x1] }
  0x38   : > { %2084 = vmatpush3.bf16.msra.mxu0 %v1398_v30  ;;  %2079 = vmatprep.mubr.msk.bf16.mxu0 %vm354_vm1, %v2201_v37  ;;  %v645_v18 = vrot.slane %v643_v8, 5  ;;  %v657_v19 = vshll.u32 %v550_v0, 16  ;;  %v663_v20 = vshll.u32 %v551_v2, 16  ;;  %v656_v22 = vrot.slane %v654_v13, 4  ;;  %v2205_v37 = vld [vmem:[%s2324_s24] ss:$8 sps:$4 sm:$0xff]  }
  0x39   : > { %2178 = vmatprep.subr.msk.bf16.mxu0 %vm367_vm0, %v2437_v23  ;;  %2036 = vmatmul.mubr.msk.bf16.vlgmr.msra.gmra.mrb[0].mxu1 %vm354_vm1, %v1872_v5  ;;  %v633_v21 = vrot.slane %v632_v9, 4  ;;  %v624_v24 = vsel %vm2359_vm4, %v619_v17, %v623_v57  ;;  %v651_v26 = vrot.slane %v649_v12, 5  ;;  %v1628_v34 = vsel %vm367_vm0, %v2437_v23, 0  ;;  %v1944_v48 = vld [vmem:[%s2353_s27 + $0x18] sm:$0xf] }
  0x3a   : > { %2044 = vmatpush3.bf16.msra.mxu1 %v812_v16  ;;  %v646_v25 = vor.u32 %v645_v18, %v642_v11  ;;  %v659_v27 = vrot.slane %v657_v19, 5  ;;  %v665_v32 = vrot.slane %v663_v20, 5  ;;  %v1940_v16 = vld [vmem:[%s2353_s27 + $0x8] sm:$0xf]  ;;  %v1499_v23 = vshll.u32 %v1941_v40, 16 }
  0x3b   : > { %2174 = vmatprep.subr.msk.bf16.mxu1 %vm367_vm0, %v2272_v1  ;;  %v638_v28 = vsel %vm2359_vm4, %v633_v21, %v637_v7  ;;  %v1490_v43 = vshrl.u32 %v1940_v16, 16  ;;  %v1493_v45 = vshll.u32 %v1940_v16, 16  ;;  %v1504_v46 = vshrl.u32 %v1942_v41, 16  ;;  %v1945_v50 = vld [vmem:[%s2353_s27 + $0x1c] sm:$0x1] }
  0x3c   : > { %v1873_v29 = vcombine.low %v624_v24, %v638_v28  ;;  %v647_v30 = vrot.slane %v646_v25, 4  ;;  %v660_v31 = vor.u32 %v659_v27, %v656_v22  ;;  %v1507_v15 = vshll.u32 %v1942_v41, 16  ;;  %v1946_v51 = vld [vmem:[%s2353_s27 + $0x20] sm:$0xf]  ;;  %v2206_v52 = vld [vmem:[%s2324_s24 + $0x10] ss:$8 sps:$4 sm:$0xff]  }
  0x3d   : > { %v1513_v47 = vshll.u32 %v1943_v42, 16  ;;  %v1492_v49 = vrot.slane %v1490_v43, 4  ;;  %v1495_v10 = vrot.slane %v1493_v45, 5  ;;  %v2208_v53 = vld [vmem:[%s2302_s12 + $0x38] ss:$8 sps:$4 sm:$0xff]   ;;  %v1501_v54 = vrot.slane %v1499_v23, 5 }
  0x3e   : > { %2039 = vmatprep.mubr.msk.bf16.mxu1 %vm354_vm1, %v1873_v29  ;;  %v652_v1 = vsel %vm2359_vm4, %v647_v30, %v651_v26  ;;  %v661_v33 = vrot.slane %v660_v31, 4  ;;  %v1506_v55 = vrot.slane %v1504_v46, 4  ;;  %v1509_v56 = vrot.slane %v1507_v15, 5  ;;  %v1947_v58 = vld [vmem:[%s2353_s27 + $0x24] sm:$0x1] }
  0x3f   : > { %2080 = vmatmul.mubr.msk.bf16.gmra.mrb[4].mxu0 %vm354_vm1, %v2202_v62  ;;  %v1515_v57 = vrot.slane %v1513_v47, 5  ;;  %v1496_v59 = vor.u32 %v1495_v10, %v1492_v49  ;;  %v1518_v60 = vshrl.u32 %v1944_v48, 16  ;;  %v1521_v61 = vshll.u32 %v1944_v48, 16  ;;  %v2209_v5 = vld [vmem:[%s2324_s24 + $0x20] ss:$8 sps:$4 sm:$0xff]  }
  0x40   : > { %2085 = vmatprep.mubr.msk.bf16.mxu0 %vm354_vm1, %v2203_v14  ;;  %v666_v36 = vsel %vm2359_vm4, %v661_v33, %v665_v32  ;;  %v1527_v62 = vshll.u32 %v1945_v50, 16  ;;  %v1510_v63 = vor.u32 %v1509_v56, %v1506_v55  ;;  %v1532_v0 = vshrl.u32 %v1946_v51, 16  ;;  %v1948_v17 = vld [vmem:[%s2353_s27 + $0x28] sm:$0xf]  ;;  %v1949_v20 = vld [vmem:[%s2353_s27 + $0x2c] sm:$0x1] }
  0x41   : > { %v1874_v38 = vcombine.low %v652_v1, %v666_v36  ;;  %v1535_v2 = vshll.u32 %v1946_v51, 16  ;;  %v1541_v4 = vshll.u32 %v1947_v58, 16  ;;  %v1497_v6 = vrot.slane %v1496_v59, 4  ;;  %v1950_v21 = vld [vmem:[%s2353_s27 + $0x30] sm:$0xf] }
  0x42   : > { %v1520_v7 = vrot.slane %v1518_v60, 4  ;;  %v1523_v8 = vrot.slane %v1521_v61, 5  ;;  %v1529_v9 = vrot.slane %v1527_v62, 5  ;;  %v1511_v11 = vrot.slane %v1510_v63, 4  ;;  %v1951_v22 = vld [vmem:[%s2353_s27 + $0x34] sm:$0x1] }
  0x43   : > { %2040 = vmatmul.mubr.msk.bf16.gmra.mrb[4].mxu1 %vm354_vm1, %v1874_v38  ;;  %v1534_v12 = vrot.slane %v1532_v0, 4  ;;  %v1537_v13 = vrot.slane %v1535_v2, 5  ;;  %v1543_v14 = vrot.slane %v1541_v4, 5  ;;  %v1502_v18 = vsel %vm2359_vm4, %v1497_v6, %v1501_v54  ;;  %v2210_v32 = vld [vmem:[%s2324_s24 + $0x30] ss:$8 sps:$4 sm:$0xff]  }
  0x44   : > { %2045 = vmatprep.mubr.msk.bf16.mxu1 %vm354_vm1, %v2205_v37  ;;  %v1524_v19 = vor.u32 %v1523_v8, %v1520_v7  ;;  %v1516_v24 = vsel %vm2359_vm4, %v1511_v11, %v1515_v57  ;;  %v1546_v26 = vshrl.u32 %v1948_v17, 16  ;;  %v1549_v27 = vshll.u32 %v1948_v17, 16  ;;  %v1952_v36 = vld [vmem:[%s2353_s27 + $0x38] sm:$0xf]  ;;  %v1953_v16 = vld [vmem:[%s2353_s27 + $0x3c] sm:$0x1] }
  0x45   : > { %v1538_v25 = vor.u32 %v1537_v13, %v1534_v12  ;;  %v1957_v28 = vcombine.low %v1502_v18, %v1516_v24  ;;  %v1555_v30 = vshll.u32 %v1949_v20, 16  ;;  %v1560_v31 = vshrl.u32 %v1950_v21, 16  ;;  %v1954_v43 = vld [vmem:[%s2353_s27 + $0x40] sm:$0xf]  ;;  %v1955_v45 = vld [vmem:[%s2353_s27 + $0x44] sm:$0x1] }
  0x46   : > { %v1525_v29 = vrot.slane %v1524_v19, 4  ;;  %v1548_v33 = vrot.slane %v1546_v26, 4  ;;  %v1574_v23 = vshrl.u32 %v1952_v36, 16  ;;  %v2211_v15 = vld [vmem:[%s2310_s15 + $0x20] ss:$8 sps:$4 sm:$0xff]   ;;  %v1577_v48 = vshll.u32 %v1952_v36, 16 }
  0x47   : > { %2086 = vmatmul.mubr.msk.bf16.vlgmr.msra.gmra.mrb[0].mxu0 %vm354_vm1, %v2204_v35  ;;  %v1539_v1 = vrot.slane %v1538_v25, 4  ;;  %v1563_v35 = vshll.u32 %v1950_v21, 16  ;;  %v1557_v37 = vrot.slane %v1555_v30, 5  ;;  %v1562_v38 = vrot.slane %v1560_v31, 4  ;;  %v2212_v8 = vld [vmem:[%s2310_s15 + $0x30] ss:$8 sps:$4 sm:$0xff]   ;;  %s2538_s15 = scalar_lea.vmem %s2565_s6, %s1852_s13 }
  0x48   : > { %2094 = vmatpush3.bf16.msra.mxu0 %v1628_v34  ;;  %2089 = vmatprep.mubr.msk.bf16.mxu0 %vm354_vm1, %v2207_v39  ;;  %v1551_v34 = vrot.slane %v1549_v27, 5  ;;  %v1569_v39 = vshll.u32 %v1951_v22, 16  ;;  %v1583_v49 = vshll.u32 %v1953_v16, 16  ;;  %v1576_v51 = vrot.slane %v1574_v23, 4  ;;  %v1965_v17 = vld [vmem:[%s2564_s5] ss:$0 sm:$0xff] }
  0x49   : > { %v1544_v40 = vsel %vm2359_vm4, %v1539_v1, %v1543_v14  ;;  %v1565_v42 = vrot.slane %v1563_v35, 5  ;;  %v1591_v54 = vshll.u32 %v1954_v43, 16  ;;  %v1597_v55 = vshll.u32 %v1955_v45, 16 }
  0x4a   : > { %v1552_v41 = vor.u32 %v1551_v34, %v1548_v33  ;;  %v1571_v47 = vrot.slane %v1569_v39, 5  ;;  %v1585_v60 = vrot.slane %v1583_v49, 5 }
  0x4b   : > { %2046 = vmatmul.mubr.msk.bf16.vlgmr.msra.gmra.mrb[0].mxu1 %vm354_vm1, %v2206_v52  ;;  %v1566_v50 = vor.u32 %v1565_v42, %v1562_v38  ;;  %v1588_v52 = vshrl.u32 %v1954_v43, 16  ;;  %v1593_v61 = vrot.slane %v1591_v54, 5  ;;  %v1599_v4 = vrot.slane %v1597_v55, 5 }
  0x4c   : > { %2104 = vmatpush3.bf16.msra.mxu1 %v2281_v3  ;;  %2049 = vmatprep.mubr.msk.bf16.mxu1 %vm354_vm1, %v2209_v5  ;;  %v1530_v3 = vsel %vm2359_vm4, %v1525_v29, %v1529_v9  ;;  %v1553_v10 = vrot.slane %v1552_v41, 4 }
  0x4d   : > { %v1958_v46 = vcombine.low %v1530_v3, %v1544_v40  ;;  %v1567_v57 = vrot.slane %v1566_v50, 4  ;;  %v1590_v58 = vrot.slane %v1588_v52, 4 }
  0x4e   : > { %v1558_v56 = vsel %vm2359_vm4, %v1553_v10, %v1557_v37 }
  0x4f   : > { %2090 = vmatmul.mubr.msk.bf16.gmra.mrb[4].mxu0 %vm354_vm1, %v2208_v53  ;;  %v1579_v53 = vrot.slane %v1577_v48, 5  ;;  %v1572_v62 = vsel %vm2359_vm4, %v1567_v57, %v1571_v47  ;;  %v1594_v2 = vor.u32 %v1593_v61, %v1590_v58 }
  0x50   : > { %2095 = vmatprep.mubr.msk.bf16.mxu0 %vm354_vm1, %v1957_v28  ;;  %v1959_v63 = vcombine.low %v1558_v56, %v1572_v62 }
  0x51   : > { %v1580_v59 = vor.u32 %v1579_v53, %v1576_v51  ;;  %v1595_v6 = vrot.slane %v1594_v2, 4 }
  0x53   : > { %2050 = vmatmul.mubr.msk.bf16.gmra.mrb[4].mxu1 %vm354_vm1, %v2210_v32  ;;  %v1581_v0 = vrot.slane %v1580_v59, 4  ;;  %v1600_v7 = vsel %vm2359_vm4, %v1595_v6, %v1599_v4 }
  0x54   : > { %2059 = vmatprep.mubr.msk.bf16.mxu1 %vm354_vm1, %v2211_v15 }
  0x55   : > { %v1586_v5 = vsel %vm2359_vm4, %v1581_v0, %v1585_v60 }
  0x56   : > { %v1960_v9 = vcombine.low %v1586_v5, %v1600_v7 }
  0x57   : > { %2096 = vmatmul.mubr.msk.bf16.vlgmr.msra.gmra.mrb[0].mxu0 %vm354_vm1, %v1958_v46 }
  0x58   : > { %2099 = vmatprep.mubr.msk.bf16.mxu0 %vm354_vm1, %v1959_v63 }
  0x5f   : > { %2100 = vmatmul.mubr.msk.bf16.gmra.mrb[4].mxu0 %vm354_vm1, %v1960_v9  ;;  %2060 = vmatmul.mubr.msk.bf16.vlgmr.msra.gmra.mrb[4].mxu1 %vm354_vm1, %v2212_v8 }
 0x11e   : > { %v2047_v11 = vpop.f32.mrb[0].mxu1 }
 0x11f   : > { %v848_v12 = vpop.f32.mrb[1].mxu1 }
 0x120   : > { %v2048_v13 = vpop.f32.mrb[2].mxu1 }
 0x121   : > { %v851_v14 = vpop.f32.mrb[3].mxu1 }
 0x12a   : > { %v2097_v18 = vpop.f32.mrb[0].mxu0 }
 0x12b   : > { %v2105_v44 = vadd.f32 %v2097_v18, %v2047_v11  ;;  %v1664_v19 = vpop.f32.mrb[1].mxu0 }
 0x12c   : > { %v2106_v20 = vadd.f32 %v1664_v19, %v848_v12  ;;  %v2098_v21 = vpop.f32.mrb[2].mxu0 }
 0x12d   : > { %v1711_v22 = vadd.f32 %v2105_v44, %v1965_v17  ;;  %v2107_v24 = vadd.f32 %v2098_v21, %v2048_v13  ;;  %v1667_v25 = vpop.f32.mrb[3].mxu0 }
 0x12e   : > { %v1709_v26 = vadd.f32 %v2106_v20, %v1965_v17  ;;  %v2108_v27 = vadd.f32 %v1667_v25, %v851_v14 }
 0x12f   : > { %vm1719_vm5 = vcmp.gt.f32.partialorder %v1711_v22, 0.0  ;;  %v1727_v28 = vmul.f32 0.1, %v1711_v22  ;;  %v1712_v29 = vadd.f32 %v2107_v24, %v1965_v17 }
 0x130   : > { %vm1717_vm7 = vcmp.gt.f32.partialorder %v1709_v26, 0.0  ;;  %v1725_v30 = vmul.f32 0.1, %v1709_v26  ;;  %v1710_v31 = vadd.f32 %v2108_v27, %v1965_v17 }
 0x131   : > { %v1735_v32 = vsel %vm1719_vm5, %v1711_v22, %v1727_v28  ;;  %vm1720_vm8 = vcmp.gt.f32.partialorder %v1712_v29, 0.0  ;;  %v1728_v1 = vmul.f32 0.1, %v1712_v29 }
 0x132   : > { %1744 = vst.msk [vmem:[%s2538_s15 + $0x10] sm:$0xff] %vm1741_vm6, %v1735_v32  ;;  %v1733_v33 = vsel %vm1717_vm7, %v1709_v26, %v1725_v30  ;;  %vm1718_vm9 = vcmp.gt.f32.partialorder %v1710_v31, 0.0  ;;  %v1726_v34 = vmul.f32 0.1, %v1710_v31  ;;  %v2101_v3 = vpop.f32.mrb[4].mxu0  ;;  %v2061_v38 = vpop.f32.mrb[4].mxu1 }
 0x133   : > { %1742 = vst.msk [vmem:[%s2538_s15] sm:$0xff] %vm1741_vm6, %v1733_v33  ;;  %v1736_v35 = vsel %vm1720_vm8, %v1712_v29, %v1728_v1  ;;  %v1680_v37 = vpop.f32.mrb[5].mxu0  ;;  %v2109_v16 = vadd.f32 %v2101_v3, %v2061_v38  ;;  %v982_v40 = vpop.f32.mrb[5].mxu1 }
 0x134   : > { %1745 = vst.msk [vmem:[%s2538_s15 + $0x18] sm:$0xff] %vm1741_vm6, %v1736_v35  ;;  %v1734_v36 = vsel %vm1718_vm9, %v1710_v31, %v1726_v34  ;;  %v2102_v39 = vpop.f32.mrb[6].mxu0  ;;  %v2110_v42 = vadd.f32 %v1680_v37, %v982_v40  ;;  %v2062_v43 = vpop.f32.mrb[6].mxu1 }
 0x135   : > { %1743 = vst.msk [vmem:[%s2538_s15 + $0x8] sm:$0xff] %vm1741_vm6, %v1734_v36  ;;  %v1683_v41 = vpop.f32.mrb[7].mxu0  ;;  %v1715_v45 = vadd.f32 %v2109_v16, %v1965_v17  ;;  %v2111_v23 = vadd.f32 %v2102_v39, %v2062_v43  ;;  %v985_v46 = vpop.f32.mrb[7].mxu1 }
 0x136   : > { %v1713_v15 = vadd.f32 %v2110_v42, %v1965_v17  ;;  %v2112_v47 = vadd.f32 %v1683_v41, %v985_v46 }
 0x137   : > { %vm1723_vm10 = vcmp.gt.f32.partialorder %v1715_v45, 0.0  ;;  %v1731_v48 = vmul.f32 0.1, %v1715_v45  ;;  %v1716_v49 = vadd.f32 %v2111_v23, %v1965_v17 }
 0x138   : > { %vm1721_vm11 = vcmp.gt.f32.partialorder %v1713_v15, 0.0  ;;  %v1729_v10 = vmul.f32 0.1, %v1713_v15  ;;  %v1714_v50 = vadd.f32 %v2112_v47, %v1965_v17 }
 0x139   : > { %v1739_v51 = vsel %vm1723_vm10, %v1715_v45, %v1731_v48  ;;  %vm1724_vm12 = vcmp.gt.f32.partialorder %v1716_v49, 0.0  ;;  %v1732_v52 = vmul.f32 0.1, %v1716_v49 }
 0x13a   : > { %1748 = vst.msk [vmem:[%s2538_s15 + $0x30] sm:$0xff] %vm1741_vm6, %v1739_v51  ;;  %v1737_v53 = vsel %vm1721_vm11, %v1713_v15, %v1729_v10  ;;  %vm1722_vm13 = vcmp.gt.f32.partialorder %v1714_v50, 0.0  ;;  %v1730_v54 = vmul.f32 0.1, %v1714_v50 }
 0x13b   : > { %1746 = vst.msk [vmem:[%s2538_s15 + $0x20] sm:$0xff] %vm1741_vm6, %v1737_v53  ;;  %v1740_v55 = vsel %vm1724_vm12, %v1716_v49, %v1732_v52 }
 0x13c   : > { %1749 = vst.msk [vmem:[%s2538_s15 + $0x38] sm:$0xff] %vm1741_vm6, %v1740_v55  ;;  %v1738_v56 = vsel %vm1722_vm13, %v1714_v50, %v1730_v54 }
 0x13d   : > { %1747 = vst.msk [vmem:[%s2538_s15 + $0x28] sm:$0xff] %vm1741_vm6, %v1738_v56 }
 0x13e PF: > { %s16_s21 = sadd.s32 1, %s2219_s21  }
 0x13f   : > { %p13_p5 = scmp.ge.s32.totalorder %s16_s21, 4  }
 0x141   :  { %15 = sbr.rel (!%p13_p5) target bundleno = 1 (0x1), region = 93 }

// kernel: _lambda_.8
= control target key start
LH: loop header
LB: loop body
LE: loop exit
PB: predicated region body
PF: predicated region fallthrough
CT: control target
= control target key end

     0   :  { %s2269_s12 = smov 0   ;;  %s2779_s0 = inlined_call_operand.vmem [shape: bf16[2,10,10,16], index: 0, kind: input, shape index: {}]   ;;  %s2780_s1 = inlined_call_operand.vmem [shape: bf16[9,16,16], index: 1, kind: input, shape index: {}]   ;;  %s2781_s2 = inlined_call_operand.vmem [shape: f32[1,16], index: 2, kind: input, shape index: {}]   ;;  %s2782_s3 = inlined_call_operand.vmem [shape: f32[128,16], index: 3, kind: output, shape index: {}]  }
   0x1 LB: > { %s2275_s13 = sadd.s32 4294967295, %s2247_s12   ;;  %p1818_p0 = scmp.ge.s32.totalorder %s2247_s12, 1  ;;  %s2247_s12 = sphi %s2269_s12, %s13_s12  }
   0x2   : > { %p137_p1 = scmp.lt.s32.totalorder %s2247_s12, 3 }
   0x4   : > { %p138_p2 = pnand %p1818_p0, %p137_p1 }
   0x5   : > { %v2220_v0 = vld [vmem:[%s2780_s1 + $0x8] sm:$0xff] (!%p138_p2)   ;;  %p161_p3 = scmp.lt.s32.totalorder (!%p138_p2), %s2275_s13, 1  ;;  %v2286_v1 = vld [vmem:[%s2780_s1 + $0x20] sm:$0xff] (!%p138_p2)   ;;  %vm192_vm0 = vsmask.f32 (!%p138_p2), 3328  ;;  %vm328_vm2 = vcmask (!%p138_p2), 130048  }
   0x6   : > { %141 = sbr.rel (%p138_p2) target bundleno = 339 (0x153), region = 32  ;;  %2055 = vmatprep.subr.bf16.mxu1 (!%p138_p2), %v2220_v0  ;;  %v2292_v2 = vld [vmem:[%s2780_s1] sm:$0xff] (!%p138_p2)   ;;  %2095 = vmatprep.subr.bf16.mxu0 (!%p138_p2), %v2286_v1  ;;  %v2300_v3 = vld [vmem:[%s2780_s1 + $0x28] sm:$0xff] (!%p138_p2)   ;;  %vm193_vm1 = vsmask.f32 (!%p138_p2), 7440  ;;  %vm533_vm4 = vcmask (!%p138_p2), 1042432  }
   0x7   : > { %2056 = vmatpush3.bf16.msra.mxu1 (!%p138_p2), %v2220_v0  ;;  %2096 = vmatpush3.bf16.msra.mxu0 (!%p138_p2), %v2286_v1  ;;  %vm2337_vm3 = vmor (!%p138_p2), %vm192_vm0, %vm193_vm1  ;;  %vm534_vm5 = vcmask (!%p138_p2), 1046532   ;;  %s1820_s10 = sshll.u32 (!%p138_p2), %s2275_s13, 3 }
   0x8   : > { %2065 = vmatprep.subr.bf16.mxu1 (!%p138_p2), %v2292_v2  ;;  %2105 = vmatprep.subr.bf16.mxu0 (!%p138_p2), %v2300_v3  ;;  %vm2447_vm6 = vmor (!%p138_p2), %vm533_vm4, %vm534_vm5  ;;  %p167_p4 = scmp.lt.s32.totalorder (!%p138_p2), %s1820_s10, 15 }
   0xd   : > { %s162_s18 = scalar_select %p161_p3, %s2275_s13, 1 }
   0xe   : > { %s2788_s10 = smov (!%p167_p4, %s1820_s10), 15 }
   0xf   : > { %s2211_s21 = smul.u32 80, %s162_s18  ;;  %s1821_s15 = sshll.u32 %s2788_s10, 3 }
  0x10   : > { %s2758_s17 = scalar_lea.vmem %s2782_s3, %s1821_s15 }
  0x11   : > { %s2305_s26 = scalar_lea.vmem %s2779_s0, %s2211_s21 }
  0x12   : > { %v2309_v4 = vld [vmem:[%s2305_s26] sm:$0xf]  ;;  %v2312_v5 = vld [vmem:[%s2305_s26 + $0x8] sm:$0xf]  ;;  %v2315_v6 = vld [vmem:[%s2305_s26 + $0x4] sm:$0x1] }
  0x13   : > { %v2318_v7 = vld [vmem:[%s2305_s26 + $0xc] sm:$0x1]  ;;  %v196_v8 = vshrl.u32 %v2309_v4, 16  ;;  %v199_v9 = vshll.u32 %v2309_v4, 16  ;;  %v205_v10 = vshll.u32 %v2315_v6, 16  ;;  %v210_v11 = vshrl.u32 %v2312_v5, 16 }
  0x14   : > { %v213_v12 = vshll.u32 %v2312_v5, 16  ;;  %v219_v13 = vshll.u32 %v2318_v7, 16  ;;  %v1880_v14 = vld [vmem:[%s2305_s26 + $0x8] sm:$0xf]  ;;  %v2328_v19 = vld [vmem:[%s2305_s26 + $0xc] sm:$0x1] }
  0x15   : > { %v198_v15 = vrot.slane %v196_v8, 4  ;;  %v201_v16 = vrot.slane %v199_v9, 5  ;;  %v207_v17 = vrot.slane %v205_v10, 5  ;;  %v212_v18 = vrot.slane %v210_v11, 4  ;;  %v1882_v22 = vld [vmem:[%s2305_s26 + $0x10] sm:$0xf] }
  0x16   : > { %v215_v20 = vrot.slane %v213_v12, 5  ;;  %v221_v21 = vrot.slane %v219_v13, 5  ;;  %v2332_v23 = vld [vmem:[%s2305_s26 + $0x14] sm:$0x1]  ;;  %v814_v25 = vshrl.u32 %v1880_v14, 16  ;;  %v817_v26 = vshll.u32 %v1880_v14, 16 }
  0x17   : > { %v202_v24 = vor.u32 %v201_v16, %v198_v15  ;;  %v823_v27 = vshll.u32 %v2328_v19, 16  ;;  %v828_v30 = vshrl.u32 %v1882_v22, 16  ;;  %v831_v31 = vshll.u32 %v1882_v22, 16  ;;  %v2343_v33 = vld [vmem:[%s2305_s26 + $0x10] sm:$0xf] }
  0x18   : > { %v216_v29 = vor.u32 %v215_v20, %v212_v18  ;;  %v837_v32 = vshll.u32 %v2332_v23, 16  ;;  %v538_v35 = vrot.slane %v2315_v6, 5  ;;  %v816_v36 = vrot.slane %v814_v25, 4  ;;  %v2347_v38 = vld [vmem:[%s2305_s26 + $0x18] sm:$0xf] }
  0x19   : > { %v203_v34 = vrot.slane %v202_v24, 4  ;;  %v819_v37 = vrot.slane %v817_v26, 5  ;;  %v542_v40 = vrot.slane %v2318_v7, 5  ;;  %v830_v41 = vrot.slane %v828_v30, 4  ;;  %v2351_v43 = vld [vmem:[%s2305_s26 + $0x14] sm:$0x1] }
  0x1a   : > { %v217_v39 = vrot.slane %v216_v29, 4  ;;  %v833_v42 = vrot.slane %v831_v31, 5  ;;  %v825_v46 = vrot.slane %v823_v27, 5  ;;  %v839_v47 = vrot.slane %v837_v32, 5  ;;  %v2358_v50 = vld [vmem:[%s2305_s26 + $0x1c] sm:$0x1] }
  0x1b   : > { %v208_v44 = vsel %vm2337_vm3, %v203_v34, %v207_v17  ;;  %v820_v45 = vor.u32 %v819_v37, %v816_v36  ;;  %v224_v51 = vshrl.u32 %v2343_v33, 16  ;;  %v227_v52 = vshll.u32 %v2343_v33, 16  ;;  %v1884_v61 = vld [vmem:[%s2305_s26 + $0x18] sm:$0xf]  ;;  %v2372_v9 = vld [vmem:[%s2305_s26 + $0x1c] sm:$0x1] }
  0x1c   : > { %v222_v48 = vsel %vm2337_vm3, %v217_v39, %v221_v21  ;;  %v834_v49 = vor.u32 %v833_v42, %v830_v41  ;;  %v233_v55 = vshll.u32 %v2351_v43, 16  ;;  %v238_v56 = vshrl.u32 %v2347_v38, 16  ;;  %v1886_v14 = vld [vmem:[%s2305_s26 + $0x20] sm:$0xf]  ;;  %v2378_v15 = vld [vmem:[%s2305_s26 + $0x24] sm:$0x1] }
  0x1d   : > { %v1824_v53 = vcombine.low %v208_v44, %v222_v48  ;;  %v821_v54 = vrot.slane %v820_v45, 4  ;;  %v226_v58 = vrot.slane %v224_v51, 4  ;;  %v229_v59 = vrot.slane %v227_v52, 5  ;;  %v2385_v31 = vld [vmem:[%s2305_s26 + $0x20] sm:$0xf] }
  0x1e   : > { %v835_v57 = vrot.slane %v834_v49, 4  ;;  %v241_v60 = vshll.u32 %v2347_v38, 16  ;;  %v1057_v63 = vrot.slane %v2328_v19, 5  ;;  %v240_v0 = vrot.slane %v238_v56, 4  ;;  %v2390_v39 = vld [vmem:[%s2305_s26 + $0x24] sm:$0x1] }
  0x1f   : > { %2057 = vmatprep.mubr.msk.bf16.mxu1 %vm328_vm2, %v1824_v53  ;;  %v826_v62 = vsel %vm2337_vm3, %v821_v54, %v825_v46  ;;  %v247_v8 = vshll.u32 %v2358_v50, 16  ;;  %v230_v11 = vor.u32 %v229_v59, %v226_v58  ;;  %v235_v12 = vrot.slane %v233_v55, 5  ;;  %v2394_v46 = vld [vmem:[%s2305_s26 + $0x28] sm:$0xf]  ;;  %v2400_v51 = vld [vmem:[%s2305_s26 + $0x2c] sm:$0x1] }
  0x20   : > { %v840_v10 = vsel %vm2337_vm3, %v835_v57, %v839_v47  ;;  %v243_v13 = vrot.slane %v241_v60, 5  ;;  %v1061_v17 = vrot.slane %v2332_v23, 5  ;;  %v842_v20 = vshrl.u32 %v1884_v61, 16  ;;  %v2406_v57 = vld [vmem:[%s2305_s26 + $0x30] sm:$0xf] }
  0x21   : > { %v1898_v16 = vcombine.low %v826_v62, %v840_v10  ;;  %v249_v18 = vrot.slane %v247_v8, 5  ;;  %v231_v21 = vrot.slane %v230_v11, 4  ;;  %v845_v24 = vshll.u32 %v1884_v61, 16  ;;  %v2411_v58 = vld [vmem:[%s2780_s1 + $0x10] sm:$0xff]  }
  0x22   : > { %v244_v22 = vor.u32 %v243_v13, %v240_v0  ;;  %v851_v25 = vshll.u32 %v2372_v9, 16  ;;  %v844_v26 = vrot.slane %v842_v20, 4  ;;  %v856_v27 = vshrl.u32 %v1886_v14, 16  ;;  %v2416_v0 = vld [vmem:[%s2305_s26 + $0x38] sm:$0xf] }
  0x23   : > { %2097 = vmatprep.mubr.msk.bf16.mxu0 %vm328_vm2, %v1898_v16  ;;  %v859_v29 = vshll.u32 %v1886_v14, 16  ;;  %v865_v30 = vshll.u32 %v2378_v15, 16  ;;  %v236_v32 = vsel %vm2337_vm3, %v231_v21, %v235_v12  ;;  %v847_v36 = vrot.slane %v845_v24, 5  ;;  %v2421_v13 = vld [vmem:[%s2305_s26 + $0x34] sm:$0x1] }
  0x24   : > { %v245_v34 = vrot.slane %v244_v22, 4  ;;  %v853_v37 = vrot.slane %v851_v25, 5  ;;  %v858_v41 = vrot.slane %v856_v27, 4  ;;  %v1065_v45 = vrot.slane %v2372_v9, 5  ;;  %v2427_v20 = vld [vmem:[%s2305_s26 + $0x3c] sm:$0x1] }
  0x25   : > { %v861_v42 = vrot.slane %v859_v29, 5  ;;  %v867_v44 = vrot.slane %v865_v30, 5  ;;  %v848_v48 = vor.u32 %v847_v36, %v844_v26  ;;  %v1069_v49 = vrot.slane %v2378_v15, 5  ;;  %v2433_v22 = vld [vmem:[%s2780_s1 + $0x30] sm:$0xff]   ;;  %v1907_v27 = vld [vmem:[%s2305_s26 + $0x8] sm:$0xe] }
  0x26   : > { %v250_v47 = vsel %vm2337_vm3, %v245_v34, %v249_v18  ;;  %v252_v52 = vshrl.u32 %v2385_v31, 16  ;;  %v255_v55 = vshll.u32 %v2385_v31, 16  ;;  %v261_v56 = vshll.u32 %v2390_v39, 16  ;;  %v1908_v29 = vld [vmem:[%s2305_s26 + $0x10] sm:$0xe] }
  0x27   : > { %v1825_v53 = vcombine.low %v236_v32, %v250_v47  ;;  %v862_v54 = vor.u32 %v861_v42, %v858_v41  ;;  %v849_v59 = vrot.slane %v848_v48, 4  ;;  %v266_v61 = vshrl.u32 %v2394_v46, 16  ;;  %v2007_v48 = vld [vmem:[%s2781_s2] ss:$0 sm:$0xff] }
  0x28   : > { %v254_v60 = vrot.slane %v252_v52, 4  ;;  %v269_v62 = vshll.u32 %v2394_v46, 16  ;;  %v257_v10 = vrot.slane %v255_v55, 5  ;;  %v263_v11 = vrot.slane %v261_v56, 5  ;;  %v1910_v52 = vld [vmem:[%s2305_s26 + $0x20] sm:$0xe] }
  0x29   : > { %2058 = vmatmul.mubr.msk.bf16.vlgmr.msra.gmra.mrb[0].mxu1 %vm328_vm2, %v1825_v53  ;;  %v863_v8 = vrot.slane %v862_v54, 4  ;;  %v275_v12 = vshll.u32 %v2400_v51, 16  ;;  %v854_v14 = vsel %vm2337_vm3, %v849_v59, %v853_v37  ;;  %v268_v16 = vrot.slane %v266_v61, 4  ;;  %v1909_v37 = vld [vmem:[%s2305_s26 + $0x18] sm:$0xe] }
  0x2a   : > { %2066 = vmatpush3.bf16.msra.mxu1 %v2292_v2  ;;  %v271_v18 = vrot.slane %v269_v62, 5  ;;  %v280_v21 = vshrl.u32 %v2406_v57, 16  ;;  %v258_v25 = vor.u32 %v257_v10, %v254_v60  ;;  %v283_v26 = vshll.u32 %v2406_v57, 16  ;;  %v1911_v59 = vld [vmem:[%s2305_s26 + $0x28] sm:$0xe] }
  0x2b   : > { %v868_v24 = vsel %vm2337_vm3, %v863_v8, %v867_v44  ;;  %v277_v2 = vrot.slane %v275_v12, 5  ;;  %2075 = vmatprep.subr.bf16.mxu1 %v2411_v58  ;;  %v289_v36 = vshll.u32 %v2421_v13, 16  ;;  %v294_v44 = vshrl.u32 %v2416_v0, 16  ;;  %v2459_v10 = vld [vmem:[%s2305_s26 + $0x2c] sm:$0x1] }
  0x2c   : > { %v1899_v30 = vcombine.low %v854_v14, %v868_v24  ;;  %v272_v32 = vor.u32 %v271_v18, %v268_v16  ;;  %v282_v34 = vrot.slane %v280_v21, 4  ;;  %v259_v41 = vrot.slane %v258_v25, 4  ;;  %v2469_v25 = vld [vmem:[%s2305_s26 + $0x34] sm:$0x1] }
  0x2d   : > { %v285_v42 = vrot.slane %v283_v26, 5  ;;  %v297_v47 = vshll.u32 %v2416_v0, 16  ;;  %v291_v54 = vrot.slane %v289_v36, 5  ;;  %v303_v55 = vshll.u32 %v2427_v20, 16  ;;  %v1912_v26 = vld [vmem:[%s2305_s26 + $0x30] sm:$0xe] }
  0x2e   : > { %2098 = vmatmul.mubr.msk.bf16.vlgmr.msra.gmra.mrb[0].mxu0 %vm328_vm2, %v1899_v30  ;;  %v273_v53 = vrot.slane %v272_v32, 4  ;;  %v1915_v56 = vrot.slane %v1907_v27, 9  ;;  %v264_v60 = vsel %vm2337_vm3, %v259_v41, %v263_v11  ;;  %v296_v62 = vrot.slane %v294_v44, 4  ;;  %v2477_v27 = vld [vmem:[%s2305_s26 + $0x3c] sm:$0x1] }
  0x2f   : > { %2106 = vmatpush3.bf16.msra.mxu0 %v2300_v3  ;;  %v286_v61 = vor.u32 %v285_v42, %v282_v34  ;;  %v299_v8 = vrot.slane %v297_v47, 5  ;;  %v305_v14 = vrot.slane %v303_v55, 5  ;;  %v1916_v3 = vrot.slane %v1908_v29, 9  ;;  %v2487_v34 = vld [vmem:[%s2305_s26 + $0x44] sm:$0x1] }
  0x30   : > { %v278_v12 = vsel %vm2337_vm3, %v273_v53, %v277_v2  ;;  %v1058_v16 = vsel %vm2447_vm6, %v1915_v56, %v1057_v63  ;;  %2115 = vmatprep.subr.bf16.mxu0 %v2433_v22  ;;  %v1917_v24 = vrot.slane %v1909_v37, 9  ;;  %v1918_v2 = vrot.slane %v1910_v52, 9  ;;  %v1914_v44 = vld [vmem:[%s2305_s26 + $0x40] sm:$0xe]  ;;  %v510_v55 = vld [vmem:[%s2305_s26 + $0x8] sm:$0xe] }
  0x31   : > { %v1826_v11 = vcombine.low %v264_v60, %v278_v12  ;;  %v287_v18 = vrot.slane %v286_v61, 4  ;;  %v300_v21 = vor.u32 %v299_v8, %v296_v62  ;;  %v1062_v19 = vsel %vm2447_vm6, %v1916_v3, %v1061_v17  ;;  %v1913_v17 = vld [vmem:[%s2305_s26 + $0x38] sm:$0xe]  ;;  %v509_v47 = vld [vmem:[%s2305_s26] sm:$0xe] }
  0x32   : > { %v1919_v63 = vrot.slane %v1911_v59, 9  ;;  %v1925_v32 = vcombine.low %v1058_v16, %v1062_v19  ;;  %v1066_v23 = vsel %vm2447_vm6, %v1917_v24, %v1065_v45  ;;  %v1070_v36 = vsel %vm2447_vm6, %v1918_v2, %v1069_v49  ;;  %v2512_v60 = vld [vmem:[%s2780_s1 + $0x38] sm:$0xff]   ;;  %v513_v8 = vld [vmem:[%s2305_s26 + $0x20] sm:$0xe]  ;;  %v514_v3 = vld [vmem:[%s2305_s26 + $0x28] sm:$0xe] }
  0x33   : > { %2061 = vmatprep.mubr.msk.bf16.mxu1 %vm328_vm2, %v1826_v11  ;;  %v292_v29 = vsel %vm2337_vm3, %v287_v18, %v291_v54  ;;  %v301_v30 = vrot.slane %v300_v21, 4  ;;  %v1073_v37 = vrot.slane %v2459_v10, 5  ;;  %v1920_v41 = vrot.slane %v1912_v26, 9  ;;  %v512_v62 = vld [vmem:[%s2305_s26 + $0x18] sm:$0xe] }
  0x34   : > { %v1077_v42 = vrot.slane %v2469_v25, 5  ;;  %2107 = vmatprep.mubr.msk.bf16.mxu0 %vm328_vm2, %v1925_v32  ;;  %v1926_v45 = vcombine.low %v1066_v23, %v1070_v36  ;;  %v1833_v15 = vcombine.low %v2309_v4, %v2312_v5  ;;  %v1921_v54 = vrot.slane %v1913_v17, 9  ;;  %v511_v4 = vld [vmem:[%s2305_s26 + $0x10] sm:$0xe]  ;;  %v2562_v32 = vld [vmem:[%s2305_s26 + $0x38] sm:$0xe] }
  0x35   : > { %v306_v9 = vsel %vm2337_vm3, %v301_v30, %v305_v14  ;;  %v1074_v52 = vsel %vm2447_vm6, %v1919_v63, %v1073_v37  ;;  %v1081_v59 = vrot.slane %v2477_v27, 5  ;;  %v1922_v5 = vrot.slane %v1914_v44, 9  ;;  %v1955_v63 = vld [vmem:[%s2305_s26 + $0x18] sm:$0xf]  ;;  %v2565_v23 = vld [vmem:[%s2305_s26 + $0x14] sm:$0x1] }
  0x36   : > { %v1827_v49 = vcombine.low %v292_v29, %v306_v9  ;;  %v1078_v53 = vsel %vm2447_vm6, %v1920_v41, %v1077_v42  ;;  %v1085_v61 = vrot.slane %v2487_v34, 5  ;;  %v546_v12 = vrot.slane %v2351_v43, 5  ;;  %v2574_v36 = vld [vmem:[%s2305_s26 + $0x1c] sm:$0x1]  ;;  %v1957_v42 = vld [vmem:[%s2305_s26 + $0x20] sm:$0xf] }
  0x37   : > { %v1927_v56 = vcombine.low %v1074_v52, %v1078_v53  ;;  %v1842_v14 = vrot.slane %v509_v47, 9  ;;  %v1843_v16 = vrot.slane %v510_v55, 9  ;;  %v550_v11 = vrot.slane %v2358_v50, 5  ;;  %v1959_v47 = vld [vmem:[%s2305_s26 + $0x28] sm:$0xf] }
  0x38   : > { %2062 = vmatmul.mubr.msk.bf16.gmra.mrb[4].mxu1 %vm328_vm2, %v1827_v49  ;;  %v1082_v18 = vsel %vm2447_vm6, %v1921_v54, %v1081_v59  ;;  %v1086_v21 = vsel %vm2447_vm6, %v1922_v5, %v1085_v61  ;;  %v1844_v24 = vrot.slane %v511_v4, 9  ;;  %v1845_v26 = vrot.slane %v512_v62, 9  ;;  %v2595_v53 = vld [vmem:[%s2305_s26 + $0x24] sm:$0x1]  ;;  %v2606_v5 = vld [vmem:[%s2305_s26 + $0x2c] sm:$0x1] }
  0x39   : > { %2067 = vmatprep.mubr.msk.bf16.mxu1 %vm328_vm2, %v1833_v15  ;;  %v2534_v43 = vsel %vm2447_vm6, %v1842_v14, %v538_v35  ;;  %v2540_v50 = vsel %vm2447_vm6, %v1843_v16, %v542_v40  ;;  %v1846_v19 = vrot.slane %v513_v8, 9  ;;  %v1834_v6 = vcombine.low %v2343_v33, %v2347_v38  ;;  %v2549_v35 = vld [vmem:[%s2780_s1 + $0x18] sm:$0xff]   ;;  %v2553_v40 = vld [vmem:[%s2305_s26 + $0x30] sm:$0xe]  ;;  %v2232_v8 = vld [vmem:[%s2305_s26 + $0x20] ss:$8 sps:$4 sm:$0xff]  }
  0x3a   : > { %2108 = vmatmul.mubr.msk.bf16.vlgmr.msra.gmra.mrb[0].mxu0 %vm328_vm2, %v1926_v45  ;;  %v554_v7 = vrot.slane %v2390_v39, 5  ;;  %v1847_v2 = vrot.slane %v514_v3, 9  ;;  %v1928_v29 = vcombine.low %v1082_v18, %v1086_v21  ;;  %v1835_v30 = vcombine.low %v2385_v31, %v2394_v46  ;;  %v2230_v38 = vld [vmem:[%s2305_s26 + $0x10] ss:$8 sps:$4 sm:$0xff]  }
  0x3b   : > { %2116 = vmatpush3.bf16.msra.mxu0 %v2433_v22  ;;  %2111 = vmatprep.mubr.msk.bf16.mxu0 %vm328_vm2, %v1927_v56  ;;  %v1953_v22 = vld [vmem:[%s2305_s26 + $0x10] sm:$0xf]  ;;  %v1836_v33 = vcombine.low %v2406_v57, %v2416_v0  ;;  %v1852_v39 = vcombine.low %v2534_v43, %v2540_v50  ;;  %v2571_v17 = vsel %vm2447_vm6, %v1844_v24, %v546_v12  ;;  %v558_v46 = vrot.slane %v2400_v51, 5 }
  0x3c   : > { %2125 = vmatprep.subr.bf16.mxu0 %v2512_v60  ;;  %v1333_v37 = vshrl.u32 %v1953_v22, 16  ;;  %v1336_v31 = vshll.u32 %v1953_v22, 16  ;;  %v1848_v57 = vrot.slane %v2553_v40, 9  ;;  %v562_v0 = vrot.slane %v2421_v13, 5  ;;  %v2617_v40 = vld [vmem:[%s2305_s26 + $0x34] sm:$0x1] }
  0x3d   : > { %v1347_v41 = vshrl.u32 %v1955_v63, 16  ;;  %v1849_v44 = vrot.slane %v2562_v32, 9  ;;  %v1342_v15 = vshll.u32 %v2565_v23, 16  ;;  %v2588_v51 = vsel %vm2447_vm6, %v1845_v26, %v550_v11  ;;  %v2234_v11 = vld [vmem:[%s2305_s26 + $0x30] ss:$8 sps:$4 sm:$0xff]  }
  0x3e   : > { %v1335_v9 = vrot.slane %v1333_v37, 4  ;;  %v1338_v45 = vrot.slane %v1336_v31, 5  ;;  %v2592_v13 = vsel %vm2447_vm6, %v1846_v19, %v554_v7  ;;  %v1350_v52 = vshll.u32 %v1955_v63, 16  ;;  %v1963_v63 = vld [vmem:[%s2305_s26 + $0x38] sm:$0xf] }
  0x3f   : > { %v1349_v49 = vrot.slane %v1347_v41, 4  ;;  %v1356_v54 = vshll.u32 %v2574_v36, 16  ;;  %v1361_v55 = vshrl.u32 %v1957_v42, 16  ;;  %v1364_v56 = vshll.u32 %v1957_v42, 16  ;;  %v2635_v37 = vld [vmem:[%s2305_s26 + $0x3c] sm:$0x1] }
  0x40   : > { %2068 = vmatmul.mubr.msk.bf16.vlgmr.msra.gmra.mrb[0].mxu1 %vm328_vm2, %v1834_v6  ;;  %v2603_v59 = vsel %vm2447_vm6, %v1847_v2, %v558_v46  ;;  %v1352_v4 = vrot.slane %v1350_v52, 5  ;;  %v1375_v61 = vshrl.u32 %v1959_v47, 16  ;;  %v1378_v62 = vshll.u32 %v1959_v47, 16  ;;  %v1961_v6 = vld [vmem:[%s2305_s26 + $0x30] sm:$0xf] }
  0x41   : > { %2076 = vmatpush3.bf16.msra.mxu1 %v2411_v58  ;;  %2071 = vmatprep.mubr.msk.bf16.mxu1 %vm328_vm2, %v1835_v30  ;;  %v1339_v58 = vor.u32 %v1338_v45, %v1335_v9  ;;  %v1344_v12 = vrot.slane %v1342_v15, 5  ;;  %v1363_v14 = vrot.slane %v1361_v55, 4  ;;  %v1366_v16 = vrot.slane %v1364_v56, 5  ;;  %v1965_v41 = vld [vmem:[%s2305_s26 + $0x40] sm:$0xf] }
  0x42   : > { %2112 = vmatmul.mubr.msk.bf16.gmra.mrb[4].mxu0 %vm328_vm2, %v1928_v29  ;;  %2085 = vmatprep.subr.bf16.mxu1 %v2549_v35  ;;  %v1370_v3 = vshll.u32 %v2595_v53, 16  ;;  %v1353_v21 = vor.u32 %v1352_v4, %v1349_v49  ;;  %v1377_v24 = vrot.slane %v1375_v61, 4  ;;  %v1380_v43 = vrot.slane %v1378_v62, 5  ;;  %v1967_v47 = vld [vmem:[%s2305_s26 + $0x48] sm:$0xf] }
  0x43   : > { %2117 = vmatprep.mubr.msk.bf16.mxu0 %vm328_vm2, %v2230_v38  ;;  %v1340_v18 = vrot.slane %v1339_v58, 4  ;;  %v566_v50 = vrot.slane %v2427_v20, 5  ;;  %v1358_v26 = vrot.slane %v1356_v54, 5  ;;  %v1367_v19 = vor.u32 %v1366_v16, %v1363_v14  ;;  %v2630_v38 = vld [vmem:[%s2780_s1 + $0x40] sm:$0xff]   ;;  %v2659_v62 = vld [vmem:[%s2305_s26 + $0x4c] sm:$0x1] }
  0x44   : > { %v1384_v22 = vshll.u32 %v2606_v5, 16  ;;  %v1853_v7 = vcombine.low %v2571_v17, %v2588_v51  ;;  %v1354_v2 = vrot.slane %v1353_v21, 4  ;;  %v1389_v29 = vshrl.u32 %v1961_v6, 16  ;;  %v2650_v52 = vld [vmem:[%s2305_s26 + $0x44] sm:$0x1] }
  0x45   : > { %v1854_v30 = vcombine.low %v2592_v13, %v2603_v59  ;;  %v2625_v20 = vsel %vm2447_vm6, %v1848_v57, %v562_v0  ;;  %v2632_v17 = vrot.slane %v1370_v3, 5  ;;  %v1392_v31 = vshll.u32 %v1961_v6, 16  ;;  %v2235_v58 = vld [vmem:[%s2305_s26 + $0x40] ss:$8 sps:$4 sm:$0xff]  }
  0x46   : > { %v1381_v46 = vor.u32 %v1380_v43, %v1377_v24  ;;  %v1391_v57 = vrot.slane %v1389_v29, 4  ;;  %v1403_v0 = vshrl.u32 %v1963_v63, 16  ;;  %v1359_v42 = vsel %vm2337_vm3, %v1354_v2, %v1358_v26 }
  0x47   : > { %v1368_v9 = vrot.slane %v1367_v19, 4  ;;  %v1394_v45 = vrot.slane %v1392_v31, 5  ;;  %v1398_v15 = vshll.u32 %v2617_v40, 16  ;;  %v1406_v13 = vshll.u32 %v1963_v63, 16  ;;  %v1980_v19 = vld [vmem:[%s2305_s26 + $0x10] sm:$0xe] }
  0x48   : > { %2072 = vmatmul.mubr.msk.bf16.gmra.mrb[4].mxu1 %vm328_vm2, %v1836_v33  ;;  %v1345_v33 = vsel %vm2337_vm3, %v1340_v18, %v1344_v12  ;;  %v1405_v51 = vrot.slane %v1403_v0, 4  ;;  %v1412_v49 = vshll.u32 %v2635_v37, 16  ;;  %v567_v54 = vsel %vm2447_vm6, %v1849_v44, %v566_v50  ;;  %v1890_v31 = vld [vmem:[%s2305_s26 + $0x30] sm:$0xf] }
  0x49   : > { %2077 = vmatprep.mubr.msk.bf16.mxu1 %vm328_vm2, %v1852_v39  ;;  %v1386_v39 = vrot.slane %v1384_v22, 5  ;;  %v1395_v55 = vor.u32 %v1394_v45, %v1391_v57  ;;  %v1420_v56 = vshll.u32 %v1965_v41, 16  ;;  %v1971_v59 = vcombine.low %v1345_v33, %v1359_v42  ;;  %v2237_v0 = vld [vmem:[%s2305_s26 + $0x8] ss:$8 sps:$4 sm:$0xff]  }
  0x4a   : > { %2118 = vmatmul.mubr.msk.bf16.vlgmr.msra.gmra.mrb[0].mxu0 %vm328_vm2, %v2232_v8  ;;  %v1382_v4 = vrot.slane %v1381_v46, 4  ;;  %v1408_v61 = vrot.slane %v1406_v13, 5  ;;  %v1431_v8 = vshrl.u32 %v1967_v47, 16  ;;  %v1400_v12 = vrot.slane %v1398_v15, 5 }
  0x4b   : > { %2126 = vmatpush3.bf16.msra.mxu0 %v2512_v60  ;;  %2121 = vmatprep.mubr.msk.bf16.mxu0 %vm328_vm2, %v2234_v11  ;;  %v1417_v60 = vshrl.u32 %v1965_v41, 16  ;;  %v1422_v16 = vrot.slane %v1420_v56, 5  ;;  %v1434_v3 = vshll.u32 %v1967_v47, 16  ;;  %v1396_v32 = vrot.slane %v1395_v55, 4 }
  0x4c   : > { %2135 = vmatprep.subr.bf16.mxu0 %v2630_v38  ;;  %v1409_v11 = vor.u32 %v1408_v61, %v1405_v51  ;;  %v1426_v44 = vshll.u32 %v2650_v52, 16  ;;  %v1433_v18 = vrot.slane %v1431_v8, 4  ;;  %v1414_v21 = vrot.slane %v1412_v49, 5 }
  0x4d   : > { %v1419_v14 = vrot.slane %v1417_v60, 4  ;;  %v1436_v24 = vrot.slane %v1434_v3, 5  ;;  %v1440_v43 = vshll.u32 %v2659_v62, 16  ;;  %v1855_v22 = vcombine.low %v2625_v20, %v567_v54  ;;  %v1888_v20 = vld [vmem:[%s2305_s26 + $0x28] sm:$0xf] }
  0x4e   : > { %v1410_v50 = vrot.slane %v1409_v11, 4  ;;  %v1576_v2 = vrot.slane %v2565_v23, 5  ;;  %v1387_v63 = vsel %vm2337_vm3, %v1382_v4, %v1386_v39  ;;  %v1401_v29 = vsel %vm2337_vm3, %v1396_v32, %v1400_v12  ;;  %v2238_v3 = vld [vmem:[%s2305_s26 + $0x18] ss:$8 sps:$4 sm:$0xff]  }
  0x4f   : > { %v1423_v26 = vor.u32 %v1422_v16, %v1419_v14  ;;  %v1437_v6 = vor.u32 %v1436_v24, %v1433_v18  ;;  %v1442_v46 = vrot.slane %v1440_v43, 5  ;;  %v1988_v23 = vrot.slane %v1980_v19, 9  ;;  %v1892_v14 = vld [vmem:[%s2305_s26 + $0x38] sm:$0xf]  ;;  %v1894_v16 = vld [vmem:[%s2305_s26 + $0x40] sm:$0xf] }
  0x50   : > { %2078 = vmatmul.mubr.msk.bf16.vlgmr.msra.gmra.mrb[0].mxu1 %vm328_vm2, %v1853_v7  ;;  %v1981_v7 = vld [vmem:[%s2305_s26 + $0x18] sm:$0xe]  ;;  %v1415_v33 = vsel %vm2337_vm3, %v1410_v50, %v1414_v21  ;;  %v1580_v57 = vrot.slane %v2574_v36, 5  ;;  %v873_v15 = vshll.u32 %v1888_v20, 16  ;;  %v884_v47 = vshrl.u32 %v1890_v31, 16 }
  0x51   : > { %2086 = vmatpush3.bf16.msra.mxu1 %v2549_v35  ;;  %2081 = vmatprep.mubr.msk.bf16.mxu1 %vm328_vm2, %v1854_v30  ;;  %v1373_v35 = vsel %vm2337_vm3, %v1368_v9, %v2632_v17  ;;  %v1428_v30 = vrot.slane %v1426_v44, 5  ;;  %v1424_v41 = vrot.slane %v1423_v26, 4  ;;  %v1438_v17 = vrot.slane %v1437_v6, 4  ;;  %v1982_v36 = vld [vmem:[%s2305_s26 + $0x20] sm:$0xe] }
  0x52   : > { %2122 = vmatmul.mubr.msk.bf16.gmra.mrb[4].mxu0 %vm328_vm2, %v2235_v58  ;;  %2145 = vmatprep.subr.bf16.mxu1 %v2286_v1  ;;  %v1989_v42 = vrot.slane %v1981_v7, 9  ;;  %v870_v9 = vshrl.u32 %v1888_v20, 16  ;;  %v1972_v45 = vcombine.low %v1373_v35, %v1387_v63  ;;  %v1973_v39 = vcombine.low %v1401_v29, %v1415_v33  ;;  %v1985_v50 = vld [vmem:[%s2305_s26 + $0x38] sm:$0xe]  ;;  %v2239_v26 = vld [vmem:[%s2305_s26 + $0x28] ss:$8 sps:$4 sm:$0xff]  }
  0x53   : > { %2127 = vmatprep.mubr.msk.bf16.mxu0 %vm328_vm2, %v1971_v59  ;;  %v887_v13 = vshll.u32 %v1890_v31, 16  ;;  %v1577_v49 = vsel %vm2447_vm6, %v1988_v23, %v1576_v2  ;;  %v875_v58 = vrot.slane %v873_v15, 5  ;;  %v886_v54 = vrot.slane %v884_v47, 4  ;;  %v1983_v59 = vld [vmem:[%s2305_s26 + $0x28] sm:$0xe] }
  0x54   : > { %v872_v51 = vrot.slane %v870_v9, 4  ;;  %v1429_v55 = vsel %vm2337_vm3, %v1424_v41, %v1428_v30  ;;  %v1443_v60 = vsel %vm2337_vm3, %v1438_v17, %v1442_v46  ;;  %v1581_v56 = vsel %vm2447_vm6, %v1989_v42, %v1580_v57  ;;  %v1986_v41 = vld [vmem:[%s2305_s26 + $0x40] sm:$0xe]  ;;  %v1987_v17 = vld [vmem:[%s2305_s26 + $0x48] sm:$0xe] }
  0x55   : > { %v889_v4 = vrot.slane %v887_v13, 5  ;;  %v879_v8 = vshll.u32 %v2459_v10, 16  ;;  %v893_v12 = vshll.u32 %v2469_v25, 16  ;;  %v1990_v32 = vrot.slane %v1982_v36, 9  ;;  %v1984_v10 = vld [vmem:[%s2305_s26 + $0x30] sm:$0xe] }
  0x56   : > { %v876_v61 = vor.u32 %v875_v58, %v872_v51  ;;  %v1584_v11 = vrot.slane %v2595_v53, 5  ;;  %v1974_v18 = vcombine.low %v1429_v55, %v1443_v60  ;;  %v1998_v21 = vcombine.low %v1577_v49, %v1581_v56 }
  0x57   : > { %v890_v44 = vor.u32 %v889_v4, %v886_v54  ;;  %v1991_v24 = vrot.slane %v1983_v59, 9  ;;  %v1588_v43 = vrot.slane %v2606_v5, 5  ;;  %v898_v25 = vshrl.u32 %v1892_v14, 16 }
  0x58   : > { %2082 = vmatmul.mubr.msk.bf16.gmra.mrb[4].mxu1 %vm328_vm2, %v1855_v22  ;;  %v901_v19 = vshll.u32 %v1892_v14, 16  ;;  %v912_v22 = vshrl.u32 %v1894_v16, 16  ;;  %v915_v6 = vshll.u32 %v1894_v16, 16  ;;  %v881_v7 = vrot.slane %v879_v8, 5 }
  0x59   : > { %2087 = vmatprep.mubr.msk.bf16.mxu1 %vm328_vm2, %v2237_v0  ;;  %v891_v2 = vrot.slane %v890_v44, 4  ;;  %v895_v35 = vrot.slane %v893_v12, 5  ;;  %v1992_v63 = vrot.slane %v1984_v10, 9  ;;  %v1592_v53 = vrot.slane %v2617_v40, 5  ;;  %v2240_v0 = vld [vmem:[%s2305_s26 + $0x38] ss:$8 sps:$4 sm:$0xff]  }
  0x5a   : > { %2128 = vmatmul.mubr.msk.bf16.vlgmr.msra.gmra.mrb[0].mxu0 %vm328_vm2, %v1972_v45  ;;  %v1993_v29 = vrot.slane %v1985_v50, 9  ;;  %v1596_v30 = vrot.slane %v2635_v37, 5  ;;  %v900_v5 = vrot.slane %v898_v25, 4  ;;  %v903_v20 = vrot.slane %v901_v19, 5 }
  0x5b   : > { %2136 = vmatpush3.bf16.msra.mxu0 %v2630_v38  ;;  %2131 = vmatprep.mubr.msk.bf16.mxu0 %vm328_vm2, %v1973_v39  ;;  %v877_v38 = vrot.slane %v876_v61, 4  ;;  %v914_v31 = vrot.slane %v912_v22, 4  ;;  %v917_v33 = vrot.slane %v915_v6, 5  ;;  %v907_v46 = vshll.u32 %v2477_v27, 16 }
  0x5c   : > { %v896_v37 = vsel %vm2337_vm3, %v891_v2, %v895_v35  ;;  %v1589_v23 = vsel %vm2447_vm6, %v1991_v24, %v1588_v43  ;;  %v1593_v57 = vsel %vm2447_vm6, %v1992_v63, %v1592_v53  ;;  %v1597_v27 = vsel %vm2447_vm6, %v1993_v29, %v1596_v30 }
  0x5d   : > { %v882_v40 = vsel %vm2337_vm3, %v877_v38, %v881_v7  ;;  %v921_v42 = vshll.u32 %v2487_v34, 16  ;;  %v904_v45 = vor.u32 %v903_v20, %v900_v5  ;;  %v918_v15 = vor.u32 %v917_v33, %v914_v31 }
  0x5e   : > { %v1900_v9 = vcombine.low %v882_v40, %v896_v37  ;;  %v2000_v39 = vcombine.low %v1593_v57, %v1597_v27  ;;  %v1994_v51 = vrot.slane %v1986_v41, 9  ;;  %v1600_v13 = vrot.slane %v2650_v52, 5 }
  0x5f   : > { %v1995_v49 = vrot.slane %v1987_v17, 9  ;;  %v1604_v36 = vrot.slane %v2659_v62, 5  ;;  %v909_v58 = vrot.slane %v907_v46, 5  ;;  %v923_v54 = vrot.slane %v921_v42, 5 }
  0x60   : > { %2088 = vmatmul.mubr.msk.bf16.vlgmr.msra.gmra.mrb[0].mxu1 %vm328_vm2, %v2238_v3  ;;  %v905_v55 = vrot.slane %v904_v45, 4  ;;  %v919_v34 = vrot.slane %v918_v15, 4  ;;  %v1601_v60 = vsel %vm2447_vm6, %v1994_v51, %v1600_v13 }
  0x61   : > { %2146 = vmatpush3.bf16.msra.mxu1 %v2286_v1  ;;  %2091 = vmatprep.mubr.msk.bf16.mxu1 %vm328_vm2, %v2239_v26  ;;  %v1585_v1 = vsel %vm2447_vm6, %v1990_v32, %v1584_v11  ;;  %v1605_v52 = vsel %vm2447_vm6, %v1995_v49, %v1604_v36 }
  0x62   : > { %2132 = vmatmul.mubr.msk.bf16.gmra.mrb[4].mxu0 %vm328_vm2, %v1974_v18  ;;  %v1999_v47 = vcombine.low %v1585_v1, %v1589_v23  ;;  %v910_v62 = vsel %vm2337_vm3, %v905_v55, %v909_v58  ;;  %v924_v56 = vsel %vm2337_vm3, %v919_v34, %v923_v54  ;;  %v2001_v59 = vcombine.low %v1601_v60, %v1605_v52 }
  0x63   : > { %2137 = vmatprep.mubr.msk.bf16.mxu0 %vm328_vm2, %v1998_v21  ;;  %v1901_v4 = vcombine.low %v910_v62, %v924_v56 }
  0x68   : > { %2092 = vmatmul.mubr.msk.bf16.gmra.mrb[4].mxu1 %vm328_vm2, %v2240_v0 }
  0x69   : > { %2101 = vmatprep.mubr.msk.bf16.mxu1 %vm328_vm2, %v1900_v9 }
  0x6a   : > { %2138 = vmatmul.mubr.msk.bf16.vlgmr.msra.gmra.mrb[0].mxu0 %vm328_vm2, %v1999_v47 }
  0x6b   : > { %2141 = vmatprep.mubr.msk.bf16.mxu0 %vm328_vm2, %v2000_v39 }
  0x72   : > { %2142 = vmatmul.mubr.msk.bf16.gmra.mrb[4].mxu0 %vm328_vm2, %v2001_v59 }
  0x74   : > { %2102 = vmatmul.mubr.msk.bf16.vlgmr.msra.gmra.mrb[4].mxu1 %vm328_vm2, %v1901_v4 }
 0x133   : > { %v2089_v61 = vpop.f32.mrb[0].mxu1 }
 0x134   : > { %v758_v8 = vpop.f32.mrb[1].mxu1 }
 0x135   : > { %v2090_v12 = vpop.f32.mrb[2].mxu1 }
 0x136   : > { %v761_v14 = vpop.f32.mrb[3].mxu1 }
 0x13d   : > { %v2139_v16 = vpop.f32.mrb[0].mxu0 }
 0x13e   : > { %v2147_v28 = vadd.f32 %v2139_v16, %v2089_v61  ;;  %v1673_v3 = vpop.f32.mrb[1].mxu0 }
 0x13f   : > { %v2148_v32 = vadd.f32 %v1673_v3, %v758_v8  ;;  %v2140_v11 = vpop.f32.mrb[2].mxu0 }
 0x140   : > { %v1720_v44 = vadd.f32 %v2147_v28, %v2007_v48  ;;  %v2149_v18 = vadd.f32 %v2140_v11, %v2090_v12  ;;  %v1676_v21 = vpop.f32.mrb[3].mxu0 }
 0x141   : > { %v1718_v24 = vadd.f32 %v2148_v32, %v2007_v48  ;;  %v2150_v43 = vadd.f32 %v1676_v21, %v761_v14 }
 0x142   : > { %vm1728_vm7 = vcmp.gt.f32.partialorder %v1720_v44, 0.0  ;;  %v1736_v10 = vmul.f32 0.1, %v1720_v44  ;;  %v1721_v50 = vadd.f32 %v2149_v18, %v2007_v48 }
 0x143   : > { %vm1726_vm8 = vcmp.gt.f32.partialorder %v1718_v24, 0.0  ;;  %v1734_v26 = vmul.f32 0.1, %v1718_v24  ;;  %v1719_v25 = vadd.f32 %v2150_v43, %v2007_v48 }
 0x144   : > { %v1744_v19 = vsel %vm1728_vm7, %v1720_v44, %v1736_v10  ;;  %vm1729_vm9 = vcmp.gt.f32.partialorder %v1721_v50, 0.0  ;;  %v1737_v22 = vmul.f32 0.1, %v1721_v50 }
 0x145   : > { %1752 = vst.msk [vmem:[%s2758_s17 + $0x10] sm:$0xff] %vm328_vm2, %v1744_v19  ;;  %v1742_v6 = vsel %vm1726_vm8, %v1718_v24, %v1734_v26  ;;  %vm1727_vm10 = vcmp.gt.f32.partialorder %v1719_v25, 0.0  ;;  %v1735_v38 = vmul.f32 0.1, %v1719_v25  ;;  %v2143_v7 = vpop.f32.mrb[4].mxu0 }
 0x146   : > { %1750 = vst.msk [vmem:[%s2758_s17] sm:$0xff] %vm328_vm2, %v1742_v6  ;;  %v1745_v2 = vsel %vm1729_vm9, %v1721_v50, %v1737_v22  ;;  %v1689_v35 = vpop.f32.mrb[5].mxu0 }
 0x147   : > { %1753 = vst.msk [vmem:[%s2758_s17 + $0x18] sm:$0xff] %vm328_vm2, %v1745_v2  ;;  %v1743_v63 = vsel %vm1727_vm10, %v1719_v25, %v1735_v38  ;;  %v2103_v53 = vpop.f32.mrb[4].mxu1  ;;  %v2144_v29 = vpop.f32.mrb[6].mxu0 }
 0x148   : > { %1751 = vst.msk [vmem:[%s2758_s17 + $0x8] sm:$0xff] %vm328_vm2, %v1743_v63  ;;  %v2151_v30 = vadd.f32 %v2143_v7, %v2103_v53  ;;  %v1008_v5 = vpop.f32.mrb[5].mxu1  ;;  %v1692_v20 = vpop.f32.mrb[7].mxu0 }
 0x149   : > { %v2152_v31 = vadd.f32 %v1689_v35, %v1008_v5  ;;  %v2104_v33 = vpop.f32.mrb[6].mxu1 }
 0x14a   : > { %v1724_v46 = vadd.f32 %v2151_v30, %v2007_v48  ;;  %v2153_v40 = vadd.f32 %v2144_v29, %v2104_v33  ;;  %v1011_v37 = vpop.f32.mrb[7].mxu1 }
 0x14b   : > { %v1722_v1 = vadd.f32 %v2152_v31, %v2007_v48  ;;  %v2154_v23 = vadd.f32 %v1692_v20, %v1011_v37 }
 0x14c   : > { %vm1732_vm11 = vcmp.gt.f32.partialorder %v1724_v46, 0.0  ;;  %v1740_v57 = vmul.f32 0.1, %v1724_v46  ;;  %v1725_v27 = vadd.f32 %v2153_v40, %v2007_v48 }
 0x14d   : > { %vm1730_vm12 = vcmp.gt.f32.partialorder %v1722_v1, 0.0  ;;  %v1738_v0 = vmul.f32 0.1, %v1722_v1  ;;  %v1723_v41 = vadd.f32 %v2154_v23, %v2007_v48 }
 0x14e   : > { %v1748_v17 = vsel %vm1732_vm11, %v1724_v46, %v1740_v57  ;;  %vm1733_vm13 = vcmp.gt.f32.partialorder %v1725_v27, 0.0  ;;  %v1741_v42 = vmul.f32 0.1, %v1725_v27 }
 0x14f   : > { %1756 = vst.msk [vmem:[%s2758_s17 + $0x30] sm:$0xff] %vm328_vm2, %v1748_v17  ;;  %v1746_v9 = vsel %vm1730_vm12, %v1722_v1, %v1738_v0  ;;  %vm1731_vm14 = vcmp.gt.f32.partialorder %v1723_v41, 0.0  ;;  %v1739_v45 = vmul.f32 0.1, %v1723_v41 }
 0x150   : > { %1754 = vst.msk [vmem:[%s2758_s17 + $0x20] sm:$0xff] %vm328_vm2, %v1746_v9  ;;  %v1749_v15 = vsel %vm1733_vm13, %v1725_v27, %v1741_v42 }
 0x151   : > { %1757 = vst.msk [vmem:[%s2758_s17 + $0x38] sm:$0xff] %vm328_vm2, %v1749_v15  ;;  %v1747_v47 = vsel %vm1731_vm14, %v1723_v41, %v1739_v45 }
 0x152   : > { %1755 = vst.msk [vmem:[%s2758_s17 + $0x28] sm:$0xff] %vm328_vm2, %v1747_v47 }
 0x153 PF: > { %s13_s12 = sadd.s32 1, %s2247_s12  }
 0x154   : > { %p10_p5 = scmp.ge.s32.totalorder %s13_s12, 4  }
 0x156   :  { %12 = sbr.rel (!%p10_p5) target bundleno = 1 (0x1), region = 72 }

// kernel: _lambda_.9
= control target key start
LH: loop header
LB: loop body
LE: loop exit
PB: predicated region body
PF: predicated region fallthrough
CT: control target
= control target key end

     0   :  { %s439_s12 = smov 0   ;;  %s470_s0 = inlined_call_operand.vmem [shape: bf16[2,8,8,16], index: 0, kind: input, shape index: {}]   ;;  %s471_s1 = inlined_call_operand.vmem [shape: bf16[1,16,18], index: 1, kind: input, shape index: {}]   ;;  %s472_s2 = inlined_call_operand.vmem [shape: f32[1,18], index: 2, kind: input, shape index: {}]   ;;  %s473_s3 = inlined_call_operand.vmem [shape: f32[128,18], index: 3, kind: output, shape index: {}]  }
   0x1 LB: > { %s359_s13 = sadd.s32 4294967295, %s417_s12   ;;  %p363_p0 = scmp.ge.s32.totalorder %s417_s12, 1  ;;  %s417_s12 = sphi %s439_s12, %s13_s12  }
   0x2   : > { %p137_p1 = scmp.lt.s32.totalorder %s417_s12, 3 }
   0x4   : > { %p138_p2 = pnand %p363_p0, %p137_p1 }
   0x5   : > { %v406_v0 = vld [vmem:[%s471_s1] sm:$0xff] (!%p138_p2)   ;;  %p161_p3 = scmp.lt.s32.totalorder (!%p138_p2), %s359_s13, 1  ;;  %vm216_vm0 = vcmask (!%p138_p2), 130048   ;;  %s366_s21 = sshll.u32 (!%p138_p2), %s359_s13, 3  ;;  %vm294_vm1 = vcmask (!%p138_p2), 146432  }
   0x6   : > { %141 = sbr.rel (%p138_p2) target bundleno = 237 (0xed), region = 32  ;;  %386 = vmatprep.subr.bf16.mxu0 (!%p138_p2), %v406_v0  ;;  %396 = vmatprep.subr.bf16.mxu1 (!%p138_p2), %v406_v0  ;;  %p167_p4 = scmp.lt.s32.totalorder (!%p138_p2), %s366_s21, 15  ;;  %v368_v5 = vld [vmem:[%s472_s2] ss:$0 sm:$0xff] (!%p138_p2) }
   0x7   : > { %387 = vmatpush3.bf16.msra.mxu0 (!%p138_p2), %v406_v0  ;;  %397 = vmatpush3.bf16.msra.mxu1 (!%p138_p2), %v406_v0 }
   0xd   : > { %s162_s16 = scalar_select %p161_p3, %s359_s13, 1 }
   0xe   : > { %s475_s21 = smov (!%p167_p4, %s366_s21), 15 }
   0xf   : > { %s380_s17 = sshll.u32 %s162_s16, 5  ;;  %s367_s22 = sshll.u32 %s475_s21, 3 }
  0x10   : > { %s165_s20 = scalar_lea.vmem %s470_s0, %s380_s17  ;;  %s170_s27 = scalar_lea.vmem %s473_s3, %s367_s22 }
  0x11   : > { %v407_v1 = vld [vmem:[%s165_s20] sm:$0xff]   ;;  %v408_v2 = vld [vmem:[%s165_s20 + $0x10] sm:$0xff]   ;;  %v409_v3 = vld [vmem:[%s165_s20 + $0x8] sm:$0xff]  }
  0x12   : > { %388 = vmatprep.mubr.msk.bf16.mxu0 %vm216_vm0, %v407_v1  ;;  %392 = vmatprep.mubr.msk.bf16.mxu1 %vm216_vm0, %v408_v2  ;;  %v410_v4 = vld [vmem:[%s165_s20 + $0x18] sm:$0xff]  }
  0x13   : > { %389 = vmatmul.mubr.msk.bf16.vlgmr.msra.gmra.mrb[0].mxu0 %vm216_vm0, %v409_v3  ;;  %393 = vmatmul.mubr.msk.bf16.vlgmr.msra.gmra.mrb[0].mxu1 %vm216_vm0, %v410_v4 }
  0xe6   : > { %v390_v6 = vpop.f32.mrb[0].mxu0  ;;  %v394_v8 = vpop.f32.mrb[0].mxu1 }
  0xe7   : > { %v272_v7 = vadd.f32 %v390_v6, %v368_v5  ;;  %v263_v9 = vpop.f32.mrb[1].mxu0  ;;  %v288_v10 = vadd.f32 %v394_v8, %v368_v5  ;;  %v279_v12 = vpop.f32.mrb[1].mxu1 }
  0xe8   : > { %v264_v11 = vadd.f32 %v368_v5, %v263_v9  ;;  %v391_v13 = vpop.f32.mrb[2].mxu0  ;;  %v280_v14 = vadd.f32 %v368_v5, %v279_v12  ;;  %v395_v16 = vpop.f32.mrb[2].mxu1 }
  0xe9   : > { %297 = vst.msk [vmem:[%s170_s27 + $0x10] sm:$0xff] %vm294_vm1, %v272_v7  ;;  %v275_v15 = vadd.f32 %v391_v13, %v368_v5  ;;  %v266_v17 = vpop.f32.mrb[3].mxu0  ;;  %301 = vst.msk [vmem:[%s170_s27 + $0x30] sm:$0xff] %vm294_vm1, %v288_v10  ;;  %v291_v18 = vadd.f32 %v395_v16, %v368_v5  ;;  %v282_v20 = vpop.f32.mrb[3].mxu1 }
  0xea   : > { %295 = vst.msk [vmem:[%s170_s27] sm:$0xff] %vm294_vm1, %v264_v11  ;;  %v267_v19 = vadd.f32 %v368_v5, %v266_v17  ;;  %299 = vst.msk [vmem:[%s170_s27 + $0x20] sm:$0xff] %vm294_vm1, %v280_v14  ;;  %v283_v21 = vadd.f32 %v368_v5, %v282_v20 }
  0xeb   : > { %298 = vst.msk [vmem:[%s170_s27 + $0x18] sm:$0xff] %vm294_vm1, %v275_v15  ;;  %302 = vst.msk [vmem:[%s170_s27 + $0x38] sm:$0xff] %vm294_vm1, %v291_v18 }
  0xec   : > { %296 = vst.msk [vmem:[%s170_s27 + $0x8] sm:$0xff] %vm294_vm1, %v267_v19  ;;  %300 = vst.msk [vmem:[%s170_s27 + $0x28] sm:$0xff] %vm294_vm1, %v283_v21 }
  0xed PF: > { %s13_s12 = sadd.s32 1, %s417_s12  }
  0xee   : > { %p10_p5 = scmp.ge.s32.totalorder %s13_s12, 4  }
  0xf0   :  { %12 = sbr.rel (!%p10_p5) target bundleno = 1 (0x1), region = 62 }

// kernel: _lambda_.11
= control target key start
LH: loop header
LB: loop body
LE: loop exit
PB: predicated region body
PF: predicated region fallthrough
CT: control target
= control target key end

     0   :  { %s812_s12 = smov 0   ;;  %s977_s0 = inlined_call_operand.vmem [shape: bf16[2,16,16,16], index: 0, kind: input, shape index: {}]   ;;  %s978_s1 = inlined_call_operand.vmem [shape: bf16[1,16,18], index: 1, kind: input, shape index: {}]   ;;  %s979_s2 = inlined_call_operand.vmem [shape: f32[1,18], index: 2, kind: input, shape index: {}]   ;;  %s980_s3 = inlined_call_operand.vmem [shape: f32[512,18], index: 3, kind: output, shape index: {}]  }
   0x1 LB: > { %s818_s13 = sadd.s32 4294967295, %s790_s12   ;;  %p645_p0 = scmp.ge.s32.totalorder %s790_s12, 1  ;;  %s790_s12 = sphi %s812_s12, %s13_s12  }
   0x2   : > { %p137_p1 = scmp.lt.s32.totalorder %s790_s12, 3 }
   0x4   : > { %p138_p2 = pnand %p645_p0, %p137_p1 }
   0x5   : > { %v766_v0 = vld [vmem:[%s978_s1] sm:$0xff] (!%p138_p2)   ;;  %p161_p3 = scmp.lt.s32.totalorder (!%p138_p2), %s818_s13, 1  ;;  %vm244_vm0 = vcmask (!%p138_p2), 130048   ;;  %s648_s23 = sshll.u32 (!%p138_p2), %s818_s13, 5  ;;  %vm366_vm1 = vcmask (!%p138_p2), 146432  }
   0x6   : > { %141 = sbr.rel (%p138_p2) target bundleno = 262 (0x106), region = 32  ;;  %v767_v1 = vld [vmem:[%s978_s1] sm:$0xff] (!%p138_p2)   ;;  %722 = vmatprep.subr.bf16.mxu0 (!%p138_p2), %v766_v0  ;;  %p167_p4 = scmp.lt.s32.totalorder (!%p138_p2), %s648_s23, 63 }
   0x7   : > { %740 = vmatprep.subr.bf16.mxu1 (!%p138_p2), %v767_v1  ;;  %723 = vmatpush3.bf16.msra.mxu0 (!%p138_p2), %v766_v0  ;;  %v871_v18 = vld [vmem:[%s979_s2] ss:$0 sm:$0xff] (!%p138_p2) }
   0x8   : > { %741 = vmatpush3.bf16.msra.mxu1 (!%p138_p2), %v767_v1 }
   0xd   : > { %s162_s18 = scalar_select %p161_p3, %s818_s13, 1 }
   0xe   : > { %s982_s23 = smov (!%p167_p4, %s648_s23), 63 }
   0xf   : > { %s703_s19 = sshll.u32 %s162_s18, 7  ;;  %s649_s24 = sshll.u32 %s982_s23, 3 }
  0x10   : > { %s833_s22 = scalar_lea.vmem %s977_s0, %s703_s19  ;;  %s876_s29 = scalar_lea.vmem %s980_s3, %s649_s24 }
  0x11   : > { %v768_v2 = vld [vmem:[%s833_s22] sm:$0xff]   ;;  %v770_v4 = vld [vmem:[%s833_s22 + $0x8] sm:$0xff]   ;;  %v772_v6 = vld [vmem:[%s833_s22 + $0x10] sm:$0xff]  }
  0x12   : > { %v769_v3 = vld [vmem:[%s833_s22 + $0x40] sm:$0xff]   ;;  %724 = vmatprep.mubr.msk.bf16.mxu0 %vm244_vm0, %v768_v2  ;;  %v771_v5 = vld [vmem:[%s833_s22 + $0x48] sm:$0xff]   ;;  %v773_v7 = vld [vmem:[%s833_s22 + $0x50] sm:$0xff]  }
  0x13   : > { %742 = vmatprep.mubr.msk.bf16.mxu1 %vm244_vm0, %v769_v3  ;;  %725 = vmatmul.mubr.msk.bf16.vlgmr.msra.gmra.mrb[0].mxu0 %vm244_vm0, %v770_v4  ;;  %v774_v8 = vld [vmem:[%s833_s22 + $0x18] sm:$0xff]   ;;  %v776_v10 = vld [vmem:[%s833_s22 + $0x20] sm:$0xff]   ;;  %v778_v12 = vld [vmem:[%s833_s22 + $0x28] sm:$0xff]  }
  0x14   : > { %743 = vmatmul.mubr.msk.bf16.vlgmr.msra.gmra.mrb[0].mxu1 %vm244_vm0, %v771_v5  ;;  %728 = vmatprep.mubr.msk.bf16.mxu0 %vm244_vm0, %v772_v6  ;;  %v775_v9 = vld [vmem:[%s833_s22 + $0x58] sm:$0xff]   ;;  %v777_v11 = vld [vmem:[%s833_s22 + $0x60] sm:$0xff]   ;;  %v779_v13 = vld [vmem:[%s833_s22 + $0x68] sm:$0xff]  }
  0x15   : > { %746 = vmatprep.mubr.msk.bf16.mxu1 %vm244_vm0, %v773_v7  ;;  %v780_v14 = vld [vmem:[%s833_s22 + $0x30] sm:$0xff]   ;;  %v782_v16 = vld [vmem:[%s833_s22 + $0x38] sm:$0xff]  }
  0x16   : > { %v781_v15 = vld [vmem:[%s833_s22 + $0x70] sm:$0xff]   ;;  %v783_v17 = vld [vmem:[%s833_s22 + $0x78] sm:$0xff]  }
  0x1b   : > { %729 = vmatmul.mubr.msk.bf16.gmra.mrb[4].mxu0 %vm244_vm0, %v774_v8 }
  0x1c   : > { %747 = vmatmul.mubr.msk.bf16.gmra.mrb[4].mxu1 %vm244_vm0, %v775_v9  ;;  %732 = vmatprep.mubr.msk.bf16.mxu0 %vm244_vm0, %v776_v10 }
  0x1d   : > { %750 = vmatprep.mubr.msk.bf16.mxu1 %vm244_vm0, %v777_v11 }
  0x23   : > { %733 = vmatmul.mubr.msk.bf16.gmra.mrb[8].mxu0 %vm244_vm0, %v778_v12 }
  0x24   : > { %751 = vmatmul.mubr.msk.bf16.gmra.mrb[8].mxu1 %vm244_vm0, %v779_v13  ;;  %736 = vmatprep.mubr.msk.bf16.mxu0 %vm244_vm0, %v780_v14 }
  0x25   : > { %754 = vmatprep.mubr.msk.bf16.mxu1 %vm244_vm0, %v781_v15 }
  0x2b   : > { %737 = vmatmul.mubr.msk.bf16.gmra.mrb[12].mxu0 %vm244_vm0, %v782_v16 }
  0x2c   : > { %755 = vmatmul.mubr.msk.bf16.gmra.mrb[12].mxu1 %vm244_vm0, %v783_v17 }
  0xe6   : > { %v726_v19 = vpop.f32.mrb[0].mxu0 }
  0xe7   : > { %v312_v20 = vadd.f32 %v726_v19, %v871_v18  ;;  %v744_v21 = vpop.f32.mrb[0].mxu1  ;;  %v303_v22 = vpop.f32.mrb[1].mxu0 }
  0xe8   : > { %v515_v23 = vadd.f32 %v744_v21, %v871_v18  ;;  %v304_v24 = vadd.f32 %v871_v18, %v303_v22  ;;  %v506_v25 = vpop.f32.mrb[1].mxu1  ;;  %v727_v26 = vpop.f32.mrb[2].mxu0 }
  0xe9   : > { %369 = vst.msk [vmem:[%s876_s29 + $0x10] sm:$0xff] %vm366_vm1, %v312_v20  ;;  %v507_v27 = vadd.f32 %v871_v18, %v506_v25  ;;  %v315_v28 = vadd.f32 %v727_v26, %v871_v18  ;;  %v745_v29 = vpop.f32.mrb[2].mxu1  ;;  %v306_v30 = vpop.f32.mrb[3].mxu0 }
  0xea   : > { %571 = vst.msk [vmem:[%s876_s29 + $0x90] sm:$0xff] %vm366_vm1, %v515_v23  ;;  %367 = vst.msk [vmem:[%s876_s29] sm:$0xff] %vm366_vm1, %v304_v24  ;;  %v518_v31 = vadd.f32 %v745_v29, %v871_v18  ;;  %v307_v32 = vadd.f32 %v871_v18, %v306_v30  ;;  %v509_v33 = vpop.f32.mrb[3].mxu1 }
  0xeb   : > { %569 = vst.msk [vmem:[%s876_s29 + $0x80] sm:$0xff] %vm366_vm1, %v507_v27  ;;  %370 = vst.msk [vmem:[%s876_s29 + $0x18] sm:$0xff] %vm366_vm1, %v315_v28  ;;  %v510_v34 = vadd.f32 %v871_v18, %v509_v33 }
  0xec   : > { %572 = vst.msk [vmem:[%s876_s29 + $0x98] sm:$0xff] %vm366_vm1, %v518_v31  ;;  %368 = vst.msk [vmem:[%s876_s29 + $0x8] sm:$0xff] %vm366_vm1, %v307_v32 }
  0xed   : > { %570 = vst.msk [vmem:[%s876_s29 + $0x88] sm:$0xff] %vm366_vm1, %v510_v34 }
  0xee   : > { %v730_v35 = vpop.f32.mrb[4].mxu0 }
  0xef   : > { %v328_v36 = vadd.f32 %v730_v35, %v871_v18  ;;  %v748_v37 = vpop.f32.mrb[4].mxu1  ;;  %v319_v38 = vpop.f32.mrb[5].mxu0 }
  0xf0   : > { %v531_v39 = vadd.f32 %v748_v37, %v871_v18  ;;  %v320_v40 = vadd.f32 %v871_v18, %v319_v38  ;;  %v522_v41 = vpop.f32.mrb[5].mxu1  ;;  %v731_v42 = vpop.f32.mrb[6].mxu0 }
  0xf1   : > { %373 = vst.msk [vmem:[%s876_s29 + $0x30] sm:$0xff] %vm366_vm1, %v328_v36  ;;  %v523_v43 = vadd.f32 %v871_v18, %v522_v41  ;;  %v331_v44 = vadd.f32 %v731_v42, %v871_v18  ;;  %v749_v45 = vpop.f32.mrb[6].mxu1  ;;  %v322_v46 = vpop.f32.mrb[7].mxu0 }
  0xf2   : > { %575 = vst.msk [vmem:[%s876_s29 + $0xb0] sm:$0xff] %vm366_vm1, %v531_v39  ;;  %371 = vst.msk [vmem:[%s876_s29 + $0x20] sm:$0xff] %vm366_vm1, %v320_v40  ;;  %v534_v47 = vadd.f32 %v749_v45, %v871_v18  ;;  %v323_v48 = vadd.f32 %v871_v18, %v322_v46  ;;  %v525_v49 = vpop.f32.mrb[7].mxu1 }
  0xf3   : > { %573 = vst.msk [vmem:[%s876_s29 + $0xa0] sm:$0xff] %vm366_vm1, %v523_v43  ;;  %374 = vst.msk [vmem:[%s876_s29 + $0x38] sm:$0xff] %vm366_vm1, %v331_v44  ;;  %v526_v50 = vadd.f32 %v871_v18, %v525_v49 }
  0xf4   : > { %576 = vst.msk [vmem:[%s876_s29 + $0xb8] sm:$0xff] %vm366_vm1, %v534_v47  ;;  %372 = vst.msk [vmem:[%s876_s29 + $0x28] sm:$0xff] %vm366_vm1, %v323_v48 }
  0xf5   : > { %574 = vst.msk [vmem:[%s876_s29 + $0xa8] sm:$0xff] %vm366_vm1, %v526_v50 }
  0xf6   : > { %v734_v51 = vpop.f32.mrb[8].mxu0 }
  0xf7   : > { %v344_v52 = vadd.f32 %v734_v51, %v871_v18  ;;  %v752_v53 = vpop.f32.mrb[8].mxu1  ;;  %v335_v54 = vpop.f32.mrb[9].mxu0 }
  0xf8   : > { %v547_v55 = vadd.f32 %v752_v53, %v871_v18  ;;  %v336_v56 = vadd.f32 %v871_v18, %v335_v54  ;;  %v538_v57 = vpop.f32.mrb[9].mxu1  ;;  %v735_v58 = vpop.f32.mrb[10].mxu0 }
  0xf9   : > { %377 = vst.msk [vmem:[%s876_s29 + $0x50] sm:$0xff] %vm366_vm1, %v344_v52  ;;  %v539_v59 = vadd.f32 %v871_v18, %v538_v57  ;;  %v347_v60 = vadd.f32 %v735_v58, %v871_v18  ;;  %v753_v61 = vpop.f32.mrb[10].mxu1  ;;  %v338_v62 = vpop.f32.mrb[11].mxu0 }
  0xfa   : > { %579 = vst.msk [vmem:[%s876_s29 + $0xd0] sm:$0xff] %vm366_vm1, %v547_v55  ;;  %375 = vst.msk [vmem:[%s876_s29 + $0x40] sm:$0xff] %vm366_vm1, %v336_v56  ;;  %v550_v63 = vadd.f32 %v753_v61, %v871_v18  ;;  %v339_v0 = vadd.f32 %v871_v18, %v338_v62  ;;  %v541_v1 = vpop.f32.mrb[11].mxu1 }
  0xfb   : > { %577 = vst.msk [vmem:[%s876_s29 + $0xc0] sm:$0xff] %vm366_vm1, %v539_v59  ;;  %378 = vst.msk [vmem:[%s876_s29 + $0x58] sm:$0xff] %vm366_vm1, %v347_v60  ;;  %v542_v2 = vadd.f32 %v871_v18, %v541_v1 }
  0xfc   : > { %580 = vst.msk [vmem:[%s876_s29 + $0xd8] sm:$0xff] %vm366_vm1, %v550_v63  ;;  %376 = vst.msk [vmem:[%s876_s29 + $0x48] sm:$0xff] %vm366_vm1, %v339_v0 }
  0xfd   : > { %578 = vst.msk [vmem:[%s876_s29 + $0xc8] sm:$0xff] %vm366_vm1, %v542_v2 }
  0xfe   : > { %v738_v3 = vpop.f32.mrb[12].mxu0 }
  0xff   : > { %v360_v4 = vadd.f32 %v738_v3, %v871_v18  ;;  %v756_v5 = vpop.f32.mrb[12].mxu1  ;;  %v351_v6 = vpop.f32.mrb[13].mxu0 }
 0x100   : > { %v563_v7 = vadd.f32 %v756_v5, %v871_v18  ;;  %v352_v8 = vadd.f32 %v871_v18, %v351_v6  ;;  %v554_v9 = vpop.f32.mrb[13].mxu1  ;;  %v739_v10 = vpop.f32.mrb[14].mxu0 }
 0x101   : > { %381 = vst.msk [vmem:[%s876_s29 + $0x70] sm:$0xff] %vm366_vm1, %v360_v4  ;;  %v555_v11 = vadd.f32 %v871_v18, %v554_v9  ;;  %v363_v12 = vadd.f32 %v739_v10, %v871_v18  ;;  %v757_v13 = vpop.f32.mrb[14].mxu1  ;;  %v354_v14 = vpop.f32.mrb[15].mxu0 }
 0x102   : > { %583 = vst.msk [vmem:[%s876_s29 + $0xf0] sm:$0xff] %vm366_vm1, %v563_v7  ;;  %379 = vst.msk [vmem:[%s876_s29 + $0x60] sm:$0xff] %vm366_vm1, %v352_v8  ;;  %v566_v15 = vadd.f32 %v757_v13, %v871_v18  ;;  %v355_v16 = vadd.f32 %v871_v18, %v354_v14  ;;  %v557_v17 = vpop.f32.mrb[15].mxu1 }
 0x103   : > { %581 = vst.msk [vmem:[%s876_s29 + $0xe0] sm:$0xff] %vm366_vm1, %v555_v11  ;;  %382 = vst.msk [vmem:[%s876_s29 + $0x78] sm:$0xff] %vm366_vm1, %v363_v12  ;;  %v558_v19 = vadd.f32 %v871_v18, %v557_v17 }
 0x104   : > { %584 = vst.msk [vmem:[%s876_s29 + $0xf8] sm:$0xff] %vm366_vm1, %v566_v15  ;;  %380 = vst.msk [vmem:[%s876_s29 + $0x68] sm:$0xff] %vm366_vm1, %v355_v16 }
 0x105   : > { %582 = vst.msk [vmem:[%s876_s29 + $0xe8] sm:$0xff] %vm366_vm1, %v558_v19 }
 0x106 PF: > { %s13_s12 = sadd.s32 1, %s790_s12  }
 0x107   : > { %p10_p5 = scmp.ge.s32.totalorder %s13_s12, 4  }
 0x109   :  { %12 = sbr.rel (!%p10_p5) target bundleno = 1 (0x1), region = 63 }

// kernel: _lambda_.6
= control target key start
LH: loop header
LB: loop body
LE: loop exit
PB: predicated region body
PF: predicated region fallthrough
CT: control target
= control target key end

     0   :  { %s6723_s12 = smov 0   ;;  %s8915_s0 = inlined_call_operand.vmem [shape: bf16[2,18,18,8], index: 0, kind: input, shape index: {}]   ;;  %s8916_s1 = inlined_call_operand.vmem [shape: bf16[9,8,8], index: 1, kind: input, shape index: {}]   ;;  %s8917_s2 = inlined_call_operand.vmem [shape: f32[1,8], index: 2, kind: input, shape index: {}]   ;;  %s8918_s3 = inlined_call_operand.vmem [shape: f32[512,8], index: 3, kind: output, shape index: {}]  }
   0x1 LB: > { %s6729_s13 = sadd.s32 4294967295, %s6701_s12   ;;  %p5295_p0 = scmp.ge.s32.totalorder %s6701_s12, 1  ;;  %s6701_s12 = sphi %s6723_s12, %s13_s12  }
   0x2   : > { %p137_p1 = scmp.lt.s32.totalorder %s6701_s12, 3 }
   0x4   : > { %p138_p2 = pnand %p5295_p0, %p137_p1 }
   0x6   : > { %141 = sbr.rel (%p138_p2) target bundleno = 572 (0x23c), region = 32 }
   0xd   : > { %v5299_v0 = vld [vmem:[%s8916_s1 + $0x4] sm:$0xf]  ;;  %vm445_vm0 = vcmask 1043456   ;;  %p161_p3 = scmp.lt.s32.totalorder %s6729_s13, 1  ;;  %v190_v4 = vld [vmem:[%s8916_s1] sm:$0xf] }
   0xe   : > { %v5596_v1 = vld [vmem:[%s8916_s1 + $0x4] sm:$0xf]  ;;  %6620 = vmatprep.subr.msk.bf16.mxu0 %vm445_vm0, %v5299_v0  ;;  %v447_v2 = vsel %vm445_vm0, %v5299_v0, 0  ;;  %v6751_v5 = vld [vmem:[%s8916_s1] sm:$0xf]  ;;  %vm420_vm3 = vcmask 64512  }
   0xf   : > { %6629 = vmatprep.subr.msk.bf16.mxu1 %vm445_vm0, %v5596_v1  ;;  %v2983_v3 = vsel %vm445_vm0, %v5596_v1, 0  ;;  %6041 = vmatpush3.bf16.msra.mxu0 %v447_v2  ;;  %s162_s18 = scalar_select %p161_p3, %s6729_s13, 1  ;;  %vm199_vm1 = vsmask.f32 3328  ;;  %vm200_vm2 = vsmask.f32 7440 }
  0x10   : > { %6203 = vmatpush3.bf16.msra.mxu1 %v2983_v3  ;;  %6621 = vmatprep.subr.msk.bf16.mxu0 %vm445_vm0, %v190_v4  ;;  %vm6797_vm4 = vmor %vm199_vm1, %vm200_vm2  ;;  %v6802_v35 = vsel %vm445_vm0, %v190_v4, 0  ;;  %v6818_v49 = vld [vmem:[%s8916_s1 + $0x8] sm:$0xf]  ;;  %v6835_v63 = vsel %vm445_vm0, %v6751_v5, 0  ;;  %vm734_vm5 = vcmask 1042432   ;;  %vm735_vm6 = vcmask 1046532  }
  0x11   : > { %6630 = vmatprep.subr.msk.bf16.mxu1 %vm445_vm0, %v6751_v5  ;;  %s6638_s23 = smul.u32 216, %s162_s18  ;;  %v6839_v0 = vsel %vm445_vm0, %v6818_v49, 0  ;;  %vm7138_vm7 = vmor %vm734_vm5, %vm735_vm6 }
  0x13   : > { %s6759_s26 = scalar_lea.vmem %s8915_s0, %s6638_s23 }
  0x14   : > { %v6762_v6 = vld [vmem:[%s6759_s26] sm:$0xf]  ;;  %v6765_v7 = vld [vmem:[%s6759_s26 + $0x4] sm:$0xf]  ;;  %v6768_v8 = vld [vmem:[%s6759_s26 + $0x8] sm:$0x1] }
  0x15   : > { %v203_v9 = vshrl.u32 %v6762_v6, 16  ;;  %v206_v10 = vshll.u32 %v6762_v6, 16  ;;  %v212_v11 = vshll.u32 %v6765_v7, 16  ;;  %v216_v12 = vshrl.u32 %v6765_v7, 16  ;;  %v6775_v13 = vld [vmem:[%s6759_s26 + $0x60] sm:$0xf] }
  0x16   : > { %v222_v14 = vshll.u32 %v6768_v8, 16  ;;  %v6779_v15 = vld [vmem:[%s6759_s26 + $0x64] sm:$0xf]  ;;  %v6782_v16 = vld [vmem:[%s6759_s26 + $0x68] sm:$0x1]  ;;  %v2742_v22 = vshrl.u32 %v6775_v13, 16 }
  0x17   : > { %v205_v17 = vrot.slane %v203_v9, 4  ;;  %v208_v18 = vrot.slane %v206_v10, 5  ;;  %v214_v19 = vrot.slane %v212_v11, 5  ;;  %v218_v20 = vrot.slane %v216_v12, 4  ;;  %v6790_v29 = vld [vmem:[%s6759_s26 + $0xc] sm:$0xf] }
  0x18   : > { %v224_v21 = vrot.slane %v222_v14, 5  ;;  %v2745_v23 = vshll.u32 %v6775_v13, 16  ;;  %v2751_v24 = vshll.u32 %v6779_v15, 16  ;;  %v2755_v27 = vshrl.u32 %v6779_v15, 16  ;;  %v6793_v30 = vld [vmem:[%s6759_s26 + $0x10] sm:$0xf] }
  0x19   : > { %v209_v25 = vor.u32 %v208_v18, %v205_v17  ;;  %v219_v26 = vor.u32 %v218_v20, %v214_v19  ;;  %v2761_v28 = vshll.u32 %v6782_v16, 16  ;;  %v2744_v32 = vrot.slane %v2742_v22, 4  ;;  %v6805_v41 = vld [vmem:[%s6759_s26 + $0x14] sm:$0x1]  ;;  %v6821_v54 = vld [vmem:[%s6759_s26 + $0x6c] sm:$0xf] }
  0x1a   : > { %v2747_v33 = vrot.slane %v2745_v23, 5  ;;  %v2753_v34 = vrot.slane %v2751_v24, 5  ;;  %v2757_v38 = vrot.slane %v2755_v27, 4  ;;  %v227_v42 = vshrl.u32 %v6790_v29, 16  ;;  %v6825_v59 = vld [vmem:[%s6759_s26 + $0x70] sm:$0xf] }
  0x1b   : > { %v210_v36 = vrot.slane %v209_v25, 4  ;;  %v220_v37 = vrot.slane %v219_v26, 4  ;;  %v2763_v39 = vrot.slane %v2761_v28, 5  ;;  %v230_v43 = vshll.u32 %v6790_v29, 16  ;;  %v6831_v62 = vld [vmem:[%s6759_s26 + $0x74] sm:$0x1] }
  0x1c   : > { %v2748_v40 = vor.u32 %v2747_v33, %v2744_v32  ;;  %v236_v44 = vshll.u32 %v6793_v30, 16  ;;  %v2758_v47 = vor.u32 %v2757_v38, %v2753_v34  ;;  %v240_v48 = vshrl.u32 %v6793_v30, 16  ;;  %v6849_v12 = vld [vmem:[%s8916_s1 + $0x8] sm:$0xf]  ;;  %v6854_v20 = vld [vmem:[%s6759_s26 + $0x18] sm:$0xf] }
  0x1d   : > { %v215_v45 = vsel %vm6797_vm4, %v210_v36, %v214_v19  ;;  %v225_v46 = vsel %vm6797_vm4, %v220_v37, %v224_v21  ;;  %v229_v52 = vrot.slane %v227_v42, 4  ;;  %v232_v53 = vrot.slane %v230_v43, 5  ;;  %v6860_v24 = vld [vmem:[%s6759_s26 + $0x1c] sm:$0xf]  ;;  %v6863_v25 = vld [vmem:[%s6759_s26 + $0x20] sm:$0x1] }
  0x1e   : > { %v5300_v50 = vcombine.low %v215_v45, %v225_v46  ;;  %v2749_v51 = vrot.slane %v2748_v40, 4  ;;  %v2759_v55 = vrot.slane %v2758_v47, 4  ;;  %v238_v56 = vrot.slane %v236_v44, 5  ;;  %v6868_v32 = vld [vmem:[%s6759_s26 + $0x78] sm:$0xf] }
  0x1f   : > { %v242_v57 = vrot.slane %v240_v48, 4  ;;  %v246_v58 = vshll.u32 %v6805_v41, 16  ;;  %v233_v61 = vor.u32 %v232_v53, %v229_v52  ;;  %v2766_v4 = vshrl.u32 %v6821_v54, 16  ;;  %v6881_v47 = vld [vmem:[%s6759_s26 + $0x7c] sm:$0xf] }
  0x20   : > { %6042 = vmatprep.mubr.msk.bf16.mxu0 %vm420_vm3, %v5300_v50  ;;  %v2754_v60 = vsel %vm6797_vm4, %v2749_v51, %v2753_v34  ;;  %v2764_v1 = vsel %vm6797_vm4, %v2759_v55, %v2763_v39  ;;  %v2769_v11 = vshll.u32 %v6821_v54, 16  ;;  %v2775_v5 = vshll.u32 %v6825_v59, 16  ;;  %v6886_v55 = vld [vmem:[%s6759_s26 + $0x80] sm:$0x1] }
  0x21   : > { %v243_v2 = vor.u32 %v242_v57, %v238_v56  ;;  %v248_v3 = vrot.slane %v246_v58, 5  ;;  %v5597_v9 = vcombine.low %v2754_v60, %v2764_v1  ;;  %v234_v10 = vrot.slane %v233_v61, 4  ;;  %v6892_v61 = vld [vmem:[%s6759_s26 + $0x24] sm:$0xf] }
  0x22   : > { %v2768_v17 = vrot.slane %v2766_v4, 4  ;;  %v2779_v18 = vshrl.u32 %v6825_v59, 16  ;;  %v2785_v19 = vshll.u32 %v6831_v62, 16  ;;  %v2771_v22 = vrot.slane %v2769_v11, 5 }
  0x23   : > { %v244_v14 = vrot.slane %v243_v2, 4  ;;  %6204 = vmatprep.mubr.msk.bf16.mxu1 %vm420_vm3, %v5597_v9  ;;  %v239_v21 = vsel %vm6797_vm4, %v234_v10, %v238_v56  ;;  %v2777_v23 = vrot.slane %v2775_v5, 5  ;;  %v6872_v33 = vsel %vm445_vm0, %v6849_v12, 0  ;;  %v6902_v5 = vld [vmem:[%s6759_s26 + $0x28] sm:$0xf] }
  0x24   : > { %v2781_v27 = vrot.slane %v2779_v18, 4  ;;  %v2787_v28 = vrot.slane %v2785_v19, 5  ;;  %8960 = vst [vmem:[#allocation2_spill] sm:$0xff] %v6872_v33  ;;  %v2772_v36 = vor.u32 %v2771_v22, %v2768_v17  ;;  %v251_v37 = vshrl.u32 %v6854_v20, 16 }
  0x25   : > { %v249_v26 = vsel %vm6797_vm4, %v244_v14, %v248_v3  ;;  %v254_v38 = vshll.u32 %v6854_v20, 16  ;;  %v260_v40 = vshll.u32 %v6860_v24, 16  ;;  %v264_v42 = vshrl.u32 %v6860_v24, 16 }
  0x26   : > { %v5301_v34 = vcombine.low %v239_v21, %v249_v26  ;;  %v2782_v39 = vor.u32 %v2781_v27, %v2777_v23  ;;  %v270_v43 = vshll.u32 %v6863_v25, 16  ;;  %v2773_v44 = vrot.slane %v2772_v36, 4  ;;  %v6913_v27 = vld [vmem:[%s6759_s26 + $0x84] sm:$0xf] }
  0x27   : > { %v253_v45 = vrot.slane %v251_v37, 4  ;;  %v256_v46 = vrot.slane %v254_v38, 5  ;;  %v2790_v48 = vshrl.u32 %v6868_v32, 16  ;;  %v262_v51 = vrot.slane %v260_v40, 5 }
  0x28   : > { %6043 = vmatmul.mubr.msk.bf16.vlgmr.msra.gmra.mrb[0].mxu0 %vm420_vm3, %v5301_v34  ;;  %v2783_v50 = vrot.slane %v2782_v39, 4  ;;  %v266_v52 = vrot.slane %v264_v42, 4  ;;  %v272_v53 = vrot.slane %v270_v43, 5  ;;  %v2778_v56 = vsel %vm6797_vm4, %v2773_v44, %v2777_v23  ;;  %v6909_v23 = vld [vmem:[%s6759_s26 + $0x2c] sm:$0x1] }
  0x29   : > { %6059 = vmatpush3.bf16.msra.mxu0 %v6802_v35  ;;  %v257_v57 = vor.u32 %v256_v46, %v253_v45  ;;  %v2792_v58 = vrot.slane %v2790_v48, 4  ;;  %v2793_v60 = vshll.u32 %v6868_v32, 16  ;;  %v2799_v2 = vshll.u32 %v6881_v47, 16  ;;  %8961 = vst [vmem:[#allocation3_spill] sm:$0xff] %v6909_v23  ;;  %v6921_v43 = vld [vmem:[%s6759_s26 + $0x88] sm:$0xf] }
  0x2a   : > { %6622 = vmatprep.subr.msk.bf16.mxu0 %vm445_vm0, %v6818_v49  ;;  %v2788_v35 = vsel %vm6797_vm4, %v2783_v50, %v2787_v28  ;;  %v267_v1 = vor.u32 %v266_v52, %v262_v51  ;;  %v2803_v3 = vshrl.u32 %v6881_v47, 16  ;;  %v2809_v11 = vshll.u32 %v6886_v55, 16  ;;  %v6931_v52 = vld [vmem:[%s6759_s26 + $0x8c] sm:$0x1] }
  0x2b   : > { %v5598_v4 = vcombine.low %v2778_v56, %v2788_v35  ;;  %v258_v9 = vrot.slane %v257_v57, 4  ;;  %v2795_v10 = vrot.slane %v2793_v60, 5  ;;  %v2801_v17 = vrot.slane %v2799_v2, 5  ;;  %8962 = vst [vmem:[#allocation4_spill] sm:$0xff] %v6931_v52  ;;  %v6935_v56 = vld [vmem:[%s6759_s26 + $0x30] sm:$0xf] }
  0x2c   : > { %v268_v14 = vrot.slane %v267_v1, 4  ;;  %v2805_v49 = vrot.slane %v2803_v3, 4  ;;  %v275_v18 = vshrl.u32 %v6892_v61, 16  ;;  %v2811_v22 = vrot.slane %v2809_v11, 5 }
  0x2d   : > { %6205 = vmatmul.mubr.msk.bf16.vlgmr.msra.gmra.mrb[0].mxu1 %vm420_vm3, %v5598_v4  ;;  %v263_v19 = vsel %vm6797_vm4, %v258_v9, %v262_v51  ;;  %v2796_v21 = vor.u32 %v2795_v10, %v2792_v58  ;;  %v278_v26 = vshll.u32 %v6892_v61, 16  ;;  %v284_v37 = vshll.u32 %v6902_v5, 16  ;;  %v6941_v4 = vld [vmem:[%s6759_s26 + $0x34] sm:$0xf] }
  0x2e   : > { %6221 = vmatpush3.bf16.msra.mxu1 %v6835_v63  ;;  %v273_v28 = vsel %vm6797_vm4, %v268_v14, %v272_v53  ;;  %v2806_v34 = vor.u32 %v2805_v49, %v2801_v17  ;;  %v277_v36 = vrot.slane %v275_v18, 4  ;;  %v288_v42 = vshrl.u32 %v6902_v5, 16 }
  0x2f   : > { %v5302_v38 = vcombine.low %v263_v19, %v273_v28  ;;  %v2797_v39 = vrot.slane %v2796_v21, 4  ;;  %v280_v40 = vrot.slane %v278_v26, 5  ;;  %6631 = vmatprep.subr.msk.bf16.mxu1 %vm445_vm0, %v6849_v12  ;;  %v286_v44 = vrot.slane %v284_v37, 5  ;;  %v6950_v19 = vld [vmem:[%s6759_s26 + $0x38] sm:$0x1] }
  0x30   : > { %v2807_v63 = vrot.slane %v2806_v34, 4  ;;  %v294_v45 = vshll.u32 %v6909_v23, 16  ;;  %v2814_v46 = vshrl.u32 %v6913_v27, 16  ;;  %v290_v51 = vrot.slane %v288_v42, 4  ;;  %8963 = vst [vmem:[#allocation5_spill] sm:$0xff] %v6950_v19 }
  0x31   : > { %6046 = vmatprep.mubr.msk.bf16.mxu0 %vm420_vm3, %v5302_v38  ;;  %v2802_v48 = vsel %vm6797_vm4, %v2797_v39, %v2801_v17  ;;  %v281_v50 = vor.u32 %v280_v40, %v277_v36  ;;  %v2817_v53 = vshll.u32 %v6913_v27, 16  ;;  %v2823_v60 = vshll.u32 %v6921_v43, 16  ;;  %v6955_v36 = vld [vmem:[%s6759_s26 + $0x90] sm:$0xf]  ;;  %v6961_v42 = vld [vmem:[%s6759_s26 + $0x94] sm:$0xf] }
  0x32   : > { %v2812_v12 = vsel %vm6797_vm4, %v2807_v63, %v2811_v22  ;;  %v296_v57 = vrot.slane %v294_v45, 5  ;;  %v2816_v58 = vrot.slane %v2814_v46, 4  ;;  %v291_v2 = vor.u32 %v290_v51, %v286_v44 }
  0x33   : > { %v5599_v35 = vcombine.low %v2802_v48, %v2812_v12  ;;  %v282_v1 = vrot.slane %v281_v50, 4  ;;  %v2819_v3 = vrot.slane %v2817_v53, 5  ;;  %v2825_v9 = vrot.slane %v2823_v60, 5  ;;  %v6967_v53 = vld [vmem:[%s6759_s26 + $0x98] sm:$0x1] }
  0x34   : > { %v2827_v10 = vshrl.u32 %v6921_v43, 16  ;;  %v2833_v11 = vshll.u32 %v6931_v52, 16  ;;  %v299_v14 = vshrl.u32 %v6935_v56, 16  ;;  %v292_v49 = vrot.slane %v291_v2, 4  ;;  %8964 = vst [vmem:[#allocation6_spill] sm:$0xff] %v6967_v53 }
  0x35   : > { %6208 = vmatprep.mubr.msk.bf16.mxu1 %vm420_vm3, %v5599_v35  ;;  %v287_v17 = vsel %vm6797_vm4, %v282_v1, %v286_v44  ;;  %v2820_v18 = vor.u32 %v2819_v3, %v2816_v58  ;;  %v302_v21 = vshll.u32 %v6935_v56, 16  ;;  %v308_v34 = vshll.u32 %v6941_v4, 16 }
  0x36   : > { %v2829_v22 = vrot.slane %v2827_v10, 4  ;;  %v2835_v26 = vrot.slane %v2833_v11, 5  ;;  %v301_v28 = vrot.slane %v299_v14, 4  ;;  %v297_v37 = vsel %vm6797_vm4, %v292_v49, %v296_v57  ;;  %v6975_v10 = vld [vmem:[%s6759_s26 + $0x3c] sm:$0xf] }
  0x37   : > { %v2821_v38 = vrot.slane %v2820_v18, 4  ;;  %v304_v39 = vrot.slane %v302_v21, 5  ;;  %v312_v40 = vshrl.u32 %v6941_v4, 16  ;;  %v5303_v63 = vcombine.low %v287_v17, %v297_v37  ;;  %v6981_v18 = vld [vmem:[%s6759_s26 + $0x40] sm:$0xf] }
  0x38   : > { %v2830_v44 = vor.u32 %v2829_v22, %v2825_v9  ;;  %v310_v45 = vrot.slane %v308_v34, 5  ;;  %v318_v46 = vshll.u32 %v6950_v19, 16  ;;  %v2838_v12 = vshrl.u32 %v6955_v36, 16 }
  0x39   : > { %v2826_v48 = vsel %vm6797_vm4, %v2821_v38, %v2825_v9  ;;  %v305_v50 = vor.u32 %v304_v39, %v301_v28  ;;  %v314_v51 = vrot.slane %v312_v40, 4  ;;  %6047 = vmatmul.mubr.msk.bf16.gmra.mrb[4].mxu0 %vm420_vm3, %v5303_v63  ;;  %v2841_v60 = vshll.u32 %v6955_v36, 16  ;;  %v6986_v39 = vld [vmem:[%s6759_s26 + $0x44] sm:$0x1] }
  0x3a   : > { %v2831_v57 = vrot.slane %v2830_v44, 4  ;;  %v320_v58 = vrot.slane %v318_v46, 5  ;;  %v2847_v35 = vshll.u32 %v6961_v42, 16  ;;  %v2840_v3 = vrot.slane %v2838_v12, 4  ;;  %8965 = vst [vmem:[#allocation7_spill] sm:$0xff] %v6986_v39 }
  0x3b   : > { %v306_v1 = vrot.slane %v305_v50, 4  ;;  %v315_v2 = vor.u32 %v314_v51, %v310_v45  ;;  %v2851_v9 = vshrl.u32 %v6961_v42, 16  ;;  %v2843_v14 = vrot.slane %v2841_v60, 5  ;;  %v6999_v50 = vld [vmem:[%s6759_s26 + $0xa0] sm:$0xf] }
  0x3c   : > { %v2836_v11 = vsel %vm6797_vm4, %v2831_v57, %v2835_v26  ;;  %v2849_v17 = vrot.slane %v2847_v35, 5  ;;  %v2857_v49 = vshll.u32 %v6967_v53, 16  ;;  %v323_v26 = vshrl.u32 %v6975_v10, 16  ;;  %v7002_v35 = vld [vmem:[%s6759_s26 + $0xa4] sm:$0x1] }
  0x3d   : > { %v5600_v21 = vcombine.low %v2826_v48, %v2836_v11  ;;  %v311_v22 = vsel %vm6797_vm4, %v306_v1, %v310_v45  ;;  %v316_v28 = vrot.slane %v315_v2, 4  ;;  %v2853_v34 = vrot.slane %v2851_v9, 4  ;;  %v6996_v48 = vld [vmem:[%s6759_s26 + $0x9c] sm:$0xf]  ;;  %8966 = vst [vmem:[#allocation8_spill] sm:$0xff] %v7002_v35 }
  0x3e   : > { %v2844_v37 = vor.u32 %v2843_v14, %v2840_v3  ;;  %v2859_v38 = vrot.slane %v2857_v49, 5  ;;  %v326_v40 = vshll.u32 %v6975_v10, 16  ;;  %v332_v46 = vshll.u32 %v6981_v18, 16 }
  0x3f   : > { %6209 = vmatmul.mubr.msk.bf16.gmra.mrb[4].mxu1 %vm420_vm3, %v5600_v21  ;;  %v321_v63 = vsel %vm6797_vm4, %v316_v28, %v320_v58  ;;  %v2854_v44 = vor.u32 %v2853_v34, %v2849_v17  ;;  %v336_v45 = vshrl.u32 %v6981_v18, 16  ;;  %v325_v57 = vrot.slane %v323_v26, 4  ;;  %v7011_v21 = vld [vmem:[%s6759_s26 + $0x48] sm:$0xf]  ;;  %v7017_v26 = vld [vmem:[%s6759_s26 + $0x4c] sm:$0xf] }
  0x40   : > { %v5304_v51 = vcombine.low %v311_v22, %v321_v63  ;;  %v2845_v12 = vrot.slane %v2844_v37, 4  ;;  %v328_v60 = vrot.slane %v326_v40, 5  ;;  %v334_v2 = vrot.slane %v332_v46, 5  ;;  %v7020_v46 = vld [vmem:[%s6759_s26 + $0x50] sm:$0x1] }
  0x41   : > { %v2855_v1 = vrot.slane %v2854_v44, 4  ;;  %v338_v58 = vrot.slane %v336_v45, 4  ;;  %v342_v3 = vshll.u32 %v6986_v39, 16  ;;  %v2862_v14 = vshrl.u32 %v6996_v48, 16  ;;  %8967 = vst [vmem:[#allocation9_spill] sm:$0xff] %v7020_v46 }
  0x42   : > { %6050 = vmatprep.mubr.msk.bf16.mxu0 %vm420_vm3, %v5304_v51  ;;  %v2850_v9 = vsel %vm6797_vm4, %v2845_v12, %v2849_v17  ;;  %v329_v11 = vor.u32 %v328_v60, %v325_v57  ;;  %v2865_v49 = vshll.u32 %v6996_v48, 16  ;;  %v2871_v37 = vshll.u32 %v6999_v50, 16 }
  0x43   : > { %v2860_v22 = vsel %vm6797_vm4, %v2855_v1, %v2859_v38  ;;  %v339_v28 = vor.u32 %v338_v58, %v334_v2  ;;  %v344_v34 = vrot.slane %v342_v3, 5  ;;  %v2864_v63 = vrot.slane %v2862_v14, 4  ;;  %v7025_v38 = vld [vmem:[%s6759_s26 + $0xa8] sm:$0xf] }
  0x44   : > { %v5601_v40 = vcombine.low %v2850_v9, %v2860_v22  ;;  %v330_v17 = vrot.slane %v329_v11, 4  ;;  %v2867_v44 = vrot.slane %v2865_v49, 5  ;;  %v2873_v51 = vrot.slane %v2871_v37, 5  ;;  %v7033_v9 = vld [vmem:[%s6759_s26 + $0xac] sm:$0xf] }
  0x45   : > { %v340_v45 = vrot.slane %v339_v28, 4  ;;  %v2875_v12 = vshrl.u32 %v6999_v50, 16  ;;  %v2881_v57 = vshll.u32 %v7002_v35, 16  ;;  %v347_v58 = vshrl.u32 %v7011_v21, 16 }
  0x46   : > { %6212 = vmatprep.mubr.msk.bf16.mxu1 %vm420_vm3, %v5601_v40  ;;  %v335_v60 = vsel %vm6797_vm4, %v330_v17, %v334_v2  ;;  %v2868_v1 = vor.u32 %v2867_v44, %v2864_v63  ;;  %v350_v3 = vshll.u32 %v7011_v21, 16  ;;  %v356_v22 = vshll.u32 %v7017_v26, 16  ;;  %v7039_v2 = vld [vmem:[%s6759_s26 + $0xb0] sm:$0x1] }
  0x47   : > { %v345_v11 = vsel %vm6797_vm4, %v340_v45, %v344_v34  ;;  %v2877_v14 = vrot.slane %v2875_v12, 4  ;;  %v2883_v49 = vrot.slane %v2881_v57, 5  ;;  %v349_v40 = vrot.slane %v347_v58, 4 }
  0x48   : > { %v5305_v28 = vcombine.low %v335_v60, %v345_v11  ;;  %v2869_v37 = vrot.slane %v2868_v1, 4  ;;  %v352_v35 = vrot.slane %v350_v3, 5  ;;  %v358_v63 = vrot.slane %v356_v22, 5  ;;  %v7049_v60 = vld [vmem:[%s6759_s26 + $0x54] sm:$0xf] }
  0x49   : > { %v2878_v17 = vor.u32 %v2877_v14, %v2873_v51  ;;  %v360_v44 = vshrl.u32 %v7017_v26, 16  ;;  %v366_v39 = vshll.u32 %v7020_v46, 16  ;;  %v2886_v12 = vshrl.u32 %v7025_v38, 16  ;;  %8968 = vst [vmem:[#allocation10_spill] sm:$0xff] %v7049_v60  ;;  %v7053_v14 = vld [vmem:[%s6759_s26 + $0x58] sm:$0xf] }
  0x4a   : > { %6051 = vmatmul.mubr.msk.bf16.gmra.mrb[8].mxu0 %vm420_vm3, %v5305_v28  ;;  %v2874_v34 = vsel %vm6797_vm4, %v2869_v37, %v2873_v51  ;;  %v353_v45 = vor.u32 %v352_v35, %v349_v40  ;;  %v2889_v57 = vshll.u32 %v7025_v38, 16  ;;  %v2895_v11 = vshll.u32 %v7033_v9, 16  ;;  %8969 = vst [vmem:[#allocation11_spill] sm:$0xff] %v7053_v14  ;;  %v7057_v51 = vld [vmem:[%s6759_s26 + $0x5c] sm:$0x1] }
  0x4b   : > { %v2879_v1 = vrot.slane %v2878_v17, 4  ;;  %v362_v58 = vrot.slane %v360_v44, 4  ;;  %v368_v3 = vrot.slane %v366_v39, 5  ;;  %v2888_v28 = vrot.slane %v2886_v12, 4  ;;  %v7065_v12 = vld [vmem:[%s6759_s26 + $0xb4] sm:$0xf] }
  0x4c   : > { %v354_v22 = vrot.slane %v353_v45, 4  ;;  %v2891_v46 = vrot.slane %v2889_v57, 5  ;;  %v2899_v35 = vshrl.u32 %v7033_v9, 16  ;;  %v2897_v17 = vrot.slane %v2895_v11, 5 }
  0x4d   : > { %v2884_v37 = vsel %vm6797_vm4, %v2879_v1, %v2883_v49  ;;  %v363_v40 = vor.u32 %v362_v58, %v358_v63  ;;  %v2905_v39 = vshll.u32 %v7039_v2, 16  ;;  %v371_v52 = vshrl.u32 %v7049_v60, 16  ;;  %v7070_v49 = vld [vmem:[%s6759_s26 + $0xb8] sm:$0xf] }
  0x4e   : > { %v5602_v44 = vcombine.low %v2874_v34, %v2884_v37  ;;  %v359_v53 = vsel %vm6797_vm4, %v354_v22, %v358_v63  ;;  %v2892_v19 = vor.u32 %v2891_v46, %v2888_v28  ;;  %v2901_v45 = vrot.slane %v2899_v35, 4  ;;  %v7079_v35 = vld [vmem:[%s6759_s26 + $0xbc] sm:$0x1] }
  0x4f   : > { %v364_v57 = vrot.slane %v363_v40, 4  ;;  %v2907_v33 = vrot.slane %v2905_v39, 5  ;;  %v374_v23 = vshll.u32 %v7049_v60, 16  ;;  %v380_v58 = vshll.u32 %v7053_v14, 16 }
  0x50   : > { %6213 = vmatmul.mubr.msk.bf16.gmra.mrb[8].mxu1 %vm420_vm3, %v5602_v44  ;;  %v2893_v1 = vrot.slane %v2892_v19, 4  ;;  %v2902_v34 = vor.u32 %v2901_v45, %v2897_v17  ;;  %v384_v46 = vshrl.u32 %v7053_v14, 16  ;;  %v373_v11 = vrot.slane %v371_v52, 4 }
  0x51   : > { %v369_v63 = vsel %vm6797_vm4, %v364_v57, %v368_v3  ;;  %v376_v22 = vrot.slane %v374_v23, 5  ;;  %v390_v28 = vshll.u32 %v7057_v51, 16  ;;  %v382_v19 = vrot.slane %v380_v58, 5 }
  0x52   : > { %v5306_v37 = vcombine.low %v359_v53, %v369_v63  ;;  %v2898_v40 = vsel %vm6797_vm4, %v2893_v1, %v2897_v17  ;;  %v2903_v39 = vrot.slane %v2902_v34, 4  ;;  %v386_v45 = vrot.slane %v384_v46, 4 }
  0x53   : > { %v377_v44 = vor.u32 %v376_v22, %v373_v11  ;;  %v392_v60 = vrot.slane %v390_v28, 5  ;;  %v2910_v14 = vshrl.u32 %v7065_v12, 16  ;;  %v2913_v52 = vshll.u32 %v7065_v12, 16 }
  0x54   : > { %6054 = vmatprep.mubr.msk.bf16.mxu0 %vm420_vm3, %v5306_v37  ;;  %v2908_v23 = vsel %vm6797_vm4, %v2903_v39, %v2907_v33  ;;  %v2919_v53 = vshll.u32 %v7070_v49, 16  ;;  %v2923_v3 = vshrl.u32 %v7070_v49, 16  ;;  %v387_v1 = vor.u32 %v386_v45, %v382_v19 }
  0x55   : > { %v5603_v17 = vcombine.low %v2898_v40, %v2908_v23  ;;  %v378_v57 = vrot.slane %v377_v44, 4  ;;  %v2912_v34 = vrot.slane %v2910_v14, 4  ;;  %v2915_v58 = vrot.slane %v2913_v52, 5 }
  0x56   : > { %v2921_v46 = vrot.slane %v2919_v53, 5  ;;  %v2925_v63 = vrot.slane %v2923_v3, 4  ;;  %v2929_v11 = vshll.u32 %v7079_v35, 16  ;;  %v388_v22 = vrot.slane %v387_v1, 4 }
  0x57   : > { %6216 = vmatprep.mubr.msk.bf16.mxu1 %vm420_vm3, %v5603_v17  ;;  %v383_v33 = vsel %vm6797_vm4, %v378_v57, %v382_v19  ;;  %v5317_v28 = vcombine.low %v6790_v29, %v6793_v30  ;;  %v2916_v37 = vor.u32 %v2915_v58, %v2912_v34  ;;  %v5614_v14 = vcombine.low %v6821_v54, %v6825_v59 }
  0x58   : > { %v2926_v40 = vor.u32 %v2925_v63, %v2921_v46  ;;  %v2931_v39 = vrot.slane %v2929_v11, 5  ;;  %v393_v23 = vsel %vm6797_vm4, %v388_v22, %v392_v60  ;;  %v5316_v19 = vcombine.low %v6762_v6, %v6765_v7  ;;  %v711_v60 = vld [vmem:[%s6759_s26 + $0xc] sm:$0xe] }
  0x59   : > { %v746_v52 = vrot.slane %v6793_v30, 5  ;;  %v5307_v53 = vcombine.low %v383_v33, %v393_v23  ;;  %v2917_v3 = vrot.slane %v2916_v37, 4  ;;  %v749_v57 = vrot.slane %v6805_v41, 5  ;;  %v5630_v11 = vld [vmem:[%s6759_s26 + $0x6c] sm:$0xe] }
  0x5a   : > { %v2927_v17 = vrot.slane %v2926_v40, 4  ;;  %v3279_v1 = vrot.slane %v6825_v59, 5  ;;  %v3282_v34 = vrot.slane %v6831_v62, 5  ;;  %v5613_v58 = vcombine.low %v6775_v13, %v6779_v15  ;;  %v712_v37 = vld [vmem:[%s6759_s26 + $0x18] sm:$0xe] }
  0x5b   : > { %6055 = vmatmul.mubr.msk.bf16.gmra.mrb[12].mxu0 %vm420_vm3, %v5307_v53  ;;  %v2922_v6 = vsel %vm6797_vm4, %v2917_v3, %v2921_v46  ;;  %v5318_v41 = vcombine.low %v6854_v20, %v6860_v24  ;;  %v5615_v62 = vcombine.low %v6868_v32, %v6881_v47  ;;  %v5319_v13 = vcombine.low %v6892_v61, %v6902_v5  ;;  %v7145_v3 = vld [vmem:[%s6759_s26 + $0x60] sm:$0xe]  ;;  %v5631_v40 = vld [vmem:[%s6759_s26 + $0x78] sm:$0xe] }
  0x5c   : > { %v2932_v63 = vsel %vm6797_vm4, %v2927_v17, %v2931_v39  ;;  %6060 = vmatprep.mubr.msk.bf16.mxu0 %vm420_vm3, %v5316_v19  ;;  %v5320_v22 = vcombine.low %v6935_v56, %v6941_v4  ;;  %v7134_v39 = vld [vmem:[%s6759_s26] sm:$0xe]  ;;  %v8929_v19 = vrot.slane %v6765_v7, 5  ;;  %v5333_v53 = vrot.slane %v711_v60, 9  ;;  %v713_v60 = vld [vmem:[%s6759_s26 + $0x24] sm:$0xe] }
  0x5d   : > { %v5604_v33 = vcombine.low %v2922_v6, %v2932_v63  ;;  %v8930_v17 = vrot.slane %v6779_v15, 5  ;;  %v748_v6 = vrot.slane %v746_v52, 4  ;;  %v5638_v63 = vrot.slane %v5630_v11, 9  ;;  %v8974_v46 = vld [vmem:[#allocation2_spill] sm:$0xff] }
  0x5e   : > { %v3281_v45 = vrot.slane %v3279_v1, 4  ;;  %v7157_v20 = vsel %vm7138_vm7, %v5333_v53, %v746_v52  ;;  %v7177_v52 = vld [vmem:[%s8916_s1 + $0xc] sm:$0xf]  ;;  %v5639_v53 = vrot.slane %v5631_v40, 9 }
  0x5f   : > { %6217 = vmatmul.mubr.msk.bf16.gmra.mrb[12].mxu1 %vm420_vm3, %v5604_v33  ;;  %v5334_v33 = vrot.slane %v712_v37, 9  ;;  %v7161_v11 = vsel %vm7138_vm7, %v748_v6, %v749_v57  ;;  %v753_v6 = vrot.slane %v6860_v24, 5  ;;  %v5632_v37 = vld [vmem:[%s6759_s26 + $0x84] sm:$0xe]  ;;  %v3289_v57 = vrot.slane %v6886_v55, 5 }
  0x60   : > { %6222 = vmatprep.mubr.msk.bf16.mxu1 %vm420_vm3, %v5613_v58  ;;  %v7165_v58 = vsel %vm7138_vm7, %v5638_v63, %v3279_v1  ;;  %v7169_v44 = vsel %vm7138_vm7, %v3281_v45, %v3282_v34  ;;  %v7186_v45 = vrot.slane %v8929_v19, 4  ;;  %v7190_v34 = vrot.slane %v8930_v17, 4  ;;  %v7206_v24 = vld [vmem:[%s8916_s1 + $0xc] sm:$0xf]  ;;  %v714_v17 = vld [vmem:[%s6759_s26 + $0x30] sm:$0xe] }
  0x61   : > { %v756_v63 = vrot.slane %v6863_v25, 5  ;;  %v3286_v1 = vrot.slane %v6881_v47, 5  ;;  %v5335_v19 = vrot.slane %v713_v60, 9  ;;  %v7210_v29 = vsel %vm7138_vm7, %v5334_v33, %v753_v6 }
  0x62   : > { %v755_v30 = vrot.slane %v753_v6, 4  ;;  %v760_v25 = vrot.slane %v6902_v5, 5  ;;  %v5640_v40 = vrot.slane %v5632_v37, 9  ;;  %v3293_v60 = vrot.slane %v6921_v43, 5 }
  0x63   : > { %6061 = vmatmul.mubr.msk.bf16.vlgmr.msra.gmra.mrb[0].mxu0 %vm420_vm3, %v5317_v28  ;;  %v8972_v28 = vld [vmem:[#allocation3_spill] sm:$0xff] }
  0x64   : > { %6077 = vmatpush3.bf16.msra.mxu0 %v6839_v0  ;;  %6064 = vmatprep.mubr.msk.bf16.mxu0 %vm420_vm3, %v5318_v41  ;;  %v763_v55 = vrot.slane %v8972_v28, 5  ;;  %v7218_v0 = vsel %vm7138_vm7, %v5639_v53, %v3286_v1  ;;  %v3288_v41 = vrot.slane %v3286_v1, 4  ;;  %v7228_v33 = vsel %vm7138_vm7, %v755_v30, %v756_v63  ;;  %v8973_v1 = vld [vmem:[#allocation4_spill] sm:$0xff]  ;;  %v8977_v63 = vld [vmem:[#allocation7_spill] sm:$0xff] }
  0x65   : > { %6623 = vmatprep.subr.msk.bf16.mxu0 %vm445_vm0, %v7177_v52  ;;  %v7232_v6 = vsel %vm7138_vm7, %v5335_v19, %v760_v25  ;;  %v762_v53 = vrot.slane %v760_v25, 4  ;;  %v3296_v37 = vrot.slane %v8973_v1, 5  ;;  %v5633_v28 = vld [vmem:[%s6759_s26 + $0x90] sm:$0xe]  ;;  %v5343_v54 = vcombine.low %v7210_v29, %v7228_v33  ;;  %v8975_v25 = vld [vmem:[#allocation5_spill] sm:$0xff] }
  0x66   : > { %v7245_v59 = vsel %vm7138_vm7, %v3288_v41, %v3289_v57  ;;  %v3295_v19 = vrot.slane %v3293_v60, 4  ;;  %v715_v57 = vld [vmem:[%s6759_s26 + $0x3c] sm:$0xe]  ;;  %v770_v41 = vrot.slane %v8975_v25, 5  ;;  %v3300_v1 = vrot.slane %v6961_v42, 5 }
  0x67   : > { %6223 = vmatmul.mubr.msk.bf16.vlgmr.msra.gmra.mrb[0].mxu1 %vm420_vm3, %v5614_v14  ;;  %v7249_v14 = vsel %vm7138_vm7, %v5640_v40, %v3293_v60  ;;  %v7257_v47 = vsel %vm7138_vm7, %v762_v53, %v763_v55  ;;  %v5641_v40 = vrot.slane %v5633_v28, 9  ;;  %v5634_v60 = vld [vmem:[%s6759_s26 + $0x9c] sm:$0xe]  ;;  %v5337_v25 = vrot.slane %v715_v57, 9  ;;  %v716_v55 = vld [vmem:[%s6759_s26 + $0x48] sm:$0xe] }
  0x68   : > { %6239 = vmatpush3.bf16.msra.mxu1 %v8974_v46  ;;  %6226 = vmatprep.mubr.msk.bf16.mxu1 %vm420_vm3, %v5615_v62  ;;  %v5336_v62 = vrot.slane %v714_v17, 9  ;;  %v767_v46 = vrot.slane %v6941_v4, 5  ;;  %v7265_v30 = vsel %vm7138_vm7, %v3295_v19, %v3296_v37  ;;  %v8976_v37 = vld [vmem:[#allocation6_spill] sm:$0xff]  ;;  %v774_v28 = vrot.slane %v6981_v18, 5 }
  0x69   : > { %6632 = vmatprep.subr.msk.bf16.mxu1 %vm445_vm0, %v7206_v24  ;;  %v3303_v19 = vrot.slane %v8976_v37, 5  ;;  %v777_v32 = vrot.slane %v8977_v63, 5  ;;  %v7294_v61 = vsel %vm7138_vm7, %v5641_v40, %v3300_v1  ;;  %v3302_v5 = vrot.slane %v3300_v1, 4  ;;  %v5635_v1 = vld [vmem:[%s6759_s26 + $0xa8] sm:$0xe] }
  0x6a   : > { %v7273_v17 = vsel %vm7138_vm7, %v5336_v62, %v767_v46  ;;  %v769_v53 = vrot.slane %v767_v46, 4  ;;  %v7300_v57 = vsel %vm7138_vm7, %v5337_v25, %v774_v28  ;;  %v776_v56 = vrot.slane %v774_v28, 4  ;;  %v717_v25 = vld [vmem:[%s6759_s26 + $0x54] sm:$0xe]  ;;  %v8982_v28 = vld [vmem:[#allocation11_spill] sm:$0xff] }
  0x6b   : > { %6065 = vmatmul.mubr.msk.bf16.gmra.mrb[4].mxu0 %vm420_vm3, %v5319_v13  ;;  %v5642_v13 = vrot.slane %v5634_v60, 9  ;;  %v3307_v4 = vrot.slane %v6999_v50, 5  ;;  %v7309_v63 = vsel %vm7138_vm7, %v3302_v5, %v3303_v19  ;;  %v5338_v60 = vrot.slane %v716_v55, 9  ;;  %v8981_v5 = vld [vmem:[#allocation9_spill] sm:$0xff] }
  0x6c   : > { %6068 = vmatprep.mubr.msk.bf16.mxu0 %vm420_vm3, %v5320_v22  ;;  %v7290_v62 = vsel %vm7138_vm7, %v769_v53, %v770_v41  ;;  %v8978_v22 = vcombine.low %v6913_v27, %v6921_v43  ;;  %v8979_v41 = vld [vmem:[#allocation8_spill] sm:$0xff]  ;;  %v781_v53 = vrot.slane %v7017_v26, 5  ;;  %v8980_v37 = vcombine.low %v6955_v36, %v6961_v42 }
  0x6d   : > { %v5345_v46 = vcombine.low %v7273_v17, %v7290_v62  ;;  %v3310_v40 = vrot.slane %v8979_v41, 5  ;;  %v5650_v27 = vcombine.low %v7294_v61, %v7309_v63  ;;  %v7322_v43 = vsel %vm7138_vm7, %v776_v56, %v777_v32  ;;  %v5636_v41 = vld [vmem:[%s6759_s26 + $0xb4] sm:$0xe] }
  0x6e   : > { %v7326_v19 = vsel %vm7138_vm7, %v5642_v13, %v3307_v4  ;;  %v3309_v55 = vrot.slane %v3307_v4, 4  ;;  %v7333_v36 = vsel %vm7138_vm7, %v5338_v60, %v781_v53  ;;  %v783_v42 = vrot.slane %v781_v53, 4 }
  0x6f   : > { %6227 = vmatmul.mubr.msk.bf16.gmra.mrb[4].mxu1 %vm420_vm3, %v8978_v22  ;;  %v784_v22 = vrot.slane %v8981_v5, 5  ;;  %v5643_v56 = vrot.slane %v5635_v1, 9  ;;  %v3314_v13 = vrot.slane %v7033_v9, 5  ;;  %v3317_v4 = vrot.slane %v7039_v2, 5 }
  0x70   : > { %6230 = vmatprep.mubr.msk.bf16.mxu1 %vm420_vm3, %v8980_v37  ;;  %v7338_v32 = vsel %vm7138_vm7, %v3309_v55, %v3310_v40  ;;  %v5339_v53 = vrot.slane %v717_v25, 9  ;;  %v788_v5 = vrot.slane %v8982_v28, 5  ;;  %v8983_v40 = vcombine.low %v6975_v10, %v6981_v18 }
  0x71   : > { %v7347_v60 = vsel %vm7138_vm7, %v783_v42, %v784_v22  ;;  %v7358_v2 = vsel %vm7138_vm7, %v5643_v56, %v3314_v13  ;;  %v3316_v55 = vrot.slane %v3314_v13, 4  ;;  %v791_v37 = vrot.slane %v7057_v51, 5 }
  0x72   : > { %v5347_v1 = vcombine.low %v7333_v36, %v7347_v60  ;;  %v8984_v25 = vcombine.low %v7011_v21, %v7017_v26  ;;  %v7367_v10 = vsel %vm7138_vm7, %v5339_v53, %v788_v5  ;;  %v790_v18 = vrot.slane %v788_v5, 4 }
  0x73   : > { %6069 = vmatmul.mubr.msk.bf16.gmra.mrb[8].mxu0 %vm420_vm3, %v8983_v40  ;;  %v5644_v42 = vrot.slane %v5636_v41, 9  ;;  %v3321_v22 = vrot.slane %v7070_v49, 5  ;;  %v8985_v40 = vrot.slane %v6765_v7, 5  ;;  %v8986_v56 = vrot.slane %v7134_v39, 9 }
  0x74   : > { %6072 = vmatprep.mubr.msk.bf16.mxu0 %vm420_vm3, %v8984_v25  ;;  %v8987_v13 = vrot.slane %v6768_v8, 5  ;;  %v7383_v26 = vsel %vm7138_vm7, %v3316_v55, %v3317_v4  ;;  %v3324_v41 = vrot.slane %v7079_v35, 5  ;;  %v8988_v7 = vcombine.low %v6996_v48, %v6999_v50  ;;  %v8990_v48 = vld [vmem:[#allocation10_spill] sm:$0xff] }
  0x75   : > { %v740_v51 = vsel %vm7138_vm7, %v8986_v56, %v8985_v40  ;;  %v5652_v39 = vcombine.low %v7358_v2, %v7383_v26  ;;  %v7394_v8 = vsel %vm7138_vm7, %v790_v18, %v791_v37  ;;  %v3323_v4 = vrot.slane %v3321_v22, 4  ;;  %v7568_v26 = vld [vmem:[%s8916_s1 + $0x14] sm:$0xf] }
  0x76   : > { %v743_v21 = vsel %vm7138_vm7, %v7186_v45, %v8987_v13  ;;  %v7398_v45 = vsel %vm7138_vm7, %v5644_v42, %v3321_v22  ;;  %v8989_v35 = vcombine.low %v7025_v38, %v7033_v9  ;;  %v5323_v50 = vcombine.low %v8990_v48, %v8982_v28  ;;  %v5390_v42 = vld [vmem:[%s6759_s26 + $0xc] sm:$0xf] }
  0x77   : > { %6231 = vmatmul.mubr.msk.bf16.gmra.mrb[8].mxu1 %vm420_vm3, %v8988_v7  ;;  %v5348_v53 = vcombine.low %v7367_v10, %v7394_v8  ;;  %v5341_v5 = vcombine.low %v740_v51, %v743_v21  ;;  %v8991_v37 = vrot.slane %v6779_v15, 5  ;;  %v8992_v55 = vrot.slane %v7145_v3, 9 }
  0x78   : > { %6234 = vmatprep.mubr.msk.bf16.mxu1 %vm420_vm3, %v8989_v35  ;;  %v8993_v18 = vrot.slane %v6782_v16, 5  ;;  %v7421_v9 = vsel %vm7138_vm7, %v3323_v4, %v3324_v41  ;;  %v5620_v15 = vcombine.low %v7065_v12, %v7070_v49  ;;  %v1043_v16 = vsel %vm445_vm0, %v7177_v52, 0  ;;  %v7450_v52 = vld [vmem:[%s6759_s26 + $0x10] sm:$0xf]  ;;  %v7479_v41 = vld [vmem:[%s6759_s26 + $0x1c] sm:$0xf] }
  0x79   : > { %v3273_v25 = vsel %vm7138_vm7, %v8992_v55, %v8991_v37  ;;  %v5653_v28 = vcombine.low %v7398_v45, %v7421_v9  ;;  %v8994_v12 = vcombine.low %v7157_v20, %v7161_v11  ;;  %v3574_v49 = vsel %vm445_vm0, %v7206_v24, 0  ;;  %v7457_v20 = vld [vmem:[%s8916_s1 + $0x10] sm:$0xf]  ;;  %v5695_v11 = vld [vmem:[%s6759_s26 + $0x6c] sm:$0xf] }
  0x7a   : > { %v3276_v38 = vsel %vm7138_vm7, %v7190_v34, %v8993_v18  ;;  %v7436_v34 = vld [vmem:[%s8916_s1 + $0x10] sm:$0xf]  ;;  %v8995_v24 = vcombine.low %v7165_v58, %v7169_v44  ;;  %v1183_v29 = vshrl.u32 %v5390_v42, 16  ;;  %v1186_v33 = vshll.u32 %v5390_v42, 16  ;;  %v5393_v44 = vld [vmem:[%s6759_s26 + $0x18] sm:$0xf] }
  0x7b   : > { %6073 = vmatmul.mubr.msk.bf16.gmra.mrb[12].mxu0 %vm420_vm3, %v5323_v50  ;;  %v5646_v3 = vcombine.low %v3273_v25, %v3276_v38  ;;  %v8996_v22 = vcombine.low %v7218_v0, %v7245_v59  ;;  %v1192_v40 = vshll.u32 %v7450_v52, 16  ;;  %v1196_v56 = vshrl.u32 %v7450_v52, 16  ;;  %v7482_v0 = vld [vmem:[%s6759_s26 + $0x14] sm:$0x1]  ;;  %v5698_v4 = vld [vmem:[%s6759_s26 + $0x78] sm:$0xf] }
  0x7c   : > { %6078 = vmatprep.mubr.msk.bf16.mxu0 %vm420_vm3, %v5341_v5  ;;  %v3714_v58 = vshrl.u32 %v5695_v11, 16  ;;  %v3717_v51 = vshll.u32 %v5695_v11, 16  ;;  %v1185_v59 = vrot.slane %v1183_v29, 4  ;;  %v1188_v7 = vrot.slane %v1186_v33, 5  ;;  %v7486_v35 = vld [vmem:[%s6759_s26 + $0x7c] sm:$0xf] }
  0x7d   : > { %v8997_v48 = vcombine.low %v7232_v6, %v7257_v47  ;;  %v7492_v50 = vrot.slane %v1192_v40, 5  ;;  %v1198_v5 = vrot.slane %v1196_v56, 4  ;;  %v7495_v37 = vld [vmem:[%s6759_s26 + $0x74] sm:$0x1]  ;;  %v1207_v18 = vshrl.u32 %v5393_v44, 16 }
  0x7e   : > { %v3716_v55 = vrot.slane %v3714_v58, 4  ;;  %v3719_v25 = vrot.slane %v3717_v51, 5  ;;  %v1210_v38 = vshll.u32 %v5393_v44, 16  ;;  %v8998_v47 = vcombine.low %v7249_v14, %v7265_v30  ;;  %v7519_v11 = vld [vmem:[%s6759_s26 + $0x20] sm:$0x1] }
  0x7f   : > { %6235 = vmatmul.mubr.msk.bf16.gmra.mrb[12].mxu1 %vm420_vm3, %v5620_v15  ;;  %v1220_v17 = vshrl.u32 %v7479_v41, 16  ;;  %v3738_v62 = vshrl.u32 %v5698_v4, 16  ;;  %v3751_v14 = vshrl.u32 %v7486_v35, 16  ;;  %v1199_v30 = vor.u32 %v1198_v5, %v7492_v50  ;;  %v7524_v33 = vld [vmem:[%s6759_s26 + $0x80] sm:$0x1] }
  0x80   : > { %6240 = vmatprep.mubr.msk.bf16.mxu1 %vm420_vm3, %v5646_v3  ;;  %v1216_v3 = vshll.u32 %v7479_v41, 16  ;;  %v3733_v42 = vshll.u32 %v7495_v37, 16  ;;  %v3720_v29 = vor.u32 %v3719_v25, %v3716_v55  ;;  %v1209_v63 = vrot.slane %v1207_v18, 4  ;;  %v5704_v9 = vld [vmem:[%s6759_s26 + $0x90] sm:$0xf] }
  0x81   : > { %v1222_v40 = vrot.slane %v1220_v17, 4  ;;  %v3740_v56 = vrot.slane %v3738_v62, 4  ;;  %v8999_v58 = vcombine.low %v7300_v57, %v7322_v43  ;;  %v1226_v25 = vshll.u32 %v7519_v11, 16 }
  0x82   : > { %v3721_v5 = vrot.slane %v3720_v29, 4  ;;  %v9000_v18 = vcombine.low %v7326_v19, %v7338_v32  ;;  %v7558_v32 = vld [vmem:[%s6759_s26 + $0x2c] sm:$0x1]  ;;  %v1425_v10 = vsel %vm445_vm0, %v7436_v34, 0 }
  0x83   : > { %6079 = vmatmul.mubr.msk.bf16.vlgmr.msra.gmra.mrb[0].mxu0 %vm420_vm3, %v8994_v12  ;;  %v1202_v12 = vshll.u32 %v7482_v0, 16 }
  0x84   : > { %6095 = vmatpush3.bf16.msra.mxu0 %v1043_v16  ;;  %6082 = vmatprep.mubr.msk.bf16.mxu0 %vm420_vm3, %v5343_v54  ;;  %v7465_v54 = vld [vmem:[%s6759_s26 + $0x70] sm:$0xf]  ;;  %v1189_v16 = vor.u32 %v1188_v7, %v1185_v59  ;;  %v3753_v59 = vrot.slane %v3751_v14, 4  ;;  %v7535_v7 = vld [vmem:[%s6759_s26 + $0x28] sm:$0xf] }
  0x85   : > { %6624 = vmatprep.subr.msk.bf16.mxu0 %vm445_vm0, %v7436_v34  ;;  %v3723_v13 = vshll.u32 %v7465_v54, 16  ;;  %v3727_v21 = vshrl.u32 %v7465_v54, 16  ;;  %v7616_v34 = vsel %vm445_vm0, %v7568_v26, 0 }
  0x86   : > { %v1190_v51 = vrot.slane %v1189_v16, 4  ;;  %v1244_v16 = vshrl.u32 %v7535_v7, 16 }
  0x87   : > { %6241 = vmatmul.mubr.msk.bf16.vlgmr.msra.gmra.mrb[0].mxu1 %vm420_vm3, %v8995_v24  ;;  %v7501_v15 = vrot.slane %v3723_v13, 5  ;;  %v3729_v6 = vrot.slane %v3727_v21, 4  ;;  %v5396_v24 = vld [vmem:[%s6759_s26 + $0x24] sm:$0xf]  ;;  %v1204_v13 = vrot.slane %v1202_v12, 5  ;;  %v7575_v12 = vrot.slane %v1226_v25, 5 }
  0x88   : > { %6257 = vmatpush3.bf16.msra.mxu1 %v3574_v49  ;;  %6244 = vmatprep.mubr.msk.bf16.mxu1 %vm420_vm3, %v8996_v22  ;;  %v3747_v49 = vshll.u32 %v7486_v35, 16  ;;  %v7526_v22 = vrot.slane %v1216_v3, 5  ;;  %v1231_v57 = vshrl.u32 %v5396_v24, 16  ;;  %v1234_v43 = vshll.u32 %v5396_v24, 16  ;;  %v5701_v3 = vld [vmem:[%s6759_s26 + $0x84] sm:$0xf] }
  0x89   : > { %6633 = vmatprep.subr.msk.bf16.mxu1 %vm445_vm0, %v7457_v20  ;;  %v3730_v61 = vor.u32 %v3729_v6, %v7501_v15 }
  0x8a   : > { %v7532_v21 = vrot.slane %v3747_v49, 5  ;;  %v1223_v36 = vor.u32 %v1222_v40, %v7526_v22  ;;  %v1233_v17 = vrot.slane %v1231_v57, 4  ;;  %v1236_v62 = vrot.slane %v1234_v43, 5  ;;  %v6664_v49 = vld [vmem:[%s6759_s26 + $0x6c] sm:$0xff]   ;;  %v6665_v57 = vld [vmem:[%s6759_s26 + $0x18] sm:$0xff]  }
  0x8b   : > { %6083 = vmatmul.mubr.msk.bf16.gmra.mrb[4].mxu0 %vm420_vm3, %v8997_v48  ;;  %v3735_v48 = vrot.slane %v3733_v42, 5  ;;  %v3731_v6 = vrot.slane %v3730_v61, 4  ;;  %v1250_v61 = vshll.u32 %v7558_v32, 16  ;;  %v7603_v40 = vrot.slane %v1244_v16, 4  ;;  %v6666_v16 = vld [vmem:[%s6759_s26 + $0x78] sm:$0xff]  }
  0x8c   : > { %6086 = vmatprep.mubr.msk.bf16.mxu0 %vm420_vm3, %v5345_v46  ;;  %v3741_v46 = vshll.u32 %v5698_v4, 16  ;;  %v1200_v4 = vrot.slane %v1199_v30, 4  ;;  %v3754_v19 = vor.u32 %v3753_v59, %v7532_v21  ;;  %v7580_v30 = vrot.slane %v1223_v36, 4  ;;  %v7620_v59 = vld [vmem:[%s6759_s26 + $0x34] sm:$0xf] }
  0x8d   : > { %v3736_v14 = vsel %vm6797_vm4, %v3731_v6, %v3735_v48  ;;  %v1237_v8 = vor.u32 %v1236_v62, %v1233_v17  ;;  %9001 = vst [vmem:[#allocation3_spill] sm:$0xff] %v7620_v59  ;;  %v1264_v62 = vshll.u32 %v7620_v59, 16 }
  0x8e   : > { %v3743_v44 = vrot.slane %v3741_v46, 5  ;;  %v1240_v46 = vshll.u32 %v7535_v7, 16  ;;  %v1205_v2 = vsel %vm6797_vm4, %v1200_v4, %v1204_v13  ;;  %v7595_v29 = vrot.slane %v3754_v19, 4  ;;  %v5399_v13 = vld [vmem:[%s6759_s26 + $0x30] sm:$0xf] }
  0x8f   : > { %6245 = vmatmul.mubr.msk.bf16.gmra.mrb[4].mxu1 %vm420_vm3, %v8998_v47  ;;  %v1195_v47 = vsel %vm6797_vm4, %v1190_v51, %v7492_v50  ;;  %v7656_v6 = vrot.slane %v1237_v8, 4  ;;  %v7666_v19 = vld [vmem:[%s6759_s26 + $0x8c] sm:$0x1]  ;;  %v1258_v17 = vshll.u32 %v5399_v13, 16  ;;  %v7684_v4 = vrot.slane %v1264_v62, 5 }
  0x90   : > { %6248 = vmatprep.mubr.msk.bf16.mxu1 %vm420_vm3, %v5650_v27  ;;  %v1212_v27 = vrot.slane %v1210_v38, 5  ;;  %v6663_v38 = vld [vmem:[%s6759_s26 + $0xc] sm:$0xff]   ;;  %v3744_v60 = vor.u32 %v3743_v44, %v3740_v56  ;;  %v7606_v56 = vld [vmem:[%s6759_s26 + $0x88] sm:$0xf]  ;;  %v3955_v44 = vsel %vm445_vm0, %v7457_v20, 0  ;;  %9004 = vst [vmem:[#allocation5_spill] sm:$0xff] %v7666_v19 }
  0x91   : > { %v3781_v43 = vshll.u32 %v7666_v19, 16  ;;  %v1260_v20 = vrot.slane %v1258_v17, 5 }
  0x92   : > { %v1213_v55 = vor.u32 %v1212_v27, %v1209_v63  ;;  %v7582_v42 = vrot.slane %v3744_v60, 4  ;;  %v3762_v63 = vshrl.u32 %v5701_v3, 16  ;;  %v3765_v27 = vshll.u32 %v5701_v3, 16 }
  0x93   : > { %6087 = vmatmul.mubr.msk.bf16.gmra.mrb[8].mxu0 %vm420_vm3, %v8999_v58  ;;  %v7610_v58 = vcombine.low %v1195_v47, %v1205_v2  ;;  %v3771_v60 = vshll.u32 %v7606_v56, 16  ;;  %v7663_v47 = vld [vmem:[%s6759_s26 + $0x40] sm:$0xf]  ;;  %v1255_v3 = vshrl.u32 %v5399_v13, 16  ;;  %v3786_v2 = vshrl.u32 %v5704_v9, 16 }
  0x94   : > { %6090 = vmatprep.mubr.msk.bf16.mxu0 %vm420_vm3, %v5347_v1  ;;  %v3757_v1 = vshll.u32 %v7524_v33, 16  ;;  %v7573_v50 = vrot.slane %v1213_v55, 4  ;;  %v3764_v55 = vrot.slane %v3762_v63, 4  ;;  %v3767_v25 = vrot.slane %v3765_v27, 5  ;;  %9003 = vst [vmem:[#allocation2_spill] sm:$0xff] %v7663_v47 }
  0x95   : > { %v1288_v8 = vshll.u32 %v7663_v47, 16 }
  0x96   : > { %v7584_v24 = vrot.slane %v3757_v1, 5  ;;  %v3775_v1 = vshrl.u32 %v7606_v56, 16  ;;  %v3768_v13 = vor.u32 %v3767_v25, %v3764_v55  ;;  %v7689_v55 = vld [vmem:[%s6759_s26 + $0x38] sm:$0x1]  ;;  %v3788_v25 = vrot.slane %v3786_v2, 4 }
  0x97   : > { %6249 = vmatmul.mubr.msk.bf16.gmra.mrb[8].mxu1 %vm420_vm3, %v9000_v18  ;;  %v5402_v18 = vld [vmem:[%s6759_s26 + $0x3c] sm:$0xf]  ;;  %9005 = vst [vmem:[#allocation6_spill] sm:$0xff] %v7689_v55  ;;  %v7697_v62 = vrot.slane %v1288_v8, 5  ;;  %v1274_v8 = vshll.u32 %v7689_v55, 16 }
  0x98   : > { %6252 = vmatprep.mubr.msk.bf16.mxu1 %vm420_vm3, %v5652_v39  ;;  %v3726_v39 = vsel %vm6797_vm4, %v3721_v5, %v7501_v15  ;;  %v7593_v15 = vld [vmem:[%s8916_s1 + $0x14] sm:$0xf]  ;;  %v7652_v5 = vrot.slane %v1250_v61, 5  ;;  %v6668_v61 = vld [vmem:[%s6759_s26 + $0x84] sm:$0xff]   ;;  %v1279_v63 = vshrl.u32 %v5402_v18, 16  ;;  %v1282_v27 = vshll.u32 %v5402_v18, 16 }
  0x99   : > { %v7612_v51 = vcombine.low %v3726_v39, %v3736_v14  ;;  %v7640_v45 = vsel %vm445_vm0, %v7593_v15, 0  ;;  %v3789_v39 = vshll.u32 %v5704_v9, 16  ;;  %v7678_v9 = vrot.slane %v3771_v60, 5 }
  0x9a   : > { %v3777_v48 = vrot.slane %v3775_v1, 4  ;;  %v1257_v18 = vrot.slane %v1255_v3, 4  ;;  %v1281_v3 = vrot.slane %v1279_v63, 4  ;;  %v1284_v17 = vrot.slane %v1282_v27, 5 }
  0x9b   : > { %6091 = vmatmul.mubr.msk.bf16.gmra.mrb[12].mxu0 %vm420_vm3, %v5348_v53  ;;  %v7601_v53 = vrot.slane %v1240_v46, 5  ;;  %v1268_v46 = vshrl.u32 %v7620_v59, 16 }
  0x9c   : > { %6096 = vmatprep.mubr.msk.bf16.mxu0 %vm420_vm3, %v6663_v38  ;;  %v6667_v38 = vld [vmem:[%s6759_s26 + $0x24] sm:$0xff]   ;;  %v3778_v63 = vor.u32 %v3777_v48, %v7678_v9  ;;  %v1261_v27 = vor.u32 %v1260_v20, %v1257_v18  ;;  %v1285_v19 = vor.u32 %v1284_v17, %v1281_v3  ;;  %v1276_v17 = vrot.slane %v1274_v8, 5 }
  0x9d   : > { %v1247_v36 = vor.u32 %v7603_v40, %v7601_v53  ;;  %v1292_v40 = vshrl.u32 %v7663_v47, 16  ;;  %v1270_v47 = vrot.slane %v1268_v46, 4  ;;  %v7742_v8 = vld [vmem:[%s6759_s26 + $0xa4] sm:$0x1] }
  0x9e   : > { %v1262_v3 = vrot.slane %v1261_v27, 4  ;;  %v6675_v27 = vld [vmem:[%s6759_s26 + $0x54] sm:$0xff]  }
  0x9f   : > { %6253 = vmatmul.mubr.msk.bf16.gmra.mrb[12].mxu1 %vm420_vm3, %v5653_v28  ;;  %v7644_v28 = vld [vmem:[%s6759_s26 + $0x94] sm:$0xf]  ;;  %v1294_v46 = vrot.slane %v1292_v40, 4  ;;  %v7706_v2 = vrot.slane %v1247_v36, 4 }
  0xa0   : > { %9002 = vst [vmem:[#allocation4_spill] sm:$0xff] %v7644_v28  ;;  %6258 = vmatprep.mubr.msk.bf16.mxu1 %vm420_vm3, %v6664_v49  ;;  %v3795_v49 = vshll.u32 %v7644_v28, 16  ;;  %v3799_v14 = vshrl.u32 %v7644_v28, 16  ;;  %v6670_v40 = vld [vmem:[%s6759_s26 + $0x90] sm:$0xff]  }
  0xa1   : > { %v1295_v20 = vor.u32 %v1294_v46, %v7697_v62 }
  0xa2   : > { %v7691_v60 = vrot.slane %v3795_v49, 5  ;;  %v3801_v1 = vrot.slane %v3799_v14, 4 }
  0xa3   : > { %6097 = vmatmul.mubr.msk.bf16.vlgmr.msra.gmra.mrb[0].mxu0 %vm420_vm3, %v6665_v57  ;;  %v6669_v57 = vld [vmem:[%s6759_s26 + $0x30] sm:$0xff]   ;;  %v1296_v55 = vrot.slane %v1295_v20, 4  ;;  %v5710_v20 = vld [vmem:[%s6759_s26 + $0xa8] sm:$0xf] }
  0xa4   : > { %6113 = vmatpush3.bf16.msra.mxu0 %v1425_v10  ;;  %6100 = vmatprep.mubr.msk.bf16.mxu0 %vm420_vm3, %v6667_v38  ;;  %v5707_v10 = vld [vmem:[%s6759_s26 + $0x9c] sm:$0xf]  ;;  %v3791_v38 = vrot.slane %v3789_v39, 5  ;;  %v7709_v39 = vld [vmem:[%s6759_s26 + $0x44] sm:$0x1]  ;;  %v3802_v36 = vor.u32 %v3801_v1, %v7691_v60 }
  0xa5   : > { %6625 = vmatprep.subr.msk.bf16.mxu0 %vm445_vm0, %v7568_v26  ;;  %v7695_v26 = vld [vmem:[%s6759_s26 + $0x98] sm:$0x1]  ;;  %9007 = vst [vmem:[#allocation8_spill] sm:$0xff] %v7709_v39  ;;  %v3810_v49 = vshrl.u32 %v5707_v10, 16  ;;  %v3813_v14 = vshll.u32 %v5707_v10, 16  ;;  %v3783_v10 = vrot.slane %v3781_v43, 5  ;;  %v1253_v43 = vsel %vm6797_vm4, %v7706_v2, %v7652_v5 }
  0xa6   : > { %9006 = vst [vmem:[#allocation7_spill] sm:$0xff] %v7695_v26  ;;  %v3792_v28 = vor.u32 %v3791_v38, %v3788_v25  ;;  %v3805_v59 = vshll.u32 %v7695_v26, 16  ;;  %v1298_v48 = vshll.u32 %v7709_v39, 16  ;;  %v5405_v1 = vld [vmem:[%s6759_s26 + $0x48] sm:$0xf] }
  0xa7   : > { %6259 = vmatmul.mubr.msk.bf16.vlgmr.msra.gmra.mrb[0].mxu1 %vm420_vm3, %v6666_v16  ;;  %v6671_v16 = vld [vmem:[%s6759_s26 + $0x3c] sm:$0xff]   ;;  %v3812_v18 = vrot.slane %v3810_v49, 4  ;;  %v3803_v49 = vrot.slane %v3802_v36, 4  ;;  %v7736_v39 = vld [vmem:[%s6759_s26 + $0x4c] sm:$0xf]  ;;  %v1303_v2 = vshrl.u32 %v5405_v1, 16 }
  0xa8   : > { %6275 = vmatpush3.bf16.msra.mxu1 %v3955_v44  ;;  %6262 = vmatprep.mubr.msk.bf16.mxu1 %vm420_vm3, %v6668_v61  ;;  %v7711_v61 = vrot.slane %v3768_v13, 4  ;;  %v1271_v44 = vor.u32 %v1270_v47, %v7684_v4  ;;  %v6672_v13 = vld [vmem:[%s6759_s26 + $0x9c] sm:$0xff]   ;;  %v3815_v47 = vrot.slane %v3813_v14, 5  ;;  %v3807_v14 = vrot.slane %v3805_v59, 5  ;;  %v6673_v26 = vld [vmem:[%s6759_s26 + $0x48] sm:$0xff]  }
  0xa9   : > { %6634 = vmatprep.subr.msk.bf16.mxu1 %vm445_vm0, %v7593_v15  ;;  %v7716_v15 = vld [vmem:[%s6759_s26 + $0xa0] sm:$0xf]  ;;  %v1300_v5 = vrot.slane %v1298_v48, 5  ;;  %v1312_v36 = vshll.u32 %v7736_v39, 16  ;;  %v6674_v48 = vld [vmem:[%s6759_s26 + $0xa8] sm:$0xff]  }
  0xaa   : > { %9008 = vst [vmem:[#allocation9_spill] sm:$0xff] %v7716_v15  ;;  %v3819_v25 = vshll.u32 %v7716_v15, 16  ;;  %v3823_v38 = vshrl.u32 %v7716_v15, 16  ;;  %v1272_v46 = vrot.slane %v1271_v44, 4  ;;  %v1286_v15 = vrot.slane %v1285_v19, 4 }
  0xab   : > { %6101 = vmatmul.mubr.msk.bf16.gmra.mrb[4].mxu0 %vm420_vm3, %v6669_v57  ;;  %v3779_v57 = vrot.slane %v3778_v63, 4  ;;  %v1306_v63 = vshll.u32 %v5405_v1, 16  ;;  %v3816_v44 = vor.u32 %v3815_v47, %v3812_v18  ;;  %v1267_v18 = vsel %vm6797_vm4, %v1262_v3, %v7684_v4 }
  0xac   : > { %6104 = vmatprep.mubr.msk.bf16.mxu0 %vm420_vm3, %v6671_v16  ;;  %v3793_v16 = vrot.slane %v3792_v28, 4  ;;  %v7744_v28 = vrot.slane %v3819_v25, 5  ;;  %v3825_v59 = vrot.slane %v3823_v38, 4  ;;  %v1277_v47 = vsel %vm6797_vm4, %v1272_v46, %v1276_v17  ;;  %v7791_v46 = vld [vmem:[%s6759_s26 + $0x50] sm:$0x1] }
  0xad   : > { %v3784_v19 = vsel %vm6797_vm4, %v3779_v57, %v3783_v10  ;;  %v6676_v10 = vld [vmem:[%s6759_s26 + $0xb4] sm:$0xff]   ;;  %v1291_v25 = vsel %vm6797_vm4, %v1286_v15, %v7697_v62  ;;  %v3829_v4 = vshll.u32 %v7742_v8, 16  ;;  %v1305_v38 = vrot.slane %v1303_v2, 4 }
  0xae   : > { %v1308_v1 = vrot.slane %v1306_v63, 5  ;;  %v7775_v57 = vrot.slane %v3816_v44, 4  ;;  %v3834_v3 = vshrl.u32 %v5710_v20, 16  ;;  %v9009_v62 = vsel %vm6797_vm4, %v7580_v30, %v7575_v12 }
  0xaf   : > { %6263 = vmatmul.mubr.msk.bf16.gmra.mrb[4].mxu1 %vm420_vm3, %v6670_v40  ;;  %v3774_v40 = vsel %vm6797_vm4, %v7711_v61, %v7678_v9  ;;  %v3798_v9 = vsel %vm6797_vm4, %v3793_v16, %v7691_v60  ;;  %v3808_v61 = vsel %vm6797_vm4, %v3803_v49, %v3807_v14  ;;  %v1301_v60 = vsel %vm6797_vm4, %v1296_v55, %v1300_v5 }
  0xb0   : > { %6266 = vmatprep.mubr.msk.bf16.mxu1 %vm420_vm3, %v6672_v13  ;;  %v1316_v13 = vshrl.u32 %v7736_v39, 16  ;;  %v9010_v15 = vsel %vm6797_vm4, %v7573_v50, %v7526_v22  ;;  %v7793_v55 = vrot.slane %v1312_v36, 5  ;;  %v3837_v49 = vshll.u32 %v5710_v20, 16  ;;  %v7845_v36 = vld [vmem:[%s6759_s26 + $0xb8] sm:$0xf] }
  0xb1   : > { %v7788_v17 = vcombine.low %v9010_v15, %v9009_v62  ;;  %v9011_v12 = vsel %vm6797_vm4, %v7595_v29, %v7584_v24  ;;  %v9012_v22 = vsel %vm6797_vm4, %v7582_v42, %v7532_v21  ;;  %v9013_v30 = vsel %vm6797_vm4, %v7656_v6, %v7601_v53  ;;  %v7820_v24 = vld [vmem:[%s6759_s26 + $0xac] sm:$0xf]  ;;  %v5408_v29 = vld [vmem:[%s6759_s26 + $0x54] sm:$0xf]  ;;  %v6677_v21 = vld [vmem:[%s6759_s26 + $0x60] sm:$0xff]   ;;  %9015 = vst [vmem:[#allocation10_spill] sm:$0xff] %v7845_v36 }
  0xb2   : > { %v1318_v16 = vrot.slane %v1316_v13, 4  ;;  %v7806_v50 = vcombine.low %v9012_v22, %v9011_v12  ;;  %v7813_v14 = vcombine.low %v9013_v30, %v1253_v43  ;;  %v7815_v5 = vcombine.low %v3774_v40, %v3784_v19  ;;  %v7832_v43 = vld [vmem:[%s6759_s26 + $0x58] sm:$0xf]  ;;  %v7849_v20 = vld [vmem:[%s6759_s26 + $0xb0] sm:$0x1] }
  0xb3   : > { %6105 = vmatmul.mubr.msk.bf16.gmra.mrb[8].mxu0 %vm420_vm3, %v6673_v26  ;;  %v3826_v26 = vor.u32 %v3825_v59, %v7744_v28  ;;  %v7817_v2 = vcombine.low %v1267_v18, %v1277_v47  ;;  %v7825_v42 = vcombine.low %v3798_v9, %v3808_v61  ;;  %v7827_v63 = vcombine.low %v1291_v25, %v1301_v60  ;;  %v6678_v9 = vld [vmem:[%s6759_s26 + $0xc0] sm:$0xff]  }
  0xb4   : > { %6108 = vmatprep.mubr.msk.bf16.mxu0 %vm420_vm3, %v6675_v27  ;;  %v7829_v53 = vrot.slane %v3829_v4, 5  ;;  %v1309_v6 = vor.u32 %v1308_v1, %v1305_v38  ;;  %9014 = vst [vmem:[#allocation11_spill] sm:$0xff] %v7832_v43  ;;  %v5713_v27 = vld [vmem:[%s6759_s26 + $0xb4] sm:$0xf]  ;;  %v1322_v40 = vshll.u32 %v7791_v46, 16  ;;  %v7842_v19 = vrot.slane %v3834_v3, 4 }
  0xb5   : > { %v7839_v59 = vrot.slane %v3826_v26, 4  ;;  %v1319_v13 = vor.u32 %v1318_v16, %v7793_v55  ;;  %9016 = vst [vmem:[#allocation12_spill] sm:$0xff] %v7849_v20  ;;  %v3843_v18 = vshll.u32 %v7820_v24, 16  ;;  %v3847_v47 = vshrl.u32 %v7820_v24, 16 }
  0xb6   : > { %v1327_v61 = vshrl.u32 %v5408_v29, 16  ;;  %v1336_v25 = vshll.u32 %v7832_v43, 16  ;;  %v1340_v4 = vshrl.u32 %v7832_v43, 16  ;;  %v3858_v38 = vshrl.u32 %v5713_v27, 16 }
  0xb7   : > { %6267 = vmatmul.mubr.msk.bf16.gmra.mrb[8].mxu1 %vm420_vm3, %v6674_v48  ;;  %v7851_v48 = vrot.slane %v3837_v49, 5  ;;  %v3861_v1 = vshll.u32 %v5713_v27, 16  ;;  %v3867_v60 = vshll.u32 %v7845_v36, 16  ;;  %v3871_v26 = vshrl.u32 %v7845_v36, 16  ;;  %v5411_v49 = vld [vmem:[%s6759_s26 + $0x60] sm:$0xf] }
  0xb8   : > { %6270 = vmatprep.mubr.msk.bf16.mxu1 %vm420_vm3, %v6676_v10  ;;  %v1330_v10 = vshll.u32 %v5408_v29, 16  ;;  %v7867_v62 = vrot.slane %v1309_v6, 4  ;;  %v7869_v15 = vrot.slane %v1322_v40, 5  ;;  %v3853_v16 = vshll.u32 %v7849_v20, 16  ;;  %v7880_v29 = vld [vmem:[%s6759_s26 + $0x5c] sm:$0x1] }
  0xb9   : > { %v7873_v12 = vrot.slane %v1319_v13, 4  ;;  %v3840_v22 = vor.u32 %v7851_v48, %v7842_v19  ;;  %v3849_v30 = vrot.slane %v3847_v47, 4  ;;  %9017 = vst [vmem:[#allocation13_spill] sm:$0xff] %v7880_v29  ;;  %v1329_v6 = vrot.slane %v1327_v61, 4  ;;  %v5716_v13 = vld [vmem:[%s6759_s26 + $0xc0] sm:$0xf] }
  0xba   : > { %v1332_v27 = vrot.slane %v1330_v10, 5  ;;  %v7886_v40 = vrot.slane %v1336_v25, 5  ;;  %v1342_v44 = vrot.slane %v1340_v4, 4  ;;  %v7892_v19 = vld [vmem:[%s6759_s26 + $0xbc] sm:$0x1]  ;;  %v3860_v48 = vrot.slane %v3858_v38, 4 }
  0xbb   : > { %6109 = vmatmul.mubr.msk.bf16.gmra.mrb[12].mxu0 %vm420_vm3, %v6677_v21  ;;  %v7883_v21 = vld [vmem:[%s6759_s26 + $0x64] sm:$0xf]  ;;  %9019 = vst [vmem:[#allocation15_spill] sm:$0xff] %v7892_v19  ;;  %v7894_v47 = vrot.slane %v3867_v60, 5  ;;  %v3873_v3 = vrot.slane %v3871_v26, 4  ;;  %v1351_v36 = vshrl.u32 %v5411_v49, 16 }
  0xbc   : > { %6114 = vmatprep.mubr.msk.bf16.mxu0 %vm420_vm3, %v7610_v58  ;;  %v7877_v58 = vrot.slane %v3843_v18, 5  ;;  %9018 = vst [vmem:[#allocation14_spill] sm:$0xff] %v7883_v21  ;;  %v3863_v18 = vrot.slane %v3861_v1, 5  ;;  %v1354_v43 = vshll.u32 %v5411_v49, 16  ;;  %v1364_v61 = vshrl.u32 %v7883_v21, 16 }
  0xbd   : > { %v7899_v10 = vld [vmem:[%s6759_s26 + $0xc4] sm:$0xf]  ;;  %v7902_v4 = vrot.slane %v3853_v16, 5  ;;  %v3885_v20 = vshll.u32 %v5716_v13, 16  ;;  %v1333_v38 = vor.u32 %v1332_v27, %v1329_v6  ;;  %v1343_v1 = vor.u32 %v1342_v44, %v7886_v40  ;;  %v7910_v49 = vld [vmem:[%s8916_s1 + $0x18] sm:$0xf] }
  0xbe   : > { %v3850_v25 = vor.u32 %v3849_v30, %v7877_v58  ;;  %v1346_v60 = vshll.u32 %v7880_v29, 16  ;;  %v3877_v26 = vshll.u32 %v7892_v19, 16  ;;  %v3864_v30 = vor.u32 %v3863_v18, %v3860_v48  ;;  %v7921_v44 = vld [vmem:[%s6759_s26 + $0x68] sm:$0x1] }
  0xbf   : > { %6271 = vmatmul.mubr.msk.bf16.gmra.mrb[12].mxu1 %vm420_vm3, %v6678_v9  ;;  %v1360_v9 = vshll.u32 %v7883_v21, 16  ;;  %v3874_v16 = vor.u32 %v3873_v3, %v7894_v47  ;;  %v3895_v6 = vshrl.u32 %v7899_v10, 16  ;;  %v1353_v27 = vrot.slane %v1351_v36, 4 }
  0xc0   : > { %6276 = vmatprep.mubr.msk.bf16.mxu1 %vm420_vm3, %v7612_v51  ;;  %v3882_v51 = vshrl.u32 %v5716_v13, 16  ;;  %v3891_v13 = vshll.u32 %v7899_v10, 16  ;;  %v1356_v21 = vrot.slane %v1354_v43, 5  ;;  %v1366_v29 = vrot.slane %v1364_v61, 4 }
  0xc1   : > { %v7923_v19 = vrot.slane %v1360_v9, 5  ;;  %v3851_v48 = vrot.slane %v3850_v25, 4  ;;  %v3887_v3 = vrot.slane %v3885_v20, 5  ;;  %v1344_v43 = vrot.slane %v1343_v1, 4 }
  0xc2   : > { %v3884_v18 = vrot.slane %v3882_v51, 4  ;;  %v1348_v36 = vrot.slane %v1346_v60, 5  ;;  %v3879_v9 = vrot.slane %v3877_v26, 5  ;;  %v3865_v20 = vrot.slane %v3864_v30, 4  ;;  %v7952_v60 = vld [vmem:[%s6759_s26 + $0xc8] sm:$0x1] }
  0xc3   : > { %6115 = vmatmul.mubr.msk.bf16.vlgmr.msra.gmra.mrb[0].mxu0 %vm420_vm3, %v7788_v17  ;;  %v3841_v17 = vrot.slane %v3840_v22, 4  ;;  %v3875_v22 = vrot.slane %v3874_v16, 4  ;;  %v7937_v61 = vrot.slane %v3891_v13, 5  ;;  %v3897_v25 = vrot.slane %v3895_v6, 4 }
  0xc4   : > { %6131 = vmatpush3.bf16.msra.mxu0 %v7616_v34  ;;  %6118 = vmatprep.mubr.msk.bf16.mxu0 %vm420_vm3, %v7813_v14  ;;  %v7930_v34 = vld [vmem:[%s8916_s1 + $0x18] sm:$0xf]  ;;  %v1334_v14 = vrot.slane %v1333_v38, 4  ;;  %v9021_v51 = vsel %vm6797_vm4, %v7775_v57, %v7744_v28  ;;  %v1357_v38 = vor.u32 %v1356_v21, %v1353_v27  ;;  %v1367_v1 = vor.u32 %v1366_v29, %v7923_v19  ;;  %v5431_v29 = vld [vmem:[%s6759_s26 + $0xc] sm:$0xe] }
  0xc5   : > { %6626 = vmatprep.subr.msk.bf16.mxu0 %vm445_vm0, %v7910_v49  ;;  %v1325_v28 = vsel %vm6797_vm4, %v7873_v12, %v7869_v15  ;;  %v3846_v57 = vsel %vm6797_vm4, %v3841_v17, %v7877_v58  ;;  %v3856_v21 = vsel %vm6797_vm4, %v3851_v48, %v7902_v4  ;;  %v3870_v15 = vsel %vm6797_vm4, %v3865_v20, %v7894_v47  ;;  %v5736_v47 = vld [vmem:[%s6759_s26 + $0x6c] sm:$0xe] }
  0xc6   : > { %v1339_v26 = vsel %vm6797_vm4, %v1334_v14, %v7886_v40  ;;  %v3880_v12 = vsel %vm6797_vm4, %v3875_v22, %v3879_v9  ;;  %v3898_v58 = vor.u32 %v3897_v25, %v7937_v61  ;;  %v3901_v40 = vshll.u32 %v7952_v60, 16  ;;  %v5737_v9 = vld [vmem:[%s6759_s26 + $0x78] sm:$0xe] }
  0xc7   : > { %6277 = vmatmul.mubr.msk.bf16.vlgmr.msra.gmra.mrb[0].mxu1 %vm420_vm3, %v7806_v50  ;;  %v9020_v50 = vsel %vm6797_vm4, %v7839_v59, %v7829_v53  ;;  %v1315_v53 = vsel %vm6797_vm4, %v7867_v62, %v7793_v55  ;;  %v3888_v59 = vor.u32 %v3887_v3, %v3884_v18  ;;  %v1349_v55 = vsel %vm6797_vm4, %v1344_v43, %v1348_v36  ;;  %v5432_v3 = vld [vmem:[%s6759_s26 + $0x18] sm:$0xe] }
  0xc8   : > { %6293 = vmatpush3.bf16.msra.mxu1 %v7640_v45  ;;  %6280 = vmatprep.mubr.msk.bf16.mxu1 %vm420_vm3, %v7815_v5  ;;  %v5724_v45 = vcombine.low %v9021_v51, %v9020_v50  ;;  %v1370_v5 = vshll.u32 %v7921_v44, 16  ;;  %v1574_v62 = vrot.slane %v7450_v52, 5  ;;  %v1358_v4 = vrot.slane %v1357_v38, 4 }
  0xc9   : > { %6635 = vmatprep.subr.msk.bf16.mxu1 %vm445_vm0, %v7930_v34  ;;  %v1368_v52 = vrot.slane %v1367_v1, 4  ;;  %v5439_v16 = vrot.slane %v5431_v29, 9  ;;  %v5725_v13 = vcombine.low %v3846_v57, %v3856_v21  ;;  %v3889_v6 = vrot.slane %v3888_v59, 4 }
  0xca   : > { %v1372_v30 = vrot.slane %v1370_v5, 5  ;;  %v4104_v27 = vrot.slane %v7465_v54, 5  ;;  %v5421_v17 = vcombine.low %v1339_v26, %v1349_v55  ;;  %v5726_v48 = vcombine.low %v3870_v15, %v3880_v12  ;;  %v5434_v55 = vld [vmem:[%s6759_s26 + $0x30] sm:$0xe] }
  0xcb   : > { %6119 = vmatmul.mubr.msk.bf16.gmra.mrb[4].mxu0 %vm420_vm3, %v7817_v2  ;;  %v5420_v2 = vcombine.low %v1315_v53, %v1325_v28  ;;  %v1576_v18 = vrot.slane %v1574_v62, 4  ;;  %v3899_v14 = vrot.slane %v3898_v58, 4  ;;  %v3903_v43 = vrot.slane %v3901_v40, 5  ;;  %v5738_v28 = vld [vmem:[%s6759_s26 + $0x84] sm:$0xe] }
  0xcc   : > { %6122 = vmatprep.mubr.msk.bf16.mxu0 %vm420_vm3, %v7827_v63  ;;  %v1577_v63 = vrot.slane %v7482_v0, 5  ;;  %v1581_v36 = vrot.slane %v7479_v41, 5  ;;  %v4111_v20 = vrot.slane %v7486_v35, 5  ;;  %v1363_v54 = vsel %vm6797_vm4, %v1358_v4, %v7923_v19  ;;  %v5433_v35 = vld [vmem:[%s6759_s26 + $0x24] sm:$0xe] }
  0xcd   : > { %v1575_v0 = vsel %vm7138_vm7, %v5439_v16, %v1574_v62  ;;  %v5744_v22 = vrot.slane %v5736_v47, 9  ;;  %v3894_v25 = vsel %vm6797_vm4, %v3889_v6, %v7937_v61  ;;  %v4106_v41 = vrot.slane %v4104_v27, 4  ;;  %v9023_v47 = vld [vmem:[#allocation3_spill] sm:$0xff] }
  0xce   : > { %v4107_v50 = vrot.slane %v7495_v37, 5  ;;  %v1588_v51 = vrot.slane %v7535_v7, 5  ;;  %v1578_v19 = vsel %vm7138_vm7, %v1576_v18, %v1577_v63  ;;  %v1584_v38 = vrot.slane %v7519_v11, 5 }
  0xcf   : > { %6281 = vmatmul.mubr.msk.bf16.gmra.mrb[4].mxu1 %vm420_vm3, %v7825_v42  ;;  %v1373_v42 = vsel %vm6797_vm4, %v1368_v52, %v1372_v30  ;;  %v5745_v1 = vrot.slane %v5737_v9, 9  ;;  %v3904_v5 = vsel %vm6797_vm4, %v3899_v14, %v3903_v43  ;;  %v1583_v61 = vrot.slane %v1581_v36, 4  ;;  %v9022_v52 = vld [vmem:[#allocation5_spill] sm:$0xff]  ;;  %v9025_v9 = vld [vmem:[#allocation6_spill] sm:$0xff] }
  0xd0   : > { %6284 = vmatprep.mubr.msk.bf16.mxu1 %vm420_vm3, %v5724_v45  ;;  %v5440_v45 = vrot.slane %v5432_v3, 9  ;;  %v4113_v53 = vrot.slane %v4111_v20, 4  ;;  %v4114_v37 = vrot.slane %v7524_v33, 5  ;;  %v5422_v7 = vcombine.low %v1363_v54, %v1373_v42  ;;  %v5435_v43 = vld [vmem:[%s6759_s26 + $0x3c] sm:$0xe]  ;;  %v9026_v42 = vld [vmem:[#allocation2_spill] sm:$0xff] }
  0xd1   : > { %v4105_v57 = vsel %vm7138_vm7, %v5744_v22, %v4104_v27  ;;  %v5441_v59 = vrot.slane %v5433_v35, 9  ;;  %v4108_v11 = vsel %vm7138_vm7, %v4106_v41, %v4107_v50  ;;  %v1590_v29 = vrot.slane %v1588_v51, 4  ;;  %v9027_v22 = vld [vmem:[#allocation9_spill] sm:$0xff]  ;;  %v5436_v41 = vld [vmem:[%s6759_s26 + $0x48] sm:$0xe] }
  0xd2   : > { %v1591_v21 = vrot.slane %v7558_v32, 5  ;;  %v4118_v26 = vrot.slane %v7606_v56, 5  ;;  %v5727_v33 = vcombine.low %v3894_v25, %v3904_v5  ;;  %v5448_v62 = vcombine.low %v1575_v0, %v1578_v19  ;;  %v9028_v50 = vld [vmem:[#allocation7_spill] sm:$0xff] }
  0xd3   : > { %6123 = vmatmul.mubr.msk.bf16.gmra.mrb[8].mxu0 %vm420_vm3, %v5420_v2  ;;  %v8030_v15 = vsel %vm445_vm0, %v7910_v49, 0  ;;  %v5746_v12 = vrot.slane %v5738_v28, 9  ;;  %v1582_v58 = vsel %vm7138_vm7, %v5440_v45, %v1581_v36  ;;  %v1585_v32 = vsel %vm7138_vm7, %v1583_v61, %v1584_v38  ;;  %v5739_v2 = vld [vmem:[%s6759_s26 + $0x90] sm:$0xe]  ;;  %v5740_v36 = vld [vmem:[%s6759_s26 + $0x9c] sm:$0xe] }
  0xd4   : > { %6126 = vmatprep.mubr.msk.bf16.mxu0 %vm420_vm3, %v5421_v17  ;;  %v8039_v56 = vsel %vm7138_vm7, %v5745_v1, %v4111_v20  ;;  %v8043_v40 = vsel %vm7138_vm7, %v4113_v53, %v4114_v37  ;;  %v5753_v49 = vcombine.low %v4105_v57, %v4108_v11  ;;  %v1589_v4 = vsel %vm7138_vm7, %v5441_v59, %v1588_v51  ;;  %v9024_v17 = vld [vmem:[#allocation4_spill] sm:$0xff]  ;;  %v5741_v19 = vld [vmem:[%s6759_s26 + $0xa8] sm:$0xe] }
  0xd5   : > { %v4121_v30 = vrot.slane %v9022_v52, 5  ;;  %v5442_v16 = vrot.slane %v5434_v55, 9  ;;  %v4120_v6 = vrot.slane %v4118_v26, 4  ;;  %v1595_v27 = vrot.slane %v9023_v47, 5  ;;  %v9029_v37 = vld [vmem:[#allocation8_spill] sm:$0xff] }
  0xd6   : > { %v5449_v18 = vcombine.low %v1582_v58, %v1585_v32  ;;  %v5754_v63 = vcombine.low %v8039_v56, %v8043_v40  ;;  %v8057_v3 = vsel %vm445_vm0, %v7930_v34, 0  ;;  %v8061_v14 = vsel %vm7138_vm7, %v5746_v12, %v4118_v26  ;;  %v9030_v55 = vld [vmem:[#allocation12_spill] sm:$0xff] }
  0xd7   : > { %6285 = vmatmul.mubr.msk.bf16.gmra.mrb[8].mxu1 %vm420_vm3, %v5725_v13  ;;  %v1592_v13 = vsel %vm7138_vm7, %v1590_v29, %v1591_v21  ;;  %v1598_v20 = vrot.slane %v9025_v9, 5  ;;  %v5747_v54 = vrot.slane %v5739_v2, 9  ;;  %v1602_v0 = vrot.slane %v9026_v42, 5  ;;  %v5437_v58 = vld [vmem:[%s6759_s26 + $0x54] sm:$0xe]  ;;  %v9034_v42 = vld [vmem:[#allocation15_spill] sm:$0xff] }
  0xd8   : > { %6288 = vmatprep.mubr.msk.bf16.mxu1 %vm420_vm3, %v5726_v48  ;;  %v4125_v48 = vrot.slane %v9024_v17, 5  ;;  %v4132_v25 = vrot.slane %v9027_v22, 5  ;;  %v5450_v34 = vcombine.low %v1589_v4, %v1592_v13  ;;  %v4128_v35 = vrot.slane %v9028_v50, 5  ;;  %v9032_v4 = vld [vmem:[#allocation10_spill] sm:$0xff]  ;;  %v8111_v13 = vld [vmem:[%s8916_s1 + $0x1c] sm:$0xf] }
  0xd9   : > { %v1609_v51 = vrot.slane %v7736_v39, 5  ;;  %v4139_v45 = vrot.slane %v7820_v24, 5  ;;  %v4122_v38 = vsel %vm7138_vm7, %v4120_v6, %v4121_v30  ;;  %v8079_v1 = vsel %vm7138_vm7, %v5442_v16, %v1595_v27  ;;  %v8146_v22 = vld [vmem:[%s8916_s1 + $0x1c] sm:$0xf]  ;;  %v5497_v50 = vld [vmem:[%s6759_s26 + $0x18] sm:$0xf] }
  0xda   : > { %v1597_v5 = vrot.slane %v1595_v27, 4  ;;  %v4127_v61 = vrot.slane %v4125_v48, 4  ;;  %v5443_v53 = vrot.slane %v5435_v43, 9  ;;  %v1605_v28 = vrot.slane %v9029_v37, 5 }
  0xdb   : > { %6127 = vmatmul.mubr.msk.bf16.gmra.mrb[12].mxu0 %vm420_vm3, %v5422_v7  ;;  %v5748_v39 = vrot.slane %v5740_v36, 9  ;;  %v4135_v7 = vrot.slane %v7742_v8, 5  ;;  %v1604_v24 = vrot.slane %v1602_v0, 4  ;;  %v4134_v57 = vrot.slane %v4132_v25, 4  ;;  %v9031_v8 = vld [vmem:[#allocation11_spill] sm:$0xff] }
  0xdc   : > { %6132 = vmatprep.mubr.msk.bf16.mxu0 %vm420_vm3, %v5448_v62  ;;  %v5444_v59 = vrot.slane %v5436_v41, 9  ;;  %v5749_v11 = vrot.slane %v5741_v19, 9  ;;  %v1611_v29 = vrot.slane %v1609_v51, 4  ;;  %v1612_v21 = vrot.slane %v7791_v46, 5  ;;  %v5438_v36 = vld [vmem:[%s6759_s26 + $0x60] sm:$0xe] }
  0xdd   : > { %v4141_v26 = vrot.slane %v4139_v45, 4  ;;  %v5755_v62 = vcombine.low %v8061_v14, %v4122_v38  ;;  %v8090_v12 = vsel %vm7138_vm7, %v5747_v54, %v4125_v48  ;;  %v1616_v32 = vrot.slane %v9031_v8, 5  ;;  %v9035_v38 = vld [vmem:[#allocation14_spill] sm:$0xff]  ;;  %v8211_v8 = vld [vmem:[%s6759_s26 + $0x28] sm:$0xf] }
  0xde   : > { %v4146_v52 = vrot.slane %v9032_v4, 5  ;;  %v1599_v30 = vsel %vm7138_vm7, %v1597_v5, %v1598_v20  ;;  %v8100_v46 = vsel %vm7138_vm7, %v4127_v61, %v4128_v35  ;;  %v1603_v16 = vsel %vm7138_vm7, %v5443_v53, %v1602_v0  ;;  %v9033_v20 = vld [vmem:[#allocation13_spill] sm:$0xff]  ;;  %v8178_v5 = vld [vmem:[%s6759_s26 + $0xc0] sm:$0xe] }
  0xdf   : > { %6289 = vmatmul.mubr.msk.bf16.gmra.mrb[12].mxu1 %vm420_vm3, %v5727_v33  ;;  %v4142_v33 = vrot.slane %v9030_v55, 5  ;;  %v8106_v2 = vsel %vm7138_vm7, %v5748_v39, %v4132_v25  ;;  %v1606_v6 = vsel %vm7138_vm7, %v1604_v24, %v1605_v28  ;;  %v8118_v47 = vsel %vm7138_vm7, %v4134_v57, %v4135_v7  ;;  %v8183_v61 = vld [vmem:[%s6759_s26 + $0x7c] sm:$0xf] }
  0xe0   : > { %6294 = vmatprep.mubr.msk.bf16.mxu1 %vm420_vm3, %v5753_v49  ;;  %v5742_v49 = vld [vmem:[%s6759_s26 + $0xb4] sm:$0xe]  ;;  %v8122_v27 = vsel %vm7138_vm7, %v5444_v59, %v1609_v51  ;;  %v8126_v17 = vsel %vm7138_vm7, %v5749_v11, %v4139_v45  ;;  %v8132_v48 = vsel %vm7138_vm7, %v1611_v29, %v1612_v21  ;;  %v5445_v14 = vrot.slane %v5437_v58, 9  ;;  %v5802_v51 = vld [vmem:[%s6759_s26 + $0x78] sm:$0xf] }
  0xe1   : > { %v5750_v43 = vrot.slane %v5742_v49, 9  ;;  %v1618_v9 = vrot.slane %v1616_v32, 4  ;;  %v1619_v54 = vrot.slane %v9033_v20, 5  ;;  %v4149_v0 = vrot.slane %v9034_v42, 5  ;;  %v5500_v58 = vld [vmem:[%s6759_s26 + $0x24] sm:$0xf] }
  0xe2   : > { %v5451_v25 = vcombine.low %v8079_v1, %v1599_v30  ;;  %v5756_v41 = vcombine.low %v8090_v12, %v8100_v46  ;;  %v5757_v35 = vcombine.low %v8106_v2, %v8118_v47  ;;  %v5453_v56 = vcombine.low %v8122_v27, %v8132_v48  ;;  %v8207_v12 = vld [vmem:[%s6759_s26 + $0x20] sm:$0x1]  ;;  %v5805_v30 = vld [vmem:[%s6759_s26 + $0x84] sm:$0xf] }
  0xe3   : > { %6133 = vmatmul.mubr.msk.bf16.vlgmr.msra.gmra.mrb[0].mxu0 %vm420_vm3, %v5449_v18  ;;  %v8136_v18 = vsel %vm7138_vm7, %v4141_v26, %v4142_v33  ;;  %v8170_v19 = vsel %vm7138_vm7, %v5445_v14, %v1616_v32  ;;  %v5446_v45 = vrot.slane %v5438_v36, 9  ;;  %v1623_v1 = vrot.slane %v9035_v38, 5  ;;  %v8226_v14 = vld [vmem:[%s6759_s26 + $0x88] sm:$0xf] }
  0xe4   : > { %6149 = vmatpush3.bf16.msra.mxu0 %v8030_v15  ;;  %6136 = vmatprep.mubr.msk.bf16.mxu0 %vm420_vm3, %v5450_v34  ;;  %v4148_v15 = vrot.slane %v4146_v52, 4  ;;  %v5452_v34 = vcombine.low %v1603_v16, %v1606_v6  ;;  %v5758_v40 = vcombine.low %v8126_v17, %v8136_v18  ;;  %v1620_v53 = vsel %vm7138_vm7, %v1618_v9, %v1619_v54  ;;  %v8220_v16 = vld [vmem:[%s6759_s26 + $0x80] sm:$0x1]  ;;  %v6679_v17 = vld [vmem:[%s6759_s26 + $0x18] sm:$0xff]  }
  0xe5   : > { %6627 = vmatprep.subr.msk.bf16.mxu0 %vm445_vm0, %v8111_v13  ;;  %v2018_v28 = vshrl.u32 %v5497_v50, 16  ;;  %v2021_v39 = vshll.u32 %v5497_v50, 16  ;;  %v4546_v57 = vshrl.u32 %v5802_v51, 16  ;;  %v4549_v59 = vshll.u32 %v5802_v51, 16  ;;  %9036 = vst [vmem:[#allocation5_spill] sm:$0xff] %v8226_v14 }
  0xe6   : > { %v8189_v37 = vsel %vm7138_vm7, %v4148_v15, %v4149_v0  ;;  %v1626_v11 = vrot.slane %v7921_v44, 5  ;;  %v5751_v29 = vrot.slane %v8178_v5, 9  ;;  %v4555_v21 = vshll.u32 %v8183_v61, 16 }
  0xe7   : > { %6295 = vmatmul.mubr.msk.bf16.vlgmr.msra.gmra.mrb[0].mxu1 %vm420_vm3, %v5754_v63  ;;  %v8165_v63 = vld [vmem:[%s6759_s26 + $0x1c] sm:$0xf]  ;;  %v4559_v26 = vshrl.u32 %v8183_v61, 16  ;;  %v5454_v55 = vcombine.low %v8170_v19, %v1620_v53  ;;  %v8202_v33 = vsel %vm7138_vm7, %v5446_v45, %v1623_v1  ;;  %v4156_v44 = vrot.slane %v7952_v60, 5  ;;  %v8241_v45 = vld [vmem:[%s6759_s26 + $0x2c] sm:$0x1] }
  0xe8   : > { %6311 = vmatpush3.bf16.msra.mxu1 %v8057_v3  ;;  %6298 = vmatprep.mubr.msk.bf16.mxu1 %vm420_vm3, %v5755_v62  ;;  %v8174_v3 = vsel %vm7138_vm7, %v5750_v43, %v4146_v52  ;;  %v2027_v7 = vshll.u32 %v8165_v63, 16  ;;  %v2031_v24 = vshrl.u32 %v8165_v63, 16  ;;  %v4153_v62 = vrot.slane %v7899_v10, 5  ;;  %9037 = vst [vmem:[#allocation3_spill] sm:$0xff] %v8241_v45 }
  0xe9   : > { %6636 = vmatprep.subr.msk.bf16.mxu1 %vm445_vm0, %v8146_v22  ;;  %v5759_v32 = vcombine.low %v8174_v3, %v8189_v37  ;;  %v1625_v49 = vrot.slane %v1623_v1, 4  ;;  %v2020_v4 = vrot.slane %v2018_v28, 4  ;;  %v2023_v52 = vrot.slane %v2021_v39, 5 }
  0xea   : > { %v8217_v46 = vrot.slane %v2027_v7, 5  ;;  %v2033_v10 = vrot.slane %v2031_v24, 4  ;;  %v4548_v60 = vrot.slane %v4546_v57, 4  ;;  %v4551_v2 = vrot.slane %v4549_v59, 5  ;;  %v5503_v7 = vld [vmem:[%s6759_s26 + $0x30] sm:$0xf] }
  0xeb   : > { %6137 = vmatmul.mubr.msk.bf16.gmra.mrb[4].mxu0 %vm420_vm3, %v5451_v25  ;;  %v8223_v6 = vrot.slane %v4555_v21, 5  ;;  %v4561_v47 = vrot.slane %v4559_v26, 4  ;;  %v2042_v27 = vshrl.u32 %v5500_v58, 16  ;;  %v2045_v48 = vshll.u32 %v5500_v58, 16  ;;  %v8258_v21 = vld [vmem:[%s6759_s26 + $0x34] sm:$0xf] }
  0xec   : > { %6140 = vmatprep.mubr.msk.bf16.mxu0 %vm420_vm3, %v5452_v34  ;;  %v2051_v43 = vshll.u32 %v8211_v8, 16  ;;  %v2055_v36 = vshrl.u32 %v8211_v8, 16  ;;  %v4570_v9 = vshrl.u32 %v5805_v30, 16  ;;  %v4573_v20 = vshll.u32 %v5805_v30, 16 }
  0xed   : > { %v1627_v54 = vsel %vm7138_vm7, %v1625_v49, %v1626_v11  ;;  %v4155_v15 = vrot.slane %v4153_v62, 4  ;;  %v2024_v42 = vor.u32 %v2023_v52, %v2020_v4  ;;  %v2037_v0 = vshll.u32 %v8207_v12, 16 }
  0xee   : > { %v2034_v25 = vor.u32 %v2033_v10, %v8217_v46  ;;  %v4579_v34 = vshll.u32 %v8226_v14, 16  ;;  %v4583_v50 = vshrl.u32 %v8226_v14, 16  ;;  %v4562_v51 = vor.u32 %v4561_v47, %v8223_v6  ;;  %v6680_v47 = vld [vmem:[%s6759_s26 + $0x78] sm:$0xff]   ;;  %v8443_v14 = vld [vmem:[%s6759_s26 + $0xb0] sm:$0x1] }
  0xef   : > { %6299 = vmatmul.mubr.msk.bf16.gmra.mrb[4].mxu1 %vm420_vm3, %v5756_v41  ;;  %v4565_v41 = vshll.u32 %v8220_v16, 16  ;;  %v2044_v19 = vrot.slane %v2042_v27, 4  ;;  %v2047_v3 = vrot.slane %v2045_v48, 5  ;;  %v8243_v38 = vrot.slane %v2051_v43, 5 }
  0xf0   : > { %6302 = vmatprep.mubr.msk.bf16.mxu1 %vm420_vm3, %v5757_v35  ;;  %v4552_v35 = vor.u32 %v4551_v2, %v4548_v60  ;;  %v2057_v1 = vrot.slane %v2055_v36, 4  ;;  %v4572_v5 = vrot.slane %v4570_v9, 4  ;;  %v4575_v53 = vrot.slane %v4573_v20, 5  ;;  %v8275_v2 = vld [vmem:[%s6759_s26 + $0x38] sm:$0x1] }
  0xf1   : > { %v5455_v37 = vcombine.low %v8202_v33, %v1627_v54  ;;  %v4157_v28 = vsel %vm7138_vm7, %v4155_v15, %v4156_v44  ;;  %v2039_v39 = vrot.slane %v2037_v0, 5  ;;  %v2025_v24 = vrot.slane %v2024_v42, 4  ;;  %9039 = vst [vmem:[#allocation6_spill] sm:$0xff] %v8275_v2  ;;  %v5808_v36 = vld [vmem:[%s6759_s26 + $0x90] sm:$0xf] }
  0xf2   : > { %v2035_v57 = vrot.slane %v2034_v25, 4  ;;  %v8255_v59 = vrot.slane %v4579_v34, 5  ;;  %v4585_v11 = vrot.slane %v4583_v50, 4  ;;  %v4563_v26 = vrot.slane %v4562_v51, 4  ;;  %v5554_v9 = vld [vmem:[%s8916_s1 + $0x20] sm:$0xf] }
  0xf3   : > { %6141 = vmatmul.mubr.msk.bf16.gmra.mrb[8].mxu0 %vm420_vm3, %v5453_v56  ;;  %v4154_v56 = vsel %vm7138_vm7, %v5751_v29, %v4153_v62  ;;  %v4553_v29 = vrot.slane %v4552_v35, 4  ;;  %v2061_v33 = vshll.u32 %v8241_v45, 16  ;;  %v8263_v62 = vld [vmem:[%s6759_s26 + $0x8c] sm:$0x1]  ;;  %v2048_v18 = vor.u32 %v2047_v3, %v2044_v19  ;;  %v8308_v35 = vld [vmem:[%s6759_s26 + $0x94] sm:$0xf] }
  0xf4   : > { %6144 = vmatprep.mubr.msk.bf16.mxu0 %vm420_vm3, %v5454_v55  ;;  %v4567_v55 = vrot.slane %v4565_v41, 5  ;;  %9038 = vst [vmem:[#allocation4_spill] sm:$0xff] %v8263_v62  ;;  %v4576_v44 = vor.u32 %v4575_v53, %v4572_v5  ;;  %v2066_v58 = vshrl.u32 %v5503_v7, 16  ;;  %v2069_v49 = vshll.u32 %v5503_v7, 16  ;;  %9040 = vst [vmem:[#allocation2_spill] sm:$0xff] %v8308_v35  ;;  %v6681_v3 = vld [vmem:[%s6759_s26 + $0x24] sm:$0xff]  }
  0xf5   : > { %v2075_v4 = vshll.u32 %v8258_v21, 16  ;;  %v5760_v52 = vcombine.low %v4154_v56, %v4157_v28  ;;  %v2030_v30 = vsel %vm6797_vm4, %v2025_v24, %v8217_v46  ;;  %v4586_v10 = vor.u32 %v4585_v11, %v8255_v59  ;;  %v6682_v56 = vld [vmem:[%s6759_s26 + $0x84] sm:$0xff]   ;;  %v6683_v28 = vld [vmem:[%s6759_s26 + $0x30] sm:$0xff]   ;;  %v5506_v24 = vld [vmem:[%s6759_s26 + $0x3c] sm:$0xf] }
  0xf6   : > { %v4589_v60 = vshll.u32 %v8263_v62, 16  ;;  %v2040_v27 = vsel %vm6797_vm4, %v2035_v57, %v2039_v39  ;;  %v4558_v48 = vsel %vm6797_vm4, %v4553_v29, %v8223_v6  ;;  %v4568_v43 = vsel %vm6797_vm4, %v4563_v26, %v4567_v55  ;;  %v8339_v57 = vld [vmem:[%s6759_s26 + $0x40] sm:$0xf] }
  0xf7   : > { %6303 = vmatmul.mubr.msk.bf16.gmra.mrb[8].mxu1 %vm420_vm3, %v5758_v40  ;;  %v2058_v40 = vor.u32 %v2057_v1, %v8243_v38  ;;  %v8286_v46 = vrot.slane %v2061_v33, 5  ;;  %v8293_v20 = vrot.slane %v2048_v18, 4  ;;  %v8297_v15 = vrot.slane %v4576_v44, 4  ;;  %9041 = vst [vmem:[#allocation9_spill] sm:$0xff] %v8339_v57  ;;  %v5811_v33 = vld [vmem:[%s6759_s26 + $0x9c] sm:$0xf] }
  0xf8   : > { %6306 = vmatprep.mubr.msk.bf16.mxu1 %vm420_vm3, %v5759_v32  ;;  %v2079_v32 = vshrl.u32 %v8258_v21, 16  ;;  %v2068_v6 = vrot.slane %v2066_v58, 4  ;;  %v2071_v42 = vrot.slane %v2069_v49, 5  ;;  %v8299_v0 = vrot.slane %v2075_v4, 5  ;;  %v6684_v18 = vld [vmem:[%s6759_s26 + $0x90] sm:$0xff]   ;;  %v9057_v31 = vld [vmem:[#allocation6_spill] sm:$0xff] }
  0xf9   : > { %v8295_v54 = vrot.slane %v2058_v40, 4  ;;  %v2085_v41 = vshll.u32 %v8275_v2, 16  ;;  %v8303_v34 = vrot.slane %v4586_v10, 4  ;;  %v8305_v50 = vrot.slane %v4589_v60, 5  ;;  %v5509_v4 = vld [vmem:[%s6759_s26 + $0x48] sm:$0xf] }
  0xfa   : > { %v2081_v25 = vrot.slane %v2079_v32, 4  ;;  %v4594_v51 = vshrl.u32 %v5808_v36, 16  ;;  %v4597_v19 = vshll.u32 %v5808_v36, 16  ;;  %v2260_v1 = vsel %vm445_vm0, %v8111_v13, 0  ;;  %v8364_v60 = vld [vmem:[%s6759_s26 + $0x4c] sm:$0xf] }
  0xfb   : > { %6145 = vmatmul.mubr.msk.bf16.gmra.mrb[12].mxu0 %vm420_vm3, %v5455_v37  ;;  %v4787_v5 = vsel %vm445_vm0, %v8146_v22, 0  ;;  %v8316_v53 = vcombine.low %v2030_v30, %v2040_v27  ;;  %v8319_v37 = vsel %vm445_vm0, %v5554_v9, 0  ;;  %v8323_v39 = vcombine.low %v4558_v48, %v4568_v43  ;;  %9043 = vst [vmem:[#allocation8_spill] sm:$0xff] %v8364_v60  ;;  %v6686_v22 = vld [vmem:[%s6759_s26 + $0x9c] sm:$0xff]  }
  0xfc   : > { %6150 = vmatprep.mubr.msk.bf16.mxu0 %vm420_vm3, %v6679_v17  ;;  %v2072_v11 = vor.u32 %v2071_v42, %v2068_v6  ;;  %v2082_v29 = vor.u32 %v2081_v25, %v8299_v0  ;;  %v8342_v26 = vrot.slane %v2085_v41, 5  ;;  %v4603_v55 = vshll.u32 %v8308_v35, 16  ;;  %v8347_v17 = vld [vmem:[%s6759_s26 + $0xa0] sm:$0xf]  ;;  %v8381_v41 = vld [vmem:[%s6759_s26 + $0x98] sm:$0x1] }
  0xfd   : > { %9042 = vst [vmem:[#allocation7_spill] sm:$0xff] %v8347_v17  ;;  %v8354_v44 = vrot.slane %v4594_v51, 4  ;;  %v8356_v58 = vrot.slane %v4597_v19, 5  ;;  %v4607_v49 = vshrl.u32 %v8308_v35, 16  ;;  %v2090_v32 = vshrl.u32 %v5506_v24, 16  ;;  %v6685_v6 = vld [vmem:[%s6759_s26 + $0x3c] sm:$0xff]  }
  0xfe   : > { %v2099_v30 = vshll.u32 %v8339_v57, 16  ;;  %v2103_v10 = vshrl.u32 %v8339_v57, 16  ;;  %v4618_v27 = vshrl.u32 %v5811_v33, 16  ;;  %v4621_v48 = vshll.u32 %v5811_v33, 16  ;;  %9044 = vst [vmem:[#allocation12_spill] sm:$0xff] %v8381_v41 }
  0xff   : > { %6307 = vmatmul.mubr.msk.bf16.gmra.mrb[12].mxu1 %vm420_vm3, %v5760_v52  ;;  %v2093_v52 = vshll.u32 %v5506_v24, 16  ;;  %v4627_v43 = vshll.u32 %v8347_v17, 16  ;;  %v4631_v36 = vshrl.u32 %v8347_v17, 16  ;;  %v8376_v42 = vrot.slane %v2072_v11, 4  ;;  %v8388_v24 = vld [vmem:[%s6759_s26 + $0x44] sm:$0x1] }
 0x100   : > { %6312 = vmatprep.mubr.msk.bf16.mxu1 %vm420_vm3, %v6680_v47  ;;  %v8370_v47 = vld [vmem:[%s8916_s1 + $0x20] sm:$0xf]  ;;  %v8378_v25 = vrot.slane %v2082_v29, 4  ;;  %v2114_v51 = vshrl.u32 %v5509_v4, 16  ;;  %v2117_v19 = vshll.u32 %v5509_v4, 16  ;;  %9045 = vst [vmem:[#allocation11_spill] sm:$0xff] %v8388_v24 }
 0x101   : > { %v2127_v11 = vshrl.u32 %v8364_v60, 16  ;;  %v2092_v29 = vrot.slane %v2090_v32, 4  ;;  %v2095_v33 = vrot.slane %v2093_v52, 5  ;;  %v8393_v4 = vrot.slane %v2099_v30, 5  ;;  %v8408_v52 = vld [vmem:[%s6759_s26 + $0x50] sm:$0x1] }
 0x102   : > { %v4620_v7 = vrot.slane %v4618_v27, 4  ;;  %v4623_v40 = vrot.slane %v4621_v48, 5  ;;  %v8401_v13 = vrot.slane %v4627_v43, 5  ;;  %v4613_v32 = vshll.u32 %v8381_v41, 16  ;;  %9047 = vst [vmem:[#allocation13_spill] sm:$0xff] %v8408_v52  ;;  %v6688_v43 = vld [vmem:[%s6759_s26 + $0xa8] sm:$0xff]  }
 0x103   : > { %6151 = vmatmul.mubr.msk.bf16.vlgmr.msra.gmra.mrb[0].mxu0 %vm420_vm3, %v6681_v3  ;;  %v6687_v3 = vld [vmem:[%s6759_s26 + $0x48] sm:$0xff]   ;;  %v2116_v30 = vrot.slane %v2114_v51, 4  ;;  %v2109_v51 = vshll.u32 %v8388_v24, 16 }
 0x104   : > { %6167 = vmatpush3.bf16.msra.mxu0 %v2260_v1  ;;  %6154 = vmatprep.mubr.msk.bf16.mxu0 %vm420_vm3, %v6683_v28  ;;  %v8385_v1 = vrot.slane %v4603_v55, 5  ;;  %v4609_v28 = vrot.slane %v4607_v49, 4  ;;  %v5814_v55 = vld [vmem:[%s6759_s26 + $0xa8] sm:$0xf]  ;;  %v8399_v49 = vld [vmem:[%s6759_s26 + $0xa4] sm:$0x1] }
 0x105   : > { %6628 = vmatprep.subr.msk.bf16.mxu0 %vm445_vm0, %v5554_v9  ;;  %v2123_v9 = vshll.u32 %v8364_v60, 16  ;;  %9046 = vst [vmem:[#allocation10_spill] sm:$0xff] %v8399_v49  ;;  %v2129_v60 = vrot.slane %v2127_v11, 4  ;;  %v8413_v57 = vld [vmem:[%s6759_s26 + $0xac] sm:$0xf]  ;;  %v4642_v27 = vshrl.u32 %v5814_v55, 16 }
 0x106   : > { %9048 = vst [vmem:[#allocation15_spill] sm:$0xff] %v8413_v57  ;;  %v4645_v48 = vshll.u32 %v5814_v55, 16  ;;  %v4637_v11 = vshll.u32 %v8399_v49, 16 }
 0x107   : > { %6313 = vmatmul.mubr.msk.bf16.vlgmr.msra.gmra.mrb[0].mxu1 %vm420_vm3, %v6682_v56  ;;  %v2105_v56 = vrot.slane %v2103_v10, 4  ;;  %v2119_v10 = vrot.slane %v2117_v19, 5  ;;  %v8410_v17 = vrot.slane %v2123_v9, 5  ;;  %v4624_v9 = vor.u32 %v4623_v40, %v4620_v7  ;;  %v5512_v40 = vld [vmem:[%s6759_s26 + $0x54] sm:$0xf] }
 0x108   : > { %6329 = vmatpush3.bf16.msra.mxu1 %v4787_v5  ;;  %6316 = vmatprep.mubr.msk.bf16.mxu1 %vm420_vm3, %v6684_v18  ;;  %v4633_v5 = vrot.slane %v4631_v36, 4  ;;  %v4600_v18 = vor.u32 %v8356_v58, %v8354_v44  ;;  %v4610_v58 = vor.u32 %v4609_v28, %v8385_v1  ;;  %v2096_v36 = vor.u32 %v2095_v33, %v2092_v29 }
 0x109   : > { %6637 = vmatprep.subr.msk.bf16.mxu1 %vm445_vm0, %v8370_v47  ;;  %v2106_v19 = vor.u32 %v2105_v56, %v8393_v4  ;;  %v2120_v44 = vor.u32 %v2119_v10, %v2116_v30  ;;  %v2133_v28 = vshll.u32 %v8408_v52, 16  ;;  %v4651_v29 = vshll.u32 %v8413_v57, 16 }
 0x10a   : > { %v8427_v55 = vrot.slane %v4600_v18, 4  ;;  %v4644_v33 = vrot.slane %v4642_v27, 4  ;;  %v4647_v56 = vrot.slane %v4645_v48, 5  ;;  %v4655_v7 = vshrl.u32 %v8413_v57, 16  ;;  %v6691_v18 = vld [vmem:[%s6759_s26 + $0x60] sm:$0xff]  }
 0x10b   : > { %6155 = vmatmul.mubr.msk.bf16.gmra.mrb[4].mxu0 %vm420_vm3, %v6685_v6  ;;  %v4634_v6 = vor.u32 %v4633_v5, %v8401_v13  ;;  %v6689_v5 = vld [vmem:[%s6759_s26 + $0x54] sm:$0xff]   ;;  %v4611_v30 = vrot.slane %v4610_v58, 4  ;;  %v4615_v10 = vrot.slane %v4613_v32, 5  ;;  %v2097_v49 = vrot.slane %v2096_v36, 4  ;;  %v6692_v36 = vld [vmem:[%s6759_s26 + $0xc0] sm:$0xff]  }
 0x10c   : > { %6158 = vmatprep.mubr.msk.bf16.mxu0 %vm420_vm3, %v6687_v3  ;;  %v2130_v3 = vor.u32 %v2129_v60, %v8410_v17  ;;  %v2111_v52 = vrot.slane %v2109_v51, 5  ;;  %v2107_v24 = vrot.slane %v2106_v19, 4  ;;  %v4639_v41 = vrot.slane %v4637_v11, 5  ;;  %v8439_v27 = vld [vmem:[%s6759_s26 + $0x58] sm:$0xf] }
 0x10d   : > { %v4635_v60 = vrot.slane %v4634_v6, 4  ;;  %v2121_v48 = vrot.slane %v2120_v44, 4  ;;  %v2135_v57 = vrot.slane %v2133_v28, 5  ;;  %v2138_v62 = vshrl.u32 %v5512_v40, 16 }
 0x10e   : > { %v2141_v2 = vshll.u32 %v5512_v40, 16  ;;  %v2131_v35 = vrot.slane %v2130_v3, 4  ;;  %v4648_v45 = vor.u32 %v4647_v56, %v4644_v33  ;;  %v8445_v58 = vrot.slane %v4651_v29, 5  ;;  %v5817_v3 = vld [vmem:[%s6759_s26 + $0xb4] sm:$0xf] }
 0x10f   : > { %6317 = vmatmul.mubr.msk.bf16.gmra.mrb[4].mxu1 %vm420_vm3, %v6686_v22  ;;  %v4625_v22 = vrot.slane %v4624_v9, 4  ;;  %v4657_v32 = vrot.slane %v4655_v7, 4  ;;  %v2088_v51 = vsel %vm6797_vm4, %v8378_v25, %v8342_v26  ;;  %v4606_v44 = vsel %vm6797_vm4, %v8427_v55, %v8385_v1 }
 0x110   : > { %6320 = vmatprep.mubr.msk.bf16.mxu1 %vm420_vm3, %v6688_v43  ;;  %v6690_v43 = vld [vmem:[%s6759_s26 + $0xb4] sm:$0xff]   ;;  %v2147_v19 = vshll.u32 %v8439_v27, 16  ;;  %v2151_v9 = vshrl.u32 %v8439_v27, 16  ;;  %v4616_v6 = vsel %vm6797_vm4, %v4611_v30, %v4615_v10  ;;  %v2102_v26 = vsel %vm6797_vm4, %v2097_v49, %v8393_v4  ;;  %v8483_v49 = vld [vmem:[%s6759_s26 + $0x5c] sm:$0x1] }
 0x111   : > { %v2112_v25 = vsel %vm6797_vm4, %v2107_v24, %v2111_v52  ;;  %v4630_v1 = vsel %vm6797_vm4, %v4625_v22, %v8401_v13  ;;  %v4640_v11 = vsel %vm6797_vm4, %v4635_v60, %v4639_v41  ;;  %v4661_v55 = vshll.u32 %v8443_v14, 16  ;;  %v8548_v60 = vld [vmem:[%s6759_s26 + $0xc4] sm:$0xf] }
 0x112   : > { %v2140_v28 = vrot.slane %v2138_v62, 4  ;;  %v2143_v29 = vrot.slane %v2141_v2, 5  ;;  %v2126_v4 = vsel %vm6797_vm4, %v2121_v48, %v8410_v17  ;;  %v2136_v24 = vsel %vm6797_vm4, %v2131_v35, %v2135_v57  ;;  %v6693_v62 = vld [vmem:[%s6759_s26 + $0x6c] sm:$0xff]  }
 0x113   : > { %6159 = vmatmul.mubr.msk.bf16.gmra.mrb[8].mxu0 %vm420_vm3, %v6689_v5  ;;  %v8479_v13 = vrot.slane %v4648_v45, 4  ;;  %v4658_v41 = vor.u32 %v4657_v32, %v8445_v58  ;;  %v9049_v2 = vsel %vm6797_vm4, %v8295_v54, %v8286_v46  ;;  %v9050_v35 = vsel %vm6797_vm4, %v8293_v20, %v8243_v38  ;;  %v8538_v5 = vld [vmem:[%s6759_s26 + $0x64] sm:$0xf] }
 0x114   : > { %6162 = vmatprep.mubr.msk.bf16.mxu0 %vm420_vm3, %v6691_v18  ;;  %v8497_v45 = vcombine.low %v9050_v35, %v9049_v2  ;;  %v8501_v57 = vsel %vm445_vm0, %v8370_v47, 0  ;;  %v8503_v17 = vrot.slane %v2147_v19, 5  ;;  %v2153_v52 = vrot.slane %v2151_v9, 4  ;;  %v5820_v18 = vld [vmem:[%s6759_s26 + $0xc0] sm:$0xf] }
 0x115   : > { %v9051_v46 = vsel %vm6797_vm4, %v8303_v34, %v8305_v50  ;;  %v9052_v38 = vsel %vm6797_vm4, %v8297_v15, %v8255_v59  ;;  %v9053_v54 = vsel %vm6797_vm4, %v8376_v42, %v8299_v0  ;;  %v8525_v33 = vcombine.low %v4606_v44, %v4616_v6  ;;  %v8530_v34 = vld [vmem:[%s6759_s26 + $0xb8] sm:$0xf]  ;;  %v5515_v50 = vld [vmem:[%s6759_s26 + $0x60] sm:$0xf]  ;;  %v6694_v0 = vld [vmem:[%s6759_s26 + $0xcc] sm:$0xff]  }
 0x116   : > { %v8516_v20 = vcombine.low %v9052_v38, %v9051_v46  ;;  %v8523_v47 = vcombine.low %v9053_v54, %v2088_v51  ;;  %v8527_v56 = vcombine.low %v2102_v26, %v2112_v25  ;;  %v8533_v7 = vcombine.low %v4630_v1, %v4640_v11  ;;  %v8583_v46 = vld [vmem:[%s6759_s26 + $0x68] sm:$0x1] }
 0x117   : > { %6321 = vmatmul.mubr.msk.bf16.gmra.mrb[8].mxu1 %vm420_vm3, %v6690_v43  ;;  %v8535_v59 = vcombine.low %v2126_v4, %v2136_v24  ;;  %v4663_v15 = vrot.slane %v4661_v55, 5  ;;  %v2144_v40 = vor.u32 %v2143_v29, %v2140_v28  ;;  %v4654_v42 = vsel %vm6797_vm4, %v8479_v13, %v8445_v58  ;;  %v8568_v55 = vld [vmem:[%s6759_s26 + $0xbc] sm:$0x1] }
 0x118   : > { %6324 = vmatprep.mubr.msk.bf16.mxu1 %vm420_vm3, %v6692_v36  ;;  %v4659_v30 = vrot.slane %v4658_v41, 4  ;;  %v2157_v10 = vshll.u32 %v8483_v49, 16  ;;  %v4666_v22 = vshrl.u32 %v5817_v3, 16  ;;  %v2154_v48 = vor.u32 %v2153_v52, %v8503_v17  ;;  %v5518_v41 = vld [vmem:[%s6759_s26 + $0x6c] sm:$0xf] }
 0x119   : > { %v4669_v43 = vshll.u32 %v5817_v3, 16  ;;  %v4675_v32 = vshll.u32 %v8530_v34, 16  ;;  %v4679_v36 = vshrl.u32 %v8530_v34, 16  ;;  %v2162_v58 = vshrl.u32 %v5515_v50, 16  ;;  %v8580_v3 = vld [vmem:[%s6759_s26 + $0x70] sm:$0xf] }
 0x11a   : > { %v2165_v51 = vshll.u32 %v5515_v50, 16  ;;  %v2171_v44 = vshll.u32 %v8538_v5, 16  ;;  %v2175_v19 = vshrl.u32 %v8538_v5, 16  ;;  %v4690_v9 = vshrl.u32 %v5820_v18, 16 }
 0x11b   : > { %6163 = vmatmul.mubr.msk.bf16.gmra.mrb[12].mxu0 %vm420_vm3, %v6693_v62  ;;  %v4693_v6 = vshll.u32 %v5820_v18, 16  ;;  %v4699_v26 = vshll.u32 %v8548_v60, 16  ;;  %v4703_v25 = vshrl.u32 %v8548_v60, 16  ;;  %v4664_v1 = vsel %vm6797_vm4, %v4659_v30, %v4663_v15  ;;  %v8594_v18 = vld [vmem:[%s6759_s26 + $0xc8] sm:$0x1] }
 0x11c   : > { %6168 = vmatprep.mubr.msk.bf16.mxu0 %vm420_vm3, %v8316_v53  ;;  %v8563_v53 = vrot.slane %v2144_v40, 4  ;;  %v8565_v11 = vrot.slane %v2157_v10, 5  ;;  %v4668_v28 = vrot.slane %v4666_v22, 4  ;;  %v8572_v29 = vrot.slane %v2154_v48, 4 }
 0x11d   : > { %v4671_v4 = vrot.slane %v4669_v43, 5  ;;  %v8574_v24 = vrot.slane %v4675_v32, 5  ;;  %v4681_v13 = vrot.slane %v4679_v36, 4  ;;  %v2164_v62 = vrot.slane %v2162_v58, 4  ;;  %v5823_v43 = vld [vmem:[%s6759_s26 + $0xcc] sm:$0xf] }
 0x11e   : > { %v2167_v2 = vrot.slane %v2165_v51, 5  ;;  %v8577_v35 = vrot.slane %v2171_v44, 5  ;;  %v2177_v52 = vrot.slane %v2175_v19, 4  ;;  %v4692_v38 = vrot.slane %v4690_v9, 4  ;;  %v8612_v58 = vld [vmem:[%s6759_s26 + $0xd0] sm:$0xf] }
 0x11f   : > { %6325 = vmatmul.mubr.msk.bf16.gmra.mrb[12].mxu1 %vm420_vm3, %v6694_v0  ;;  %v8585_v54 = vrot.slane %v4699_v26, 5  ;;  %v4705_v50 = vrot.slane %v4703_v25, 4  ;;  %v8587_v15 = vcombine.low %v4654_v42, %v4664_v1  ;;  %v2150_v40 = vsel %vm6797_vm4, %v8563_v53, %v8503_v17 }
 0x120   : > { %6330 = vmatprep.mubr.msk.bf16.mxu1 %vm420_vm3, %v8323_v39  ;;  %v4695_v39 = vrot.slane %v4693_v6, 5  ;;  %v2186_v0 = vshrl.u32 %v5518_v41, 16  ;;  %v2189_v30 = vshll.u32 %v5518_v41, 16  ;;  %v4672_v10 = vor.u32 %v4671_v4, %v4668_v28 }
 0x121   : > { %v4685_v22 = vshll.u32 %v8568_v55, 16  ;;  %v2195_v48 = vshll.u32 %v8580_v3, 16  ;;  %v2199_v42 = vshrl.u32 %v8580_v3, 16  ;;  %v2160_v17 = vsel %vm6797_vm4, %v8572_v29, %v8565_v11 }
 0x122   : > { %v2168_v32 = vor.u32 %v2167_v2, %v2164_v62  ;;  %v2181_v36 = vshll.u32 %v8583_v46, 16  ;;  %v2178_v51 = vor.u32 %v2177_v52, %v8577_v35  ;;  %v4696_v44 = vor.u32 %v4695_v39, %v4692_v38 }
 0x123   : > { %6169 = vmatmul.mubr.msk.bf16.vlgmr.msra.gmra.mrb[0].mxu0 %vm420_vm3, %v8497_v45  ;;  %v4682_v45 = vor.u32 %v4681_v13, %v8574_v24  ;;  %v4709_v19 = vshll.u32 %v8594_v18, 16  ;;  %v2191_v9 = vrot.slane %v2189_v30, 5  ;;  %v4714_v6 = vshrl.u32 %v5823_v43, 16  ;;  %v8627_v13 = vld [vmem:[%s6759_s26 + $0x74] sm:$0x1] }
 0x124   : > { %6185 = vmatpush3.bf16.msra.mxu0 %v8319_v37  ;;  %6172 = vmatprep.mubr.msk.bf16.mxu0 %vm420_vm3, %v8523_v47  ;;  %v4706_v37 = vor.u32 %v4705_v50, %v8585_v54  ;;  %v2188_v47 = vrot.slane %v2186_v0, 4  ;;  %v4717_v26 = vshll.u32 %v5823_v43, 16  ;;  %v8622_v25 = vrot.slane %v2195_v48, 5 }
 0x125   : > { %v2201_v1 = vrot.slane %v2199_v42, 4  ;;  %v4723_v53 = vshll.u32 %v8612_v58, 16  ;;  %v4727_v11 = vshrl.u32 %v8612_v58, 16  ;;  %v4673_v28 = vrot.slane %v4672_v10, 4  ;;  %v8641_v42 = vld [vmem:[%s6759_s26 + $0xd4] sm:$0x1] }
 0x126   : > { %v4683_v29 = vrot.slane %v4682_v45, 4  ;;  %v4687_v4 = vrot.slane %v4685_v22, 5  ;;  %v2169_v41 = vrot.slane %v2168_v32, 4  ;;  %v2179_v62 = vrot.slane %v2178_v51, 4 }
 0x127   : > { %6331 = vmatmul.mubr.msk.bf16.vlgmr.msra.gmra.mrb[0].mxu1 %vm420_vm3, %v8516_v20  ;;  %v2183_v20 = vrot.slane %v2181_v36, 5  ;;  %v4711_v2 = vrot.slane %v4709_v19, 5  ;;  %v4707_v52 = vrot.slane %v4706_v37, 4  ;;  %v4716_v38 = vrot.slane %v4714_v6, 4  ;;  %v5538_v36 = vld [vmem:[%s6759_s26 + $0x18] sm:$0xe] }
 0x128   : > { %6347 = vmatpush3.bf16.msra.mxu1 %v8501_v57  ;;  %6334 = vmatprep.mubr.msk.bf16.mxu1 %vm420_vm3, %v8525_v33  ;;  %v4697_v57 = vrot.slane %v4696_v44, 4  ;;  %v2192_v33 = vor.u32 %v2191_v9, %v2188_v47  ;;  %v4719_v39 = vrot.slane %v4717_v26, 5  ;;  %v2202_v50 = vor.u32 %v2201_v1, %v8622_v25  ;;  %v5843_v9 = vld [vmem:[%s6759_s26 + $0x78] sm:$0xe] }
 0x129   : > { %v2205_v0 = vshll.u32 %v8627_v13, 16  ;;  %v8633_v30 = vrot.slane %v4723_v53, 5  ;;  %v4729_v10 = vrot.slane %v4727_v11, 4  ;;  %v5527_v22 = vcombine.low %v2150_v40, %v2160_v17 }
 0x12a   : > { %v4678_v48 = vsel %vm6797_vm4, %v4673_v28, %v8574_v24  ;;  %v2174_v43 = vsel %vm6797_vm4, %v2169_v41, %v8577_v35  ;;  %v2184_v45 = vsel %vm6797_vm4, %v2179_v62, %v2183_v20  ;;  %v2409_v32 = vrot.slane %v8165_v63, 5  ;;  %v5539_v28 = vld [vmem:[%s6759_s26 + $0x24] sm:$0xe] }
 0x12b   : > { %6173 = vmatmul.mubr.msk.bf16.gmra.mrb[4].mxu0 %vm420_vm3, %v8527_v56  ;;  %v4688_v56 = vsel %vm6797_vm4, %v4683_v29, %v4687_v4  ;;  %v4712_v24 = vsel %vm6797_vm4, %v4707_v52, %v4711_v2  ;;  %v2193_v40 = vrot.slane %v2192_v33, 4  ;;  %v4720_v17 = vor.u32 %v4719_v39, %v4716_v38  ;;  %v5540_v52 = vld [vmem:[%s6759_s26 + $0x30] sm:$0xe]  ;;  %v9054_v38 = vld [vmem:[#allocation3_spill] sm:$0xff] }
 0x12c   : > { %6176 = vmatprep.mubr.msk.bf16.mxu0 %vm420_vm3, %v8535_v59  ;;  %v4702_v59 = vsel %vm6797_vm4, %v4697_v57, %v8585_v54  ;;  %v2203_v35 = vrot.slane %v2202_v50, 4  ;;  %v2207_v51 = vrot.slane %v2205_v0, 5  ;;  %v4730_v63 = vor.u32 %v4729_v10, %v8633_v30  ;;  %v5844_v50 = vld [vmem:[%s6759_s26 + $0x84] sm:$0xe] }
 0x12d   : > { %v5528_v44 = vcombine.low %v2174_v43, %v2184_v45  ;;  %v4936_v37 = vrot.slane %v8183_v61, 5  ;;  %v5546_v54 = vrot.slane %v5538_v36, 9  ;;  %v2411_v19 = vrot.slane %v2409_v32, 4  ;;  %v9058_v36 = vld [vmem:[#allocation4_spill] sm:$0xff] }
 0x12e   : > { %v2412_v47 = vrot.slane %v8207_v12, 5  ;;  %v5832_v6 = vcombine.low %v4678_v48, %v4688_v56  ;;  %v5833_v26 = vcombine.low %v4702_v59, %v4712_v24  ;;  %v4721_v1 = vrot.slane %v4720_v17, 4  ;;  %v9056_v48 = vld [vmem:[#allocation2_spill] sm:$0xff]  ;;  %v5845_v59 = vld [vmem:[%s6759_s26 + $0x90] sm:$0xe] }
 0x12f   : > { %6335 = vmatmul.mubr.msk.bf16.gmra.mrb[4].mxu1 %vm420_vm3, %v8533_v7  ;;  %v4733_v7 = vshll.u32 %v8641_v42, 16  ;;  %v2208_v53 = vsel %vm6797_vm4, %v2203_v35, %v2207_v51  ;;  %v4731_v11 = vrot.slane %v4730_v63, 4  ;;  %v2416_v29 = vrot.slane %v8211_v8, 5 }
 0x130   : > { %6338 = vmatprep.mubr.msk.bf16.mxu1 %vm420_vm3, %v8587_v15  ;;  %v2198_v15 = vsel %vm6797_vm4, %v2193_v40, %v8622_v25  ;;  %v5851_v12 = vrot.slane %v5843_v9, 9  ;;  %v4938_v4 = vrot.slane %v4936_v37, 4  ;;  %v4939_v20 = vrot.slane %v8220_v16, 5  ;;  %v9060_v9 = vld [vmem:[#allocation12_spill] sm:$0xff] }
 0x131   : > { %v4735_v61 = vrot.slane %v4733_v7, 5  ;;  %v2410_v25 = vsel %vm7138_vm7, %v5546_v54, %v2409_v32  ;;  %v2413_v41 = vsel %vm7138_vm7, %v2411_v19, %v2412_v47  ;;  %v2423_v62 = vrot.slane %v8258_v21, 5  ;;  %v9055_v21 = vld [vmem:[#allocation5_spill] sm:$0xff] }
 0x132   : > { %v5529_v57 = vcombine.low %v2198_v15, %v2208_v53  ;;  %v4726_v8 = vsel %vm6797_vm4, %v4721_v1, %v8633_v30  ;;  %v5547_v2 = vrot.slane %v5539_v28, 9  ;;  %v2418_v33 = vrot.slane %v2416_v29, 4  ;;  %v9061_v1 = vld [vmem:[#allocation8_spill] sm:$0xff] }
 0x133   : > { %6177 = vmatmul.mubr.msk.bf16.gmra.mrb[8].mxu0 %vm420_vm3, %v5527_v22  ;;  %v4736_v16 = vsel %vm6797_vm4, %v4731_v11, %v4735_v61  ;;  %v2419_v39 = vrot.slane %v9054_v38, 5  ;;  %v4943_v0 = vrot.slane %v9055_v21, 5  ;;  %v5555_v10 = vcombine.low %v2410_v25, %v2413_v41  ;;  %v5846_v41 = vld [vmem:[%s6759_s26 + $0x9c] sm:$0xe] }
 0x134   : > { %6180 = vmatprep.mubr.msk.bf16.mxu0 %vm420_vm3, %v5528_v44  ;;  %v4937_v22 = vsel %vm7138_vm7, %v5851_v12, %v4936_v37  ;;  %v4940_v30 = vsel %vm7138_vm7, %v4938_v4, %v4939_v20  ;;  %v4950_v56 = vrot.slane %v9056_v48, 5  ;;  %v5548_v43 = vrot.slane %v5540_v52, 9  ;;  %v5541_v44 = vld [vmem:[%s6759_s26 + $0x3c] sm:$0xe]  ;;  %v9062_v20 = vld [vmem:[#allocation11_spill] sm:$0xff]  ;;  %v9066_v48 = vld [vmem:[#allocation10_spill] sm:$0xff] }
 0x135   : > { %v2425_v45 = vrot.slane %v2423_v62, 4  ;;  %v2426_v32 = vrot.slane %v9057_v31, 5  ;;  %v5834_v24 = vcombine.low %v4726_v8, %v4736_v16  ;;  %v2417_v40 = vsel %vm7138_vm7, %v5547_v2, %v2416_v29  ;;  %v9059_v37 = vld [vmem:[#allocation9_spill] sm:$0xff]  ;;  %v5542_v29 = vld [vmem:[%s6759_s26 + $0x48] sm:$0xe] }
 0x136   : > { %v5852_v17 = vrot.slane %v5844_v50, 9  ;;  %v4946_v35 = vrot.slane %v9058_v36, 5  ;;  %v5860_v51 = vcombine.low %v4937_v22, %v4940_v30  ;;  %v2420_v63 = vsel %vm7138_vm7, %v2418_v33, %v2419_v39  ;;  %v9064_v16 = vld [vmem:[#allocation15_spill] sm:$0xff]  ;;  %v9065_v50 = vld [vmem:[#allocation13_spill] sm:$0xff] }
 0x137   : > { %6339 = vmatmul.mubr.msk.bf16.gmra.mrb[8].mxu1 %vm420_vm3, %v5832_v6  ;;  %v4945_v7 = vrot.slane %v4943_v0, 4  ;;  %v2430_v54 = vrot.slane %v9059_v37, 5  ;;  %v5853_v19 = vrot.slane %v5845_v59, 9  ;;  %v4952_v47 = vrot.slane %v4950_v56, 4 }
 0x138   : > { %6342 = vmatprep.mubr.msk.bf16.mxu1 %vm420_vm3, %v5833_v26  ;;  %v4953_v6 = vrot.slane %v9060_v9, 5  ;;  %v2424_v26 = vsel %vm7138_vm7, %v5548_v43, %v2423_v62  ;;  %v2427_v15 = vsel %vm7138_vm7, %v2425_v45, %v2426_v32  ;;  %v2437_v53 = vrot.slane %v9061_v1, 5  ;;  %v9063_v62 = vld [vmem:[#allocation7_spill] sm:$0xff]  ;;  %v5543_v32 = vld [vmem:[%s6759_s26 + $0x54] sm:$0xe] }
 0x139   : > { %v5556_v11 = vcombine.low %v2417_v40, %v2420_v63  ;;  %v4944_v61 = vsel %vm7138_vm7, %v5852_v17, %v4943_v0  ;;  %v5549_v28 = vrot.slane %v5541_v44, 9  ;;  %v4947_v12 = vsel %vm7138_vm7, %v4945_v7, %v4946_v35  ;;  %v5847_v0 = vld [vmem:[%s6759_s26 + $0xa8] sm:$0xe]  ;;  %v5544_v44 = vld [vmem:[%s6759_s26 + $0x60] sm:$0xe] }
 0x13a   : > { %v2432_v4 = vrot.slane %v2430_v54, 4  ;;  %v2433_v25 = vrot.slane %v9062_v20, 5  ;;  %v5557_v8 = vcombine.low %v2424_v26, %v2427_v15  ;;  %v4951_v2 = vsel %vm7138_vm7, %v5853_v19, %v4950_v56  ;;  %v5848_v19 = vld [vmem:[%s6759_s26 + $0xb4] sm:$0xe]  ;;  %v5849_v26 = vld [vmem:[%s6759_s26 + $0xc0] sm:$0xe] }
 0x13b   : > { %6181 = vmatmul.mubr.msk.bf16.gmra.mrb[12].mxu0 %vm420_vm3, %v5529_v57  ;;  %v4957_v57 = vrot.slane %v9063_v62, 5  ;;  %v4954_v52 = vsel %vm7138_vm7, %v4952_v47, %v4953_v6  ;;  %v4964_v33 = vrot.slane %v9064_v16, 5  ;;  %v5550_v38 = vrot.slane %v5542_v29, 9 }
 0x13c   : > { %6186 = vmatprep.mubr.msk.bf16.mxu0 %vm420_vm3, %v5555_v10  ;;  %v2439_v39 = vrot.slane %v2437_v53, 4  ;;  %v2440_v21 = vrot.slane %v9065_v50, 5  ;;  %v5861_v10 = vcombine.low %v4944_v61, %v4947_v12  ;;  %v2431_v22 = vsel %vm7138_vm7, %v5549_v28, %v2430_v54  ;;  %v5850_v50 = vld [vmem:[%s6759_s26 + $0xcc] sm:$0xe] }
 0x13d   : > { %v5854_v30 = vrot.slane %v5846_v41, 9  ;;  %v4960_v43 = vrot.slane %v9066_v48, 5  ;;  %v5862_v56 = vcombine.low %v4951_v2, %v4954_v52  ;;  %v2434_v45 = vsel %vm7138_vm7, %v2432_v4, %v2433_v25  ;;  %v5545_v25 = vld [vmem:[%s6759_s26 + $0x6c] sm:$0xe]  ;;  %s5297_s26 = sshll.u32 %s6729_s13, 5 }
 0x13e   : > { %v4959_v31 = vrot.slane %v4957_v57, 4  ;;  %v2444_v59 = vrot.slane %v8439_v27, 5  ;;  %v4966_v40 = vrot.slane %v4964_v33, 4  ;;  %v4967_v17 = vrot.slane %v8443_v14, 5  ;;  %p167_p4 = scmp.lt.s32.totalorder %s5297_s26, 63 }
 0x13f   : > { %6343 = vmatmul.mubr.msk.bf16.gmra.mrb[12].mxu1 %vm420_vm3, %v5834_v24  ;;  %v5855_v24 = vrot.slane %v5847_v0, 9  ;;  %v2438_v36 = vsel %vm7138_vm7, %v5550_v38, %v2437_v53  ;;  %v2441_v35 = vsel %vm7138_vm7, %v2439_v39, %v2440_v21  ;;  %v5558_v63 = vcombine.low %v2431_v22, %v2434_v45  ;;  %v8809_v45 = vld [vmem:[%s8917_s2] ss:$0 sm:$0xff] }
 0x140   : > { %6348 = vmatprep.mubr.msk.bf16.mxu1 %vm420_vm3, %v5860_v51  ;;  %v2451_v51 = vrot.slane %v8538_v5, 5  ;;  %v4958_v27 = vsel %vm7138_vm7, %v5854_v30, %v4957_v57  ;;  %v5551_v7 = vrot.slane %v5543_v32, 9  ;;  %v4961_v14 = vsel %vm7138_vm7, %v4959_v31, %v4960_v43  ;;  %s9068_s26 = smov (!%p167_p4, %s5297_s26), 63 }
 0x141   : > { %v2446_v37 = vrot.slane %v2444_v59, 4  ;;  %v2447_v54 = vrot.slane %v8483_v49, 5  ;;  %v4971_v47 = vrot.slane %v8530_v34, 5  ;;  %v5559_v5 = vcombine.low %v2438_v36, %v2441_v35  ;;  %s5298_s6 = sshll.u32 %s9068_s26, 3 }
 0x142   : > { %v4965_v9 = vsel %vm7138_vm7, %v5855_v24, %v4964_v33  ;;  %v4968_v6 = vsel %vm7138_vm7, %v4966_v40, %v4967_v17  ;;  %v4978_v15 = vrot.slane %v8548_v60, 5  ;;  %v5552_v1 = vrot.slane %v5544_v44, 9  ;;  %s8816_s9 = scalar_lea.vmem %s8918_s3, %s5298_s6 }
 0x143   : > { %6187 = vmatmul.mubr.msk.bf16.vlgmr.msra.gmra.mrb[0].mxu0 %vm420_vm3, %v5556_v11  ;;  %v2453_v53 = vrot.slane %v2451_v51, 4  ;;  %v2454_v11 = vrot.slane %v8583_v46, 5  ;;  %v5863_v61 = vcombine.low %v4958_v27, %v4961_v14  ;;  %v2445_v49 = vsel %vm7138_vm7, %v5551_v7, %v2444_v59 }
 0x144   : > { %6190 = vmatprep.mubr.msk.bf16.mxu0 %vm420_vm3, %v5557_v8  ;;  %v5856_v34 = vrot.slane %v5848_v19, 9  ;;  %v4974_v28 = vrot.slane %v8568_v55, 5  ;;  %v5864_v29 = vcombine.low %v4965_v9, %v4968_v6  ;;  %v2448_v12 = vsel %vm7138_vm7, %v2446_v37, %v2447_v54 }
 0x145   : > { %v4973_v4 = vrot.slane %v4971_v47, 4  ;;  %v5857_v60 = vrot.slane %v5849_v26, 9  ;;  %v4980_v20 = vrot.slane %v4978_v15, 4  ;;  %v4981_v46 = vrot.slane %v8594_v18, 5 }
 0x146   : > { %v2458_v41 = vrot.slane %v8580_v3, 5  ;;  %v2452_v55 = vsel %vm7138_vm7, %v5552_v1, %v2451_v51  ;;  %v2455_v62 = vsel %vm7138_vm7, %v2453_v53, %v2454_v11  ;;  %v5560_v57 = vcombine.low %v2445_v49, %v2448_v12 }
 0x147   : > { %6349 = vmatmul.mubr.msk.bf16.vlgmr.msra.gmra.mrb[0].mxu1 %vm420_vm3, %v5861_v10  ;;  %v4972_v8 = vsel %vm7138_vm7, %v5856_v34, %v4971_v47  ;;  %v4975_v18 = vsel %vm7138_vm7, %v4973_v4, %v4974_v28  ;;  %v4979_v3 = vsel %vm7138_vm7, %v5857_v60, %v4978_v15  ;;  %v5553_v2 = vrot.slane %v5545_v25, 9 }
 0x148   : > { %6352 = vmatprep.mubr.msk.bf16.mxu1 %vm420_vm3, %v5862_v56  ;;  %v4985_v52 = vrot.slane %v8612_v58, 5  ;;  %v5561_v16 = vcombine.low %v2452_v55, %v2455_v62  ;;  %v4982_v33 = vsel %vm7138_vm7, %v4980_v20, %v4981_v46  ;;  %v2460_v38 = vrot.slane %v2458_v41, 4 }
 0x149   : > { %v2461_v39 = vrot.slane %v8627_v13, 5  ;;  %v5865_v21 = vcombine.low %v4972_v8, %v4975_v18  ;;  %v5866_v0 = vcombine.low %v4979_v3, %v4982_v33  ;;  %v5858_v10 = vrot.slane %v5850_v50, 9 }
 0x14a   : > { %v4987_v22 = vrot.slane %v4985_v52, 4  ;;  %v4988_v30 = vrot.slane %v8641_v42, 5  ;;  %v2459_v58 = vsel %vm7138_vm7, %v5553_v2, %v2458_v41 }
 0x14b   : > { %6191 = vmatmul.mubr.msk.bf16.gmra.mrb[4].mxu0 %vm420_vm3, %v5558_v63  ;;  %v2462_v48 = vsel %vm7138_vm7, %v2460_v38, %v2461_v39  ;;  %v4986_v43 = vsel %vm7138_vm7, %v5858_v10, %v4985_v52 }
 0x14c   : > { %6194 = vmatprep.mubr.msk.bf16.mxu0 %vm420_vm3, %v5559_v5  ;;  %v5562_v13 = vcombine.low %v2459_v58, %v2462_v48  ;;  %v4989_v56 = vsel %vm7138_vm7, %v4987_v22, %v4988_v30 }
 0x14d   : > { %v5867_v42 = vcombine.low %v4986_v43, %v4989_v56 }
 0x14f   : > { %6353 = vmatmul.mubr.msk.bf16.gmra.mrb[4].mxu1 %vm420_vm3, %v5863_v61 }
 0x150   : > { %6356 = vmatprep.mubr.msk.bf16.mxu1 %vm420_vm3, %v5864_v29 }
 0x153   : > { %6195 = vmatmul.mubr.msk.bf16.gmra.mrb[8].mxu0 %vm420_vm3, %v5560_v57 }
 0x154   : > { %6198 = vmatprep.mubr.msk.bf16.mxu0 %vm420_vm3, %v5561_v16 }
 0x157   : > { %6357 = vmatmul.mubr.msk.bf16.gmra.mrb[8].mxu1 %vm420_vm3, %v5865_v21 }
 0x158   : > { %6360 = vmatprep.mubr.msk.bf16.mxu1 %vm420_vm3, %v5866_v0 }
 0x15b   : > { %6199 = vmatmul.mubr.msk.bf16.gmra.mrb[12].mxu0 %vm420_vm3, %v5562_v13 }
 0x15f   : > { %6361 = vmatmul.mubr.msk.bf16.gmra.mrb[12].mxu1 %vm420_vm3, %v5867_v42 }
 0x216   : > { %v6188_v31 = vpop.f32.mrb[0].mxu0 }
 0x217   : > { %v2637_v32 = vadd.f32 %v6188_v31, %v8809_v45  ;;  %v2550_v59 = vpop.f32.mrb[1].mxu0 }
 0x218   : > { %v2635_v23 = vadd.f32 %v8809_v45, %v2550_v59  ;;  %v6189_v24 = vpop.f32.mrb[2].mxu0 }
 0x219   : > { %vm2653_vm8 = vcmp.gt.f32.partialorder %v2637_v32, 0.0  ;;  %v2669_v40 = vmul.f32 0.1, %v2637_v32  ;;  %v2638_v36 = vadd.f32 %v6189_v24, %v8809_v45  ;;  %v2553_v35 = vpop.f32.mrb[3].mxu0 }
 0x21a   : > { %v6350_v17 = vpop.f32.mrb[0].mxu1  ;;  %vm2651_vm9 = vcmp.gt.f32.partialorder %v2635_v23, 0.0  ;;  %v2667_v63 = vmul.f32 0.1, %v2635_v23  ;;  %v2636_v7 = vadd.f32 %v8809_v45, %v2553_v35 }
 0x21b   : > { %v5157_v51 = vadd.f32 %v6350_v17, %v8809_v45  ;;  %v5076_v27 = vpop.f32.mrb[1].mxu1  ;;  %v2685_v44 = vsel %vm2653_vm8, %v2637_v32, %v2669_v40  ;;  %vm2654_vm10 = vcmp.gt.f32.partialorder %v2638_v36, 0.0  ;;  %v2670_v37 = vmul.f32 0.1, %v2638_v36 }
 0x21c   : > { %v5155_v14 = vadd.f32 %v8809_v45, %v5076_v27  ;;  %v6351_v54 = vpop.f32.mrb[2].mxu1  ;;  %2701 = vst.msk [vmem:[%s8816_s9 + $0x10] sm:$0xff] %vm420_vm3, %v2685_v44  ;;  %v2683_v47 = vsel %vm2651_vm9, %v2635_v23, %v2667_v63  ;;  %vm2652_vm13 = vcmp.gt.f32.partialorder %v2636_v7, 0.0  ;;  %v2668_v53 = vmul.f32 0.1, %v2636_v7 }
 0x21d   : > { %vm5173_vm11 = vcmp.gt.f32.partialorder %v5157_v51, 0.0  ;;  %v5189_v19 = vmul.f32 0.1, %v5157_v51  ;;  %v5158_v5 = vadd.f32 %v6351_v54, %v8809_v45  ;;  %v5079_v9 = vpop.f32.mrb[3].mxu1  ;;  %2699 = vst.msk [vmem:[%s8816_s9] sm:$0xff] %vm420_vm3, %v2683_v47  ;;  %v2686_v26 = vsel %vm2654_vm10, %v2638_v36, %v2670_v37 }
 0x21e   : > { %vm5171_vm12 = vcmp.gt.f32.partialorder %v5155_v14, 0.0  ;;  %v5187_v6 = vmul.f32 0.1, %v5155_v14  ;;  %2702 = vst.msk [vmem:[%s8816_s9 + $0x18] sm:$0xff] %vm420_vm3, %v2686_v26  ;;  %v6192_v11 = vpop.f32.mrb[4].mxu0  ;;  %v5156_v49 = vadd.f32 %v8809_v45, %v5079_v9  ;;  %v2684_v12 = vsel %vm2652_vm13, %v2636_v7, %v2668_v53 }
 0x21f   : > { %v5205_v15 = vsel %vm5173_vm11, %v5157_v51, %v5189_v19  ;;  %vm5174_vm14 = vcmp.gt.f32.partialorder %v5158_v5, 0.0  ;;  %v5190_v1 = vmul.f32 0.1, %v5158_v5  ;;  %v2641_v34 = vadd.f32 %v6192_v11, %v8809_v45  ;;  %v2566_v28 = vpop.f32.mrb[5].mxu0  ;;  %2700 = vst.msk [vmem:[%s8816_s9 + $0x8] sm:$0xff] %vm420_vm3, %v2684_v12 }
 0x220   : > { %5221 = vst.msk [vmem:[%s8816_s9 + $0x90] sm:$0xff] %vm420_vm3, %v5205_v15  ;;  %v5203_v61 = vsel %vm5171_vm12, %v5155_v14, %v5187_v6  ;;  %v2639_v4 = vadd.f32 %v8809_v45, %v2566_v28  ;;  %v6193_v60 = vpop.f32.mrb[6].mxu0  ;;  %vm5172_vm15 = vcmp.gt.f32.partialorder %v5156_v49, 0.0  ;;  %v5188_v20 = vmul.f32 0.1, %v5156_v49 }
 0x221   : > { %5219 = vst.msk [vmem:[%s8816_s9 + $0x80] sm:$0xff] %vm420_vm3, %v5203_v61  ;;  %v5206_v29 = vsel %vm5174_vm14, %v5158_v5, %v5190_v1  ;;  %vm2657_vm0 = vcmp.gt.f32.partialorder %v2641_v34, 0.0  ;;  %v2673_v46 = vmul.f32 0.1, %v2641_v34  ;;  %v2642_v55 = vadd.f32 %v6193_v60, %v8809_v45  ;;  %v2569_v62 = vpop.f32.mrb[7].mxu0 }
 0x222   : > { %5222 = vst.msk [vmem:[%s8816_s9 + $0x98] sm:$0xff] %vm420_vm3, %v5206_v29  ;;  %v6354_v25 = vpop.f32.mrb[4].mxu1  ;;  %vm2655_vm1 = vcmp.gt.f32.partialorder %v2639_v4, 0.0  ;;  %v2671_v41 = vmul.f32 0.1, %v2639_v4  ;;  %v5204_v57 = vsel %vm5172_vm15, %v5156_v49, %v5188_v20  ;;  %v2640_v2 = vadd.f32 %v8809_v45, %v2569_v62 }
 0x223   : > { %v2689_v8 = vsel %vm2657_vm0, %v2641_v34, %v2673_v46  ;;  %v5161_v18 = vadd.f32 %v6354_v25, %v8809_v45  ;;  %v5092_v3 = vpop.f32.mrb[5].mxu1  ;;  %5220 = vst.msk [vmem:[%s8816_s9 + $0x88] sm:$0xff] %vm420_vm3, %v5204_v57  ;;  %vm2658_vm2 = vcmp.gt.f32.partialorder %v2642_v55, 0.0  ;;  %v2674_v33 = vmul.f32 0.1, %v2642_v55 }
 0x224   : > { %2705 = vst.msk [vmem:[%s8816_s9 + $0x30] sm:$0xff] %vm420_vm3, %v2689_v8  ;;  %v2687_v52 = vsel %vm2655_vm1, %v2639_v4, %v2671_v41  ;;  %v5159_v16 = vadd.f32 %v8809_v45, %v5092_v3  ;;  %v6355_v38 = vpop.f32.mrb[6].mxu1  ;;  %vm2656_vm5 = vcmp.gt.f32.partialorder %v2640_v2, 0.0  ;;  %v2672_v22 = vmul.f32 0.1, %v2640_v2 }
 0x225   : > { %vm5177_vm4 = vcmp.gt.f32.partialorder %v5161_v18, 0.0  ;;  %v5193_v39 = vmul.f32 0.1, %v5161_v18  ;;  %2703 = vst.msk [vmem:[%s8816_s9 + $0x20] sm:$0xff] %vm420_vm3, %v2687_v52  ;;  %v5162_v50 = vadd.f32 %v6355_v38, %v8809_v45  ;;  %v5095_v21 = vpop.f32.mrb[7].mxu1  ;;  %v2690_v10 = vsel %vm2658_vm2, %v2642_v55, %v2674_v33 }
 0x226   : > { %vm5175_vm6 = vcmp.gt.f32.partialorder %v5159_v16, 0.0  ;;  %v5191_v0 = vmul.f32 0.1, %v5159_v16  ;;  %v6196_v30 = vpop.f32.mrb[8].mxu0  ;;  %2706 = vst.msk [vmem:[%s8816_s9 + $0x38] sm:$0xff] %vm420_vm3, %v2690_v10  ;;  %v5160_v13 = vadd.f32 %v8809_v45, %v5095_v21  ;;  %v2688_v42 = vsel %vm2656_vm5, %v2640_v2, %v2672_v22 }
 0x227   : > { %v5209_v58 = vsel %vm5177_vm4, %v5161_v18, %v5193_v39  ;;  %vm5178_vm7 = vcmp.gt.f32.partialorder %v5162_v50, 0.0  ;;  %v5194_v48 = vmul.f32 0.1, %v5162_v50  ;;  %v2582_v43 = vpop.f32.mrb[9].mxu0  ;;  %v2645_v31 = vadd.f32 %v6196_v30, %v8809_v45  ;;  %2704 = vst.msk [vmem:[%s8816_s9 + $0x28] sm:$0xff] %vm420_vm3, %v2688_v42 }
 0x228   : > { %5225 = vst.msk [vmem:[%s8816_s9 + $0xb0] sm:$0xff] %vm420_vm3, %v5209_v58  ;;  %v5207_v56 = vsel %vm5175_vm6, %v5159_v16, %v5191_v0  ;;  %v2643_v32 = vadd.f32 %v8809_v45, %v2582_v43  ;;  %v6197_v59 = vpop.f32.mrb[10].mxu0  ;;  %vm5176_vm8 = vcmp.gt.f32.partialorder %v5160_v13, 0.0  ;;  %v5192_v24 = vmul.f32 0.1, %v5160_v13 }
 0x229   : > { %5223 = vst.msk [vmem:[%s8816_s9 + $0xa0] sm:$0xff] %vm420_vm3, %v5207_v56  ;;  %v5210_v23 = vsel %vm5178_vm7, %v5162_v50, %v5194_v48  ;;  %v2646_v17 = vadd.f32 %v6197_v59, %v8809_v45  ;;  %v2585_v36 = vpop.f32.mrb[11].mxu0  ;;  %vm2661_vm9 = vcmp.gt.f32.partialorder %v2645_v31, 0.0  ;;  %v2677_v35 = vmul.f32 0.1, %v2645_v31 }
 0x22a   : > { %v6358_v40 = vpop.f32.mrb[8].mxu1  ;;  %5226 = vst.msk [vmem:[%s8816_s9 + $0xb8] sm:$0xff] %vm420_vm3, %v5210_v23  ;;  %vm2659_vm10 = vcmp.gt.f32.partialorder %v2643_v32, 0.0  ;;  %v5208_v27 = vsel %vm5176_vm8, %v5160_v13, %v5192_v24  ;;  %v2675_v7 = vmul.f32 0.1, %v2643_v32  ;;  %v2644_v1 = vadd.f32 %v8809_v45, %v2585_v36 }
 0x22b   : > { %v5165_v51 = vadd.f32 %v6358_v40, %v8809_v45  ;;  %v5108_v63 = vpop.f32.mrb[9].mxu1  ;;  %vm2662_vm11 = vcmp.gt.f32.partialorder %v2646_v17, 0.0  ;;  %5224 = vst.msk [vmem:[%s8816_s9 + $0xa8] sm:$0xff] %vm420_vm3, %v5208_v27  ;;  %v2693_v37 = vsel %vm2661_vm9, %v2645_v31, %v2677_v35  ;;  %v2678_v19 = vmul.f32 0.1, %v2646_v17 }
 0x22c   : > { %v5163_v44 = vadd.f32 %v8809_v45, %v5108_v63  ;;  %v6359_v14 = vpop.f32.mrb[10].mxu1  ;;  %2709 = vst.msk [vmem:[%s8816_s9 + $0x50] sm:$0xff] %vm420_vm3, %v2693_v37  ;;  %v2691_v5 = vsel %vm2659_vm10, %v2643_v32, %v2675_v7  ;;  %vm2660_vm15 = vcmp.gt.f32.partialorder %v2644_v1, 0.0  ;;  %v2676_v29 = vmul.f32 0.1, %v2644_v1 }
 0x22d   : > { %vm5181_vm12 = vcmp.gt.f32.partialorder %v5165_v51, 0.0  ;;  %v5197_v54 = vmul.f32 0.1, %v5165_v51  ;;  %v5111_v47 = vpop.f32.mrb[11].mxu1  ;;  %v5166_v6 = vadd.f32 %v6359_v14, %v8809_v45  ;;  %2707 = vst.msk [vmem:[%s8816_s9 + $0x40] sm:$0xff] %vm420_vm3, %v2691_v5  ;;  %v2694_v15 = vsel %vm2662_vm11, %v2646_v17, %v2678_v19 }
 0x22e   : > { %vm5179_vm13 = vcmp.gt.f32.partialorder %v5163_v44, 0.0  ;;  %v5195_v9 = vmul.f32 0.1, %v5163_v44  ;;  %v5164_v53 = vadd.f32 %v8809_v45, %v5111_v47  ;;  %v6200_v11 = vpop.f32.mrb[12].mxu0  ;;  %2710 = vst.msk [vmem:[%s8816_s9 + $0x58] sm:$0xff] %vm420_vm3, %v2694_v15  ;;  %v2692_v41 = vsel %vm2660_vm15, %v2644_v1, %v2676_v29 }
 0x22f   : > { %v5213_v26 = vsel %vm5181_vm12, %v5165_v51, %v5197_v54  ;;  %vm5182_vm14 = vcmp.gt.f32.partialorder %v5166_v6, 0.0  ;;  %v5198_v49 = vmul.f32 0.1, %v5166_v6  ;;  %v2649_v34 = vadd.f32 %v6200_v11, %v8809_v45  ;;  %v2598_v28 = vpop.f32.mrb[13].mxu0  ;;  %2708 = vst.msk [vmem:[%s8816_s9 + $0x48] sm:$0xff] %vm420_vm3, %v2692_v41 }
 0x230   : > { %5229 = vst.msk [vmem:[%s8816_s9 + $0xd0] sm:$0xff] %vm420_vm3, %v5213_v26  ;;  %v5211_v61 = vsel %vm5179_vm13, %v5163_v44, %v5195_v9  ;;  %vm5180_vm0 = vcmp.gt.f32.partialorder %v5164_v53, 0.0  ;;  %v5196_v12 = vmul.f32 0.1, %v5164_v53  ;;  %v2647_v46 = vadd.f32 %v8809_v45, %v2598_v28  ;;  %v6201_v25 = vpop.f32.mrb[14].mxu0 }
 0x231   : > { %5227 = vst.msk [vmem:[%s8816_s9 + $0xc0] sm:$0xff] %vm420_vm3, %v5211_v61  ;;  %v5214_v4 = vsel %vm5182_vm14, %v5166_v6, %v5198_v49  ;;  %vm2665_vm1 = vcmp.gt.f32.partialorder %v2649_v34, 0.0  ;;  %v2681_v60 = vmul.f32 0.1, %v2649_v34  ;;  %v2650_v8 = vadd.f32 %v6201_v25, %v8809_v45  ;;  %v2601_v18 = vpop.f32.mrb[15].mxu0 }
 0x232   : > { %v6362_v20 = vpop.f32.mrb[12].mxu1  ;;  %5230 = vst.msk [vmem:[%s8816_s9 + $0xd8] sm:$0xff] %vm420_vm3, %v5214_v4  ;;  %v5212_v55 = vsel %vm5180_vm0, %v5164_v53, %v5196_v12  ;;  %vm2663_vm2 = vcmp.gt.f32.partialorder %v2647_v46, 0.0  ;;  %v2679_v2 = vmul.f32 0.1, %v2647_v46  ;;  %v2648_v30 = vadd.f32 %v8809_v45, %v2601_v18 }
 0x233   : > { %v5169_v62 = vadd.f32 %v6362_v20, %v8809_v45  ;;  %v5124_v57 = vpop.f32.mrb[13].mxu1  ;;  %5228 = vst.msk [vmem:[%s8816_s9 + $0xc8] sm:$0xff] %vm420_vm3, %v5212_v55  ;;  %v2697_v3 = vsel %vm2665_vm1, %v2649_v34, %v2681_v60  ;;  %vm2666_vm5 = vcmp.gt.f32.partialorder %v2650_v8, 0.0  ;;  %v2682_v38 = vmul.f32 0.1, %v2650_v8 }
 0x234   : > { %v5167_v52 = vadd.f32 %v8809_v45, %v5124_v57  ;;  %v6363_v16 = vpop.f32.mrb[14].mxu1  ;;  %2713 = vst.msk [vmem:[%s8816_s9 + $0x70] sm:$0xff] %vm420_vm3, %v2697_v3  ;;  %v2695_v39 = vsel %vm2663_vm2, %v2647_v46, %v2679_v2  ;;  %vm2664_vm8 = vcmp.gt.f32.partialorder %v2648_v30, 0.0  ;;  %v2680_v43 = vmul.f32 0.1, %v2648_v30 }
 0x235   : > { %vm5185_vm4 = vcmp.gt.f32.partialorder %v5169_v62, 0.0  ;;  %v5201_v33 = vmul.f32 0.1, %v5169_v62  ;;  %v5170_v21 = vadd.f32 %v6363_v16, %v8809_v45  ;;  %v5127_v0 = vpop.f32.mrb[15].mxu1  ;;  %2711 = vst.msk [vmem:[%s8816_s9 + $0x60] sm:$0xff] %vm420_vm3, %v2695_v39  ;;  %v2698_v22 = vsel %vm2666_vm5, %v2650_v8, %v2682_v38 }
 0x236   : > { %vm5183_vm6 = vcmp.gt.f32.partialorder %v5167_v52, 0.0  ;;  %v5199_v50 = vmul.f32 0.1, %v5167_v52  ;;  %v5168_v58 = vadd.f32 %v8809_v45, %v5127_v0  ;;  %2714 = vst.msk [vmem:[%s8816_s9 + $0x78] sm:$0xff] %vm420_vm3, %v2698_v22  ;;  %v2696_v31 = vsel %vm2664_vm8, %v2648_v30, %v2680_v43 }
 0x237   : > { %v5217_v10 = vsel %vm5185_vm4, %v5169_v62, %v5201_v33  ;;  %vm5186_vm7 = vcmp.gt.f32.partialorder %v5170_v21, 0.0  ;;  %v5202_v13 = vmul.f32 0.1, %v5170_v21  ;;  %2712 = vst.msk [vmem:[%s8816_s9 + $0x68] sm:$0xff] %vm420_vm3, %v2696_v31 }
 0x238   : > { %5233 = vst.msk [vmem:[%s8816_s9 + $0xf0] sm:$0xff] %vm420_vm3, %v5217_v10  ;;  %v5215_v48 = vsel %vm5183_vm6, %v5167_v52, %v5199_v50  ;;  %vm5184_vm9 = vcmp.gt.f32.partialorder %v5168_v58, 0.0  ;;  %v5200_v56 = vmul.f32 0.1, %v5168_v58 }
 0x239   : > { %5231 = vst.msk [vmem:[%s8816_s9 + $0xe0] sm:$0xff] %vm420_vm3, %v5215_v48  ;;  %v5218_v42 = vsel %vm5186_vm7, %v5170_v21, %v5202_v13 }
 0x23a   : > { %5234 = vst.msk [vmem:[%s8816_s9 + $0xf8] sm:$0xff] %vm420_vm3, %v5218_v42  ;;  %v5216_v32 = vsel %vm5184_vm9, %v5168_v58, %v5200_v56 }
 0x23b   : > { %5232 = vst.msk [vmem:[%s8816_s9 + $0xe8] sm:$0xff] %vm420_vm3, %v5216_v32 }
 0x23c PF: > { %s13_s12 = sadd.s32 1, %s6701_s12  }
 0x23d   : > { %p10_p5 = scmp.ge.s32.totalorder %s13_s12, 4  }
 0x23f   :  { %12 = sbr.rel (!%p10_p5) target bundleno = 1 (0x1), region = 75 }

</bundles_post_ra>
